<compile_context>
chip_gen: v7x
topology: tpu7x:2x2x1
jax: 0.10.0
libtpu: 0.0.40
codegen_flags: <defaults>
</compile_context>

<pallas_src>
import functools

import jax
import jax.numpy as jnp
from jax import lax
from jax.experimental import pallas as pl
from jax.experimental.pallas import tpu as pltpu

HEAD_STRIDE = 128   # lane-aligned per-head stripe (dim_head zero-padded to 128)


def _round_up(n, m):
    return ((n + m - 1) // m) * m


# ---------------------------------------------------------------------------
# Kernel: one (batch element, T tile) per grid step.
# ---------------------------------------------------------------------------
def cross_attention_kernel(x_ref, ctx_ref, wq_ref, wk_ref, wv_ref, wo_ref,
                           bo_ref, out_ref, k_scr, v_scr, ho_scr, *,
                           heads, ctx_len):
    t = pl.program_id(1)

    # K / V projections: once per batch element.  The scratch persists across
    # the "arbitrary" T axis and is recomputed whenever a new batch element
    # starts (t == 0).
    @pl.when(t == 0)
    def _():
        ctx = ctx_ref[0]                                        # (L_p, Dc_p) bf16
        k_scr[...] = jnp.dot(ctx, wk_ref[...],
                             preferred_element_type=jnp.float32
                             ).astype(jnp.bfloat16)             # (L_p, inner_p)
        v_scr[...] = jnp.dot(ctx, wv_ref[...],
                             preferred_element_type=jnp.float32
                             ).astype(jnp.bfloat16)

    # Q projection for this T tile (softmax scale already folded into Wq).
    xq = x_ref[0]                                               # (Tt, Dq_p) bf16
    q = jnp.dot(xq, wq_ref[...], preferred_element_type=jnp.float32)
    q_b = q.astype(jnp.bfloat16)                                # (Tt, inner_p)

    t_tile = xq.shape[0]
    l_pad = k_scr.shape[0]

    # Additive mask for padded context columns, built once per tile and
    # skipped entirely when L is already a multiple of 128 (static check).
    if ctx_len < l_pad:
        col = lax.broadcasted_iota(jnp.int32, (t_tile, l_pad), 1)
        neg_mask = jnp.where(col < ctx_len, 0.0, -1e30).astype(jnp.float32)
    else:
        neg_mask = None

    for hd in range(heads):            # static unroll; 128-lane aligned slices
        lo = hd * HEAD_STRIDE
        qh = q_b[:, lo:lo + HEAD_STRIDE]                        # (Tt, 128)
        kh = k_scr[:, lo:lo + HEAD_STRIDE]                      # (L_p, 128)
        vh = v_scr[:, lo:lo + HEAD_STRIDE]                      # (L_p, 128)

        sim = lax.dot_general(qh, kh, (((1,), (1,)), ((), ())),
                              preferred_element_type=jnp.float32)  # (Tt, L_p)
        if neg_mask is not None:
            sim = sim + neg_mask
        sim = sim - jnp.max(sim, axis=-1, keepdims=True)
        p = jnp.exp(sim)                                        # f32
        inv = pl.reciprocal(jnp.sum(p, axis=-1, keepdims=True), approx=True)
        attn = (p * inv).astype(jnp.bfloat16)

        # Write this head's output straight into its lane stripe of the bf16
        # scratch: bounds vreg liveness, no concat / lane-packing work.
        ho_scr[:, lo:lo + HEAD_STRIDE] = jnp.dot(
            attn, vh, preferred_element_type=jnp.float32).astype(jnp.bfloat16)

    # Fused output projection (f32 accumulate) + bias, bf16 store.
    o = jnp.dot(ho_scr[...], wo_ref[...], preferred_element_type=jnp.float32)
    out_ref[0] = (o + bo_ref[...]).astype(jnp.bfloat16)


# ---------------------------------------------------------------------------
# One-time parameter preparation (hoisted out of the per-call wrapper).
# ---------------------------------------------------------------------------
def prepare_params(params, *, heads=8, dim_head=64):
    """Pad / transpose PyTorch-layout weights into the kernel's layout."""
    wq, wk, wv = params["wq"], params["wk"], params["wv"]
    wo, bo = params["wo"], params["bo"]
    query_dim = wq.shape[1]
    context_dim = wk.shape[1]
    scale = float(dim_head) ** -0.5

    dq_p = _round_up(query_dim, 128)
    dc_p = _round_up(context_dim, 128)
    inner_p = heads * HEAD_STRIDE

    def pad_in_proj(w, d_in_p, s):
        # w: (heads*dim_head, d_in) -> (d_in_p, heads*HEAD_STRIDE) bf16;
        # head h valid in lanes [h*128, h*128+dim_head), rest zero.
        d_in = w.shape[1]
        wt = (w.astype(jnp.float32) * s).T.reshape(d_in, heads, dim_head)
        out = jnp.zeros((d_in_p, heads, HEAD_STRIDE), jnp.float32)
        out = out.at[:d_in, :, :dim_head].set(wt)
        return out.reshape(d_in_p, inner_p).astype(jnp.bfloat16)

    # (query_dim, inner) -> (heads*HEAD_STRIDE, dq_p); padded rows are zero so
    # the fused output projection from the padded head layout is exact.
    wot = wo.astype(jnp.float32).T.reshape(heads, dim_head, query_dim)
    wo_p = jnp.zeros((heads, HEAD_STRIDE, dq_p), jnp.float32)
    wo_p = wo_p.at[:, :dim_head, :query_dim].set(wot)
    wo_p = wo_p.reshape(inner_p, dq_p).astype(jnp.bfloat16)

    bo_p = jnp.zeros((1, dq_p), jnp.float32).at[0, :query_dim].set(
        bo.astype(jnp.float32))

    return dict(
        wq=pad_in_proj(wq, dq_p, scale),      # softmax scale folded into Wq
        wk=pad_in_proj(wk, dc_p, 1.0),
        wv=pad_in_proj(wv, dc_p, 1.0),
        wo=wo_p, bo=bo_p,
        heads=heads, dim_head=dim_head,
        query_dim=query_dim, context_dim=context_dim,
        dq_p=dq_p, dc_p=dc_p, inner_p=inner_p,
    )


# ---------------------------------------------------------------------------
# Per-call wrapper.
# ---------------------------------------------------------------------------
def cross_attention(x, context, prepared, *, t_tile=256):
    """x: (B, T, query_dim); context: (B, L, context_dim) -> (B, T, query_dim) bf16."""
    B, T, Dq = x.shape
    _, L, Dc = context.shape
    assert Dq == prepared["query_dim"] and Dc == prepared["context_dim"]

    heads = prepared["heads"]
    dq_p, dc_p, inner_p = prepared["dq_p"], prepared["dc_p"], prepared["inner_p"]

    # T tile: multiple of 16 (bf16 sublane packing), capped at the requested
    # tile size; bounds the per-step VMEM footprint (matters on v7x).
    t_tile = _round_up(min(t_tile, _round_up(T, 16)), 16)
    n_t = (T + t_tile - 1) // t_tile
    t_p = n_t * t_tile
    l_p = _round_up(L, 128)

    x_p = jnp.zeros((B, t_p, dq_p), jnp.bfloat16)
    x_p = x_p.at[:, :T, :Dq].set(x.astype(jnp.bfloat16))
    ctx_p = jnp.zeros((B, l_p, dc_p), jnp.bfloat16)
    ctx_p = ctx_p.at[:, :L, :Dc].set(context.astype(jnp.bfloat16))

    kernel = functools.partial(cross_attention_kernel, heads=heads, ctx_len=L)

    out_p = pl.pallas_call(
        kernel,
        out_shape=jax.ShapeDtypeStruct((B, t_p, dq_p), jnp.bfloat16),
        grid=(B, n_t),
        in_specs=[
            pl.BlockSpec((1, t_tile, dq_p), lambda b, t: (b, t, 0)),   # x tile
            pl.BlockSpec((1, l_p, dc_p), lambda b, t: (b, 0, 0)),      # context
            pl.BlockSpec((dq_p, inner_p), lambda b, t: (0, 0)),        # Wq^T*scale
            pl.BlockSpec((dc_p, inner_p), lambda b, t: (0, 0)),        # Wk^T
            pl.BlockSpec((dc_p, inner_p), lambda b, t: (0, 0)),        # Wv^T
            pl.BlockSpec((inner_p, dq_p), lambda b, t: (0, 0)),        # Wo^T
            pl.BlockSpec((1, dq_p), lambda b, t: (0, 0)),              # bo
        ],
        out_specs=pl.BlockSpec((1, t_tile, dq_p), lambda b, t: (b, t, 0)),
        scratch_shapes=[
            pltpu.VMEM((l_p, inner_p), jnp.bfloat16),      # K (per batch elem)
            pltpu.VMEM((l_p, inner_p), jnp.bfloat16),      # V (per batch elem)
            pltpu.VMEM((t_tile, inner_p), jnp.bfloat16),   # per-head outputs
        ],
        compiler_params=pltpu.CompilerParams(
            dimension_semantics=("parallel", "arbitrary"),
            vmem_limit_bytes=40 * 1024 * 1024),
    )(x_p, ctx_p, prepared["wq"], prepared["wk"], prepared["wv"],
      prepared["wo"], prepared["bo"])

    return out_p[:, :T, :Dq]


# ---------------------------------------------------------------------------
# Pure-JAX f32 reference (mirrors the PyTorch module).
# ---------------------------------------------------------------------------
def cross_attention_reference(x, context, params, *, heads=8, dim_head=64):
    scale = float(dim_head) ** -0.5
    q = x @ params["wq"].T
    k = context @ params["wk"].T
    v = context @ params["wv"].T
    B, T, _ = q.shape
    L = k.shape[1]

    def split(a, n):
        return a.reshape(a.shape[0], n, heads, dim_head).transpose(0, 2, 1, 3)

    q, k, v = split(q, T), split(k, L), split(v, L)
    sim = jnp.einsum("bhid,bhjd->bhij", q, k) * scale
    attn = jax.nn.softmax(sim, axis=-1)
    out = jnp.einsum("bhij,bhjd->bhid", attn, v)
    out = out.transpose(0, 2, 1, 3).reshape(B, T, heads * dim_head)
    return out @ params["wo"].T + params["bo"]


# ---------------------------------------------------------------------------
if __name__ == "__main__":
    B, T, L = 2, 16, 8
    query_dim, context_dim = 64, 32
    heads, dim_head = 8, 64
    inner = heads * dim_head

    key = jax.random.PRNGKey(0)
    kx, kc, k1, k2, k3, k4, k5 = jax.random.split(key, 7)
    x = jax.random.normal(kx, (B, T, query_dim), jnp.float32)
    context = jax.random.normal(kc, (B, L, context_dim), jnp.float32)

    s = 0.05
    params = dict(
        wq=s * jax.random.normal(k1, (inner, query_dim), jnp.float32),
        wk=s * jax.random.normal(k2, (inner, context_dim), jnp.float32),
        wv=s * jax.random.normal(k3, (inner, context_dim), jnp.float32),
        wo=s * jax.random.normal(k4, (query_dim, inner), jnp.float32),
        bo=s * jax.random.normal(k5, (query_dim,), jnp.float32),
    )

    prepared = prepare_params(params, heads=heads, dim_head=dim_head)
    out = cross_attention(x, context, prepared)
    out = jax.block_until_ready(out)

    assert out.shape == (B, T, query_dim), out.shape
    assert bool(jnp.all(jnp.isfinite(out)))

    # Loose-tolerance check against the f32 reference (bf16 operands +
    # approximate reciprocal make exact equality impossible by design).
    ref = cross_attention_reference(x, context, params,
                                    heads=heads, dim_head=dim_head)
    max_err = float(jnp.max(jnp.abs(out.astype(jnp.float32) - ref)))
    assert max_err < 1e-1, max_err

    print("KERNEL_OK")
</pallas_src>

<mosaic_0001>
module attributes {stable_mosaic.version = 11 : i64} {
  func.func @cross_attention_kernel(%arg0: i32, %arg1: i32, %arg2: memref<1x16x128xbf16, #tpu.memory_space<vmem>>, %arg3: memref<1x128x128xbf16, #tpu.memory_space<vmem>>, %arg4: memref<128x1024xbf16, #tpu.memory_space<vmem>>, %arg5: memref<128x1024xbf16, #tpu.memory_space<vmem>>, %arg6: memref<128x1024xbf16, #tpu.memory_space<vmem>>, %arg7: memref<1024x128xbf16, #tpu.memory_space<vmem>>, %arg8: memref<1x128xf32, #tpu.memory_space<vmem>>, %arg9: memref<1x16x128xbf16, #tpu.memory_space<vmem>>, %arg10: memref<128x1024xbf16, #tpu.memory_space<vmem>>, %arg11: memref<128x1024xbf16, #tpu.memory_space<vmem>>, %arg12: memref<16x1024xbf16, #tpu.memory_space<vmem>>) attributes {dimension_semantics = [#tpu.dimension_semantics<parallel>, #tpu.dimension_semantics<arbitrary>], iteration_bounds = array<i64: 2, 1>, scalar_prefetch = 0 : i64, scratch_operands = 3 : i64, tpu.core_type = #tpu.core_type<tc>, window_params = [{transform_indices = @transform_0, window_bounds = array<i64: 1, 16, 128>}, {transform_indices = @transform_1, window_bounds = array<i64: 1, 128, 128>}, {pipeline_mode = #tpu.pipeline_mode<synchronous>, transform_indices = @transform_2, window_bounds = array<i64: 128, 1024>}, {pipeline_mode = #tpu.pipeline_mode<synchronous>, transform_indices = @transform_3, window_bounds = array<i64: 128, 1024>}, {pipeline_mode = #tpu.pipeline_mode<synchronous>, transform_indices = @transform_4, window_bounds = array<i64: 128, 1024>}, {pipeline_mode = #tpu.pipeline_mode<synchronous>, transform_indices = @transform_5, window_bounds = array<i64: 1024, 128>}, {pipeline_mode = #tpu.pipeline_mode<synchronous>, transform_indices = @transform_6, window_bounds = array<i64: 1, 128>}, {transform_indices = @transform_7, window_bounds = array<i64: 1, 16, 128>}]} {
    %c0_i32 = arith.constant 0 : i32
    %0 = arith.cmpi eq, %arg1, %c0_i32 : i32
    %1 = arith.extui %0 : i1 to i32
    %c0_i32_0 = arith.constant 0 : i32
    %2 = arith.cmpi ne, %1, %c0_i32_0 : i32
    scf.if %2 {
      %c0_90 = arith.constant 0 : index
      %c0_91 = arith.constant 0 : index
      %c0_92 = arith.constant 0 : index
      %176 = vector.load %arg3[%c0_90, %c0_91, %c0_92] : memref<1x128x128xbf16, #tpu.memory_space<vmem>>, vector<1x128x128xbf16>
      %177 = vector.shape_cast %176 : vector<1x128x128xbf16> to vector<128x128xbf16>
      %c0_93 = arith.constant 0 : index
      %c0_94 = arith.constant 0 : index
      %178 = vector.load %arg5[%c0_93, %c0_94] : memref<128x1024xbf16, #tpu.memory_space<vmem>>, vector<128x1024xbf16>
      %cst_95 = arith.constant dense<0.000000e+00> : vector<128x1024xf32>
      %179 = tpu.matmul %177, %178, %cst_95 {dimension_numbers = #tpu.dot_dimension_numbers<[1], [0], [0], [1], [0, 0, 1, 1], [], []>} : vector<128x128xbf16>, vector<128x1024xbf16>, vector<128x1024xf32> -> vector<128x1024xf32>
      %180 = arith.truncf %179 : vector<128x1024xf32> to vector<128x1024xbf16>
      %c0_96 = arith.constant 0 : index
      %c0_97 = arith.constant 0 : index
      %181 = vector.load %arg10[%c0_96, %c0_97] : memref<128x1024xbf16, #tpu.memory_space<vmem>>, vector<128x1024xbf16>
      tpu.vector_store %arg10[%c0_96, %c0_97], %180 {strides = array<i32>} : memref<128x1024xbf16, #tpu.memory_space<vmem>>, vector<128x1024xbf16>,
      %c0_98 = arith.constant 0 : index
      %c0_99 = arith.constant 0 : index
      %182 = vector.load %arg6[%c0_98, %c0_99] : memref<128x1024xbf16, #tpu.memory_space<vmem>>, vector<128x1024xbf16>
      %cst_100 = arith.constant dense<0.000000e+00> : vector<128x1024xf32>
      %183 = tpu.matmul %177, %182, %cst_100 {dimension_numbers = #tpu.dot_dimension_numbers<[1], [0], [0], [1], [0, 0, 1, 1], [], []>} : vector<128x128xbf16>, vector<128x1024xbf16>, vector<128x1024xf32> -> vector<128x1024xf32>
      %184 = arith.truncf %183 : vector<128x1024xf32> to vector<128x1024xbf16>
      %c0_101 = arith.constant 0 : index
      %c0_102 = arith.constant 0 : index
      %185 = vector.load %arg11[%c0_101, %c0_102] : memref<128x1024xbf16, #tpu.memory_space<vmem>>, vector<128x1024xbf16>
      tpu.vector_store %arg11[%c0_101, %c0_102], %184 {strides = array<i32>} : memref<128x1024xbf16, #tpu.memory_space<vmem>>, vector<128x1024xbf16>,
    } else {
    }
    %c0 = arith.constant 0 : index
    %c0_1 = arith.constant 0 : index
    %c0_2 = arith.constant 0 : index
    %3 = vector.load %arg2[%c0, %c0_1, %c0_2] : memref<1x16x128xbf16, #tpu.memory_space<vmem>>, vector<1x16x128xbf16>
    %4 = vector.shape_cast %3 : vector<1x16x128xbf16> to vector<16x128xbf16>
    %c0_3 = arith.constant 0 : index
    %c0_4 = arith.constant 0 : index
    %5 = vector.load %arg4[%c0_3, %c0_4] : memref<128x1024xbf16, #tpu.memory_space<vmem>>, vector<128x1024xbf16>
    %cst = arith.constant dense<0.000000e+00> : vector<16x1024xf32>
    %6 = tpu.matmul %4, %5, %cst {dimension_numbers = #tpu.dot_dimension_numbers<[1], [0], [0], [1], [0, 0, 1, 1], [], []>} : vector<16x128xbf16>, vector<128x1024xbf16>, vector<16x1024xf32> -> vector<16x1024xf32>
    %7 = arith.truncf %6 : vector<16x1024xf32> to vector<16x1024xbf16>
    %8 = tpu.iota {dimensions = array<i32: 1>} : vector<16x128xi32>
    %c8_i32 = arith.constant 8 : i32
    %9 = vector.broadcast %c8_i32 : i32 to vector<16x128xi32>
    %10 = arith.cmpi slt, %8, %9 : vector<16x128xi32>
    %cst_5 = arith.constant 0.000000e+00 : f32
    %cst_6 = arith.constant -1.000000e+30 : f32
    %11 = vector.broadcast %cst_5 : f32 to vector<16x128xf32>
    %12 = vector.broadcast %cst_6 : f32 to vector<16x128xf32>
    %13 = arith.select %10, %11, %12 : vector<16x128xi1>, vector<16x128xf32>
    %14 = vector.extract_strided_slice %7 {offsets = [0, 0], sizes = [16, 128], strides = [1, 1]} : vector<16x1024xbf16> to vector<16x128xbf16>
    %c0_7 = arith.constant 0 : index
    %c0_8 = arith.constant 0 : index
    %15 = vector.load %arg10[%c0_7, %c0_8] : memref<128x1024xbf16, #tpu.memory_space<vmem>>, vector<128x128xbf16>
    %c0_9 = arith.constant 0 : index
    %c0_10 = arith.constant 0 : index
    %16 = vector.load %arg11[%c0_9, %c0_10] : memref<128x1024xbf16, #tpu.memory_space<vmem>>, vector<128x128xbf16>
    %cst_11 = arith.constant dense<0.000000e+00> : vector<16x128xf32>
    %17 = tpu.matmul %14, %15, %cst_11 {dimension_numbers = #tpu.dot_dimension_numbers<[1], [1], [0], [0], [0, 0, 1, 0], [], []>} : vector<16x128xbf16>, vector<128x128xbf16>, vector<16x128xf32> -> vector<16x128xf32>
    %18 = arith.addf %17, %13 : vector<16x128xf32>
    %cst_12 = arith.constant dense<0xFF800000> : vector<16xf32>
    %19 = vector.multi_reduction <maximumf>, %18, %cst_12 [1] : vector<16x128xf32> to vector<16xf32>
    %20 = vector.shape_cast %19 : vector<16xf32> to vector<16x1xf32>
    %21 = vector.broadcast %20 : vector<16x1xf32> to vector<16x128xf32>
    %22 = arith.subf %18, %21 : vector<16x128xf32>
    %23 = math.exp %22 : vector<16x128xf32>
    %cst_13 = arith.constant dense<0.000000e+00> : vector<16xf32>
    %24 = vector.multi_reduction <add>, %23, %cst_13 [1] : vector<16x128xf32> to vector<16xf32>
    %25 = vector.shape_cast %24 : vector<16xf32> to vector<16x1xf32>
    %26 = tpu.reciprocal %25 {approx = true} : vector<16x1xf32> -> vector<16x1xf32>
    %27 = vector.broadcast %26 : vector<16x1xf32> to vector<16x128xf32>
    %28 = arith.mulf %23, %27 : vector<16x128xf32>
    %29 = arith.truncf %28 : vector<16x128xf32> to vector<16x128xbf16>
    %cst_14 = arith.constant dense<0.000000e+00> : vector<16x128xf32>
    %30 = tpu.matmul %29, %16, %cst_14 {dimension_numbers = #tpu.dot_dimension_numbers<[1], [0], [0], [1], [0, 0, 1, 1], [], []>} : vector<16x128xbf16>, vector<128x128xbf16>, vector<16x128xf32> -> vector<16x128xf32>
    %31 = arith.truncf %30 : vector<16x128xf32> to vector<16x128xbf16>
    %c0_15 = arith.constant 0 : index
    %c0_16 = arith.constant 0 : index
    %32 = vector.load %arg12[%c0_15, %c0_16] : memref<16x1024xbf16, #tpu.memory_space<vmem>>, vector<16x128xbf16>
    tpu.vector_store %arg12[%c0_15, %c0_16], %31 {strides = array<i32>} : memref<16x1024xbf16, #tpu.memory_space<vmem>>, vector<16x128xbf16>,
    %33 = vector.extract_strided_slice %7 {offsets = [0, 128], sizes = [16, 128], strides = [1, 1]} : vector<16x1024xbf16> to vector<16x128xbf16>
    %c0_17 = arith.constant 0 : index
    %c128 = arith.constant 128 : index
    %34 = vector.load %arg10[%c0_17, %c128] : memref<128x1024xbf16, #tpu.memory_space<vmem>>, vector<128x128xbf16>
    %c0_18 = arith.constant 0 : index
    %c128_19 = arith.constant 128 : index
    %35 = vector.load %arg11[%c0_18, %c128_19] : memref<128x1024xbf16, #tpu.memory_space<vmem>>, vector<128x128xbf16>
    %cst_20 = arith.constant dense<0.000000e+00> : vector<16x128xf32>
    %36 = tpu.matmul %33, %34, %cst_20 {dimension_numbers = #tpu.dot_dimension_numbers<[1], [1], [0], [0], [0, 0, 1, 0], [], []>} : vector<16x128xbf16>, vector<128x128xbf16>, vector<16x128xf32> -> vector<16x128xf32>
    %37 = arith.addf %36, %13 : vector<16x128xf32>
    %cst_21 = arith.constant dense<0xFF800000> : vector<16xf32>
    %38 = vector.multi_reduction <maximumf>, %37, %cst_21 [1] : vector<16x128xf32> to vector<16xf32>
    %39 = vector.shape_cast %38 : vector<16xf32> to vector<16x1xf32>
    %40 = vector.broadcast %39 : vector<16x1xf32> to vector<16x128xf32>
    %41 = arith.subf %37, %40 : vector<16x128xf32>
    %42 = math.exp %41 : vector<16x128xf32>
    %cst_22 = arith.constant dense<0.000000e+00> : vector<16xf32>
    %43 = vector.multi_reduction <add>, %42, %cst_22 [1] : vector<16x128xf32> to vector<16xf32>
    %44 = vector.shape_cast %43 : vector<16xf32> to vector<16x1xf32>
    %45 = tpu.reciprocal %44 {approx = true} : vector<16x1xf32> -> vector<16x1xf32>
    %46 = vector.broadcast %45 : vector<16x1xf32> to vector<16x128xf32>
    %47 = arith.mulf %42, %46 : vector<16x128xf32>
    %48 = arith.truncf %47 : vector<16x128xf32> to vector<16x128xbf16>
    %cst_23 = arith.constant dense<0.000000e+00> : vector<16x128xf32>
    %49 = tpu.matmul %48, %35, %cst_23 {dimension_numbers = #tpu.dot_dimension_numbers<[1], [0], [0], [1], [0, 0, 1, 1], [], []>} : vector<16x128xbf16>, vector<128x128xbf16>, vector<16x128xf32> -> vector<16x128xf32>
    %50 = arith.truncf %49 : vector<16x128xf32> to vector<16x128xbf16>
    %c0_24 = arith.constant 0 : index
    %c128_25 = arith.constant 128 : index
    %51 = vector.load %arg12[%c0_24, %c128_25] : memref<16x1024xbf16, #tpu.memory_space<vmem>>, vector<16x128xbf16>
    tpu.vector_store %arg12[%c0_24, %c128_25], %50 {strides = array<i32>} : memref<16x1024xbf16, #tpu.memory_space<vmem>>, vector<16x128xbf16>,
    %52 = vector.extract_strided_slice %7 {offsets = [0, 256], sizes = [16, 128], strides = [1, 1]} : vector<16x1024xbf16> to vector<16x128xbf16>
    %c0_26 = arith.constant 0 : index
    %c256 = arith.constant 256 : index
    %53 = vector.load %arg10[%c0_26, %c256] : memref<128x1024xbf16, #tpu.memory_space<vmem>>, vector<128x128xbf16>
    %c0_27 = arith.constant 0 : index
    %c256_28 = arith.constant 256 : index
    %54 = vector.load %arg11[%c0_27, %c256_28] : memref<128x1024xbf16, #tpu.memory_space<vmem>>, vector<128x128xbf16>
    %cst_29 = arith.constant dense<0.000000e+00> : vector<16x128xf32>
    %55 = tpu.matmul %52, %53, %cst_29 {dimension_numbers = #tpu.dot_dimension_numbers<[1], [1], [0], [0], [0, 0, 1, 0], [], []>} : vector<16x128xbf16>, vector<128x128xbf16>, vector<16x128xf32> -> vector<16x128xf32>
    %56 = arith.addf %55, %13 : vector<16x128xf32>
    %cst_30 = arith.constant dense<0xFF800000> : vector<16xf32>
    %57 = vector.multi_reduction <maximumf>, %56, %cst_30 [1] : vector<16x128xf32> to vector<16xf32>
    %58 = vector.shape_cast %57 : vector<16xf32> to vector<16x1xf32>
    %59 = vector.broadcast %58 : vector<16x1xf32> to vector<16x128xf32>
    %60 = arith.subf %56, %59 : vector<16x128xf32>
    %61 = math.exp %60 : vector<16x128xf32>
    %cst_31 = arith.constant dense<0.000000e+00> : vector<16xf32>
    %62 = vector.multi_reduction <add>, %61, %cst_31 [1] : vector<16x128xf32> to vector<16xf32>
    %63 = vector.shape_cast %62 : vector<16xf32> to vector<16x1xf32>
    %64 = tpu.reciprocal %63 {approx = true} : vector<16x1xf32> -> vector<16x1xf32>
    %65 = vector.broadcast %64 : vector<16x1xf32> to vector<16x128xf32>
    %66 = arith.mulf %61, %65 : vector<16x128xf32>
    %67 = arith.truncf %66 : vector<16x128xf32> to vector<16x128xbf16>
    %cst_32 = arith.constant dense<0.000000e+00> : vector<16x128xf32>
    %68 = tpu.matmul %67, %54, %cst_32 {dimension_numbers = #tpu.dot_dimension_numbers<[1], [0], [0], [1], [0, 0, 1, 1], [], []>} : vector<16x128xbf16>, vector<128x128xbf16>, vector<16x128xf32> -> vector<16x128xf32>
    %69 = arith.truncf %68 : vector<16x128xf32> to vector<16x128xbf16>
    %c0_33 = arith.constant 0 : index
    %c256_34 = arith.constant 256 : index
    %70 = vector.load %arg12[%c0_33, %c256_34] : memref<16x1024xbf16, #tpu.memory_space<vmem>>, vector<16x128xbf16>
    tpu.vector_store %arg12[%c0_33, %c256_34], %69 {strides = array<i32>} : memref<16x1024xbf16, #tpu.memory_space<vmem>>, vector<16x128xbf16>,
    %71 = vector.extract_strided_slice %7 {offsets = [0, 384], sizes = [16, 128], strides = [1, 1]} : vector<16x1024xbf16> to vector<16x128xbf16>
    %c0_35 = arith.constant 0 : index
    %c384 = arith.constant 384 : index
    %72 = vector.load %arg10[%c0_35, %c384] : memref<128x1024xbf16, #tpu.memory_space<vmem>>, vector<128x128xbf16>
    %c0_36 = arith.constant 0 : index
    %c384_37 = arith.constant 384 : index
    %73 = vector.load %arg11[%c0_36, %c384_37] : memref<128x1024xbf16, #tpu.memory_space<vmem>>, vector<128x128xbf16>
    %cst_38 = arith.constant dense<0.000000e+00> : vector<16x128xf32>
    %74 = tpu.matmul %71, %72, %cst_38 {dimension_numbers = #tpu.dot_dimension_numbers<[1], [1], [0], [0], [0, 0, 1, 0], [], []>} : vector<16x128xbf16>, vector<128x128xbf16>, vector<16x128xf32> -> vector<16x128xf32>
    %75 = arith.addf %74, %13 : vector<16x128xf32>
    %cst_39 = arith.constant dense<0xFF800000> : vector<16xf32>
    %76 = vector.multi_reduction <maximumf>, %75, %cst_39 [1] : vector<16x128xf32> to vector<16xf32>
    %77 = vector.shape_cast %76 : vector<16xf32> to vector<16x1xf32>
    %78 = vector.broadcast %77 : vector<16x1xf32> to vector<16x128xf32>
    %79 = arith.subf %75, %78 : vector<16x128xf32>
    %80 = math.exp %79 : vector<16x128xf32>
    %cst_40 = arith.constant dense<0.000000e+00> : vector<16xf32>
    %81 = vector.multi_reduction <add>, %80, %cst_40 [1] : vector<16x128xf32> to vector<16xf32>
    %82 = vector.shape_cast %81 : vector<16xf32> to vector<16x1xf32>
    %83 = tpu.reciprocal %82 {approx = true} : vector<16x1xf32> -> vector<16x1xf32>
    %84 = vector.broadcast %83 : vector<16x1xf32> to vector<16x128xf32>
    %85 = arith.mulf %80, %84 : vector<16x128xf32>
    %86 = arith.truncf %85 : vector<16x128xf32> to vector<16x128xbf16>
    %cst_41 = arith.constant dense<0.000000e+00> : vector<16x128xf32>
    %87 = tpu.matmul %86, %73, %cst_41 {dimension_numbers = #tpu.dot_dimension_numbers<[1], [0], [0], [1], [0, 0, 1, 1], [], []>} : vector<16x128xbf16>, vector<128x128xbf16>, vector<16x128xf32> -> vector<16x128xf32>
    %88 = arith.truncf %87 : vector<16x128xf32> to vector<16x128xbf16>
    %c0_42 = arith.constant 0 : index
    %c384_43 = arith.constant 384 : index
    %89 = vector.load %arg12[%c0_42, %c384_43] : memref<16x1024xbf16, #tpu.memory_space<vmem>>, vector<16x128xbf16>
    tpu.vector_store %arg12[%c0_42, %c384_43], %88 {strides = array<i32>} : memref<16x1024xbf16, #tpu.memory_space<vmem>>, vector<16x128xbf16>,
    %90 = vector.extract_strided_slice %7 {offsets = [0, 512], sizes = [16, 128], strides = [1, 1]} : vector<16x1024xbf16> to vector<16x128xbf16>
    %c0_44 = arith.constant 0 : index
    %c512 = arith.constant 512 : index
    %91 = vector.load %arg10[%c0_44, %c512] : memref<128x1024xbf16, #tpu.memory_space<vmem>>, vector<128x128xbf16>
    %c0_45 = arith.constant 0 : index
    %c512_46 = arith.constant 512 : index
    %92 = vector.load %arg11[%c0_45, %c512_46] : memref<128x1024xbf16, #tpu.memory_space<vmem>>, vector<128x128xbf16>
    %cst_47 = arith.constant dense<0.000000e+00> : vector<16x128xf32>
    %93 = tpu.matmul %90, %91, %cst_47 {dimension_numbers = #tpu.dot_dimension_numbers<[1], [1], [0], [0], [0, 0, 1, 0], [], []>} : vector<16x128xbf16>, vector<128x128xbf16>, vector<16x128xf32> -> vector<16x128xf32>
    %94 = arith.addf %93, %13 : vector<16x128xf32>
    %cst_48 = arith.constant dense<0xFF800000> : vector<16xf32>
    %95 = vector.multi_reduction <maximumf>, %94, %cst_48 [1] : vector<16x128xf32> to vector<16xf32>
    %96 = vector.shape_cast %95 : vector<16xf32> to vector<16x1xf32>
    %97 = vector.broadcast %96 : vector<16x1xf32> to vector<16x128xf32>
    %98 = arith.subf %94, %97 : vector<16x128xf32>
    %99 = math.exp %98 : vector<16x128xf32>
    %cst_49 = arith.constant dense<0.000000e+00> : vector<16xf32>
    %100 = vector.multi_reduction <add>, %99, %cst_49 [1] : vector<16x128xf32> to vector<16xf32>
    %101 = vector.shape_cast %100 : vector<16xf32> to vector<16x1xf32>
    %102 = tpu.reciprocal %101 {approx = true} : vector<16x1xf32> -> vector<16x1xf32>
    %103 = vector.broadcast %102 : vector<16x1xf32> to vector<16x128xf32>
    %104 = arith.mulf %99, %103 : vector<16x128xf32>
    %105 = arith.truncf %104 : vector<16x128xf32> to vector<16x128xbf16>
    %cst_50 = arith.constant dense<0.000000e+00> : vector<16x128xf32>
    %106 = tpu.matmul %105, %92, %cst_50 {dimension_numbers = #tpu.dot_dimension_numbers<[1], [0], [0], [1], [0, 0, 1, 1], [], []>} : vector<16x128xbf16>, vector<128x128xbf16>, vector<16x128xf32> -> vector<16x128xf32>
    %107 = arith.truncf %106 : vector<16x128xf32> to vector<16x128xbf16>
    %c0_51 = arith.constant 0 : index
    %c512_52 = arith.constant 512 : index
    %108 = vector.load %arg12[%c0_51, %c512_52] : memref<16x1024xbf16, #tpu.memory_space<vmem>>, vector<16x128xbf16>
    tpu.vector_store %arg12[%c0_51, %c512_52], %107 {strides = array<i32>} : memref<16x1024xbf16, #tpu.memory_space<vmem>>, vector<16x128xbf16>,
    %109 = vector.extract_strided_slice %7 {offsets = [0, 640], sizes = [16, 128], strides = [1, 1]} : vector<16x1024xbf16> to vector<16x128xbf16>
    %c0_53 = arith.constant 0 : index
    %c640 = arith.constant 640 : index
    %110 = vector.load %arg10[%c0_53, %c640] : memref<128x1024xbf16, #tpu.memory_space<vmem>>, vector<128x128xbf16>
    %c0_54 = arith.constant 0 : index
    %c640_55 = arith.constant 640 : index
    %111 = vector.load %arg11[%c0_54, %c640_55] : memref<128x1024xbf16, #tpu.memory_space<vmem>>, vector<128x128xbf16>
    %cst_56 = arith.constant dense<0.000000e+00> : vector<16x128xf32>
    %112 = tpu.matmul %109, %110, %cst_56 {dimension_numbers = #tpu.dot_dimension_numbers<[1], [1], [0], [0], [0, 0, 1, 0], [], []>} : vector<16x128xbf16>, vector<128x128xbf16>, vector<16x128xf32> -> vector<16x128xf32>
    %113 = arith.addf %112, %13 : vector<16x128xf32>
    %cst_57 = arith.constant dense<0xFF800000> : vector<16xf32>
    %114 = vector.multi_reduction <maximumf>, %113, %cst_57 [1] : vector<16x128xf32> to vector<16xf32>
    %115 = vector.shape_cast %114 : vector<16xf32> to vector<16x1xf32>
    %116 = vector.broadcast %115 : vector<16x1xf32> to vector<16x128xf32>
    %117 = arith.subf %113, %116 : vector<16x128xf32>
    %118 = math.exp %117 : vector<16x128xf32>
    %cst_58 = arith.constant dense<0.000000e+00> : vector<16xf32>
    %119 = vector.multi_reduction <add>, %118, %cst_58 [1] : vector<16x128xf32> to vector<16xf32>
    %120 = vector.shape_cast %119 : vector<16xf32> to vector<16x1xf32>
    %121 = tpu.reciprocal %120 {approx = true} : vector<16x1xf32> -> vector<16x1xf32>
    %122 = vector.broadcast %121 : vector<16x1xf32> to vector<16x128xf32>
    %123 = arith.mulf %118, %122 : vector<16x128xf32>
    %124 = arith.truncf %123 : vector<16x128xf32> to vector<16x128xbf16>
    %cst_59 = arith.constant dense<0.000000e+00> : vector<16x128xf32>
    %125 = tpu.matmul %124, %111, %cst_59 {dimension_numbers = #tpu.dot_dimension_numbers<[1], [0], [0], [1], [0, 0, 1, 1], [], []>} : vector<16x128xbf16>, vector<128x128xbf16>, vector<16x128xf32> -> vector<16x128xf32>
    %126 = arith.truncf %125 : vector<16x128xf32> to vector<16x128xbf16>
    %c0_60 = arith.constant 0 : index
    %c640_61 = arith.constant 640 : index
    %127 = vector.load %arg12[%c0_60, %c640_61] : memref<16x1024xbf16, #tpu.memory_space<vmem>>, vector<16x128xbf16>
    tpu.vector_store %arg12[%c0_60, %c640_61], %126 {strides = array<i32>} : memref<16x1024xbf16, #tpu.memory_space<vmem>>, vector<16x128xbf16>,
    %128 = vector.extract_strided_slice %7 {offsets = [0, 768], sizes = [16, 128], strides = [1, 1]} : vector<16x1024xbf16> to vector<16x128xbf16>
    %c0_62 = arith.constant 0 : index
    %c768 = arith.constant 768 : index
    %129 = vector.load %arg10[%c0_62, %c768] : memref<128x1024xbf16, #tpu.memory_space<vmem>>, vector<128x128xbf16>
    %c0_63 = arith.constant 0 : index
    %c768_64 = arith.constant 768 : index
    %130 = vector.load %arg11[%c0_63, %c768_64] : memref<128x1024xbf16, #tpu.memory_space<vmem>>, vector<128x128xbf16>
    %cst_65 = arith.constant dense<0.000000e+00> : vector<16x128xf32>
    %131 = tpu.matmul %128, %129, %cst_65 {dimension_numbers = #tpu.dot_dimension_numbers<[1], [1], [0], [0], [0, 0, 1, 0], [], []>} : vector<16x128xbf16>, vector<128x128xbf16>, vector<16x128xf32> -> vector<16x128xf32>
    %132 = arith.addf %131, %13 : vector<16x128xf32>
    %cst_66 = arith.constant dense<0xFF800000> : vector<16xf32>
    %133 = vector.multi_reduction <maximumf>, %132, %cst_66 [1] : vector<16x128xf32> to vector<16xf32>
    %134 = vector.shape_cast %133 : vector<16xf32> to vector<16x1xf32>
    %135 = vector.broadcast %134 : vector<16x1xf32> to vector<16x128xf32>
    %136 = arith.subf %132, %135 : vector<16x128xf32>
    %137 = math.exp %136 : vector<16x128xf32>
    %cst_67 = arith.constant dense<0.000000e+00> : vector<16xf32>
    %138 = vector.multi_reduction <add>, %137, %cst_67 [1] : vector<16x128xf32> to vector<16xf32>
    %139 = vector.shape_cast %138 : vector<16xf32> to vector<16x1xf32>
    %140 = tpu.reciprocal %139 {approx = true} : vector<16x1xf32> -> vector<16x1xf32>
    %141 = vector.broadcast %140 : vector<16x1xf32> to vector<16x128xf32>
    %142 = arith.mulf %137, %141 : vector<16x128xf32>
    %143 = arith.truncf %142 : vector<16x128xf32> to vector<16x128xbf16>
    %cst_68 = arith.constant dense<0.000000e+00> : vector<16x128xf32>
    %144 = tpu.matmul %143, %130, %cst_68 {dimension_numbers = #tpu.dot_dimension_numbers<[1], [0], [0], [1], [0, 0, 1, 1], [], []>} : vector<16x128xbf16>, vector<128x128xbf16>, vector<16x128xf32> -> vector<16x128xf32>
    %145 = arith.truncf %144 : vector<16x128xf32> to vector<16x128xbf16>
    %c0_69 = arith.constant 0 : index
    %c768_70 = arith.constant 768 : index
    %146 = vector.load %arg12[%c0_69, %c768_70] : memref<16x1024xbf16, #tpu.memory_space<vmem>>, vector<16x128xbf16>
    tpu.vector_store %arg12[%c0_69, %c768_70], %145 {strides = array<i32>} : memref<16x1024xbf16, #tpu.memory_space<vmem>>, vector<16x128xbf16>,
    %147 = vector.extract_strided_slice %7 {offsets = [0, 896], sizes = [16, 128], strides = [1, 1]} : vector<16x1024xbf16> to vector<16x128xbf16>
    %c0_71 = arith.constant 0 : index
    %c896 = arith.constant 896 : index
    %148 = vector.load %arg10[%c0_71, %c896] : memref<128x1024xbf16, #tpu.memory_space<vmem>>, vector<128x128xbf16>
    %c0_72 = arith.constant 0 : index
    %c896_73 = arith.constant 896 : index
    %149 = vector.load %arg11[%c0_72, %c896_73] : memref<128x1024xbf16, #tpu.memory_space<vmem>>, vector<128x128xbf16>
    %cst_74 = arith.constant dense<0.000000e+00> : vector<16x128xf32>
    %150 = tpu.matmul %147, %148, %cst_74 {dimension_numbers = #tpu.dot_dimension_numbers<[1], [1], [0], [0], [0, 0, 1, 0], [], []>} : vector<16x128xbf16>, vector<128x128xbf16>, vector<16x128xf32> -> vector<16x128xf32>
    %151 = arith.addf %150, %13 : vector<16x128xf32>
    %cst_75 = arith.constant dense<0xFF800000> : vector<16xf32>
    %152 = vector.multi_reduction <maximumf>, %151, %cst_75 [1] : vector<16x128xf32> to vector<16xf32>
    %153 = vector.shape_cast %152 : vector<16xf32> to vector<16x1xf32>
    %154 = vector.broadcast %153 : vector<16x1xf32> to vector<16x128xf32>
    %155 = arith.subf %151, %154 : vector<16x128xf32>
    %156 = math.exp %155 : vector<16x128xf32>
    %cst_76 = arith.constant dense<0.000000e+00> : vector<16xf32>
    %157 = vector.multi_reduction <add>, %156, %cst_76 [1] : vector<16x128xf32> to vector<16xf32>
    %158 = vector.shape_cast %157 : vector<16xf32> to vector<16x1xf32>
    %159 = tpu.reciprocal %158 {approx = true} : vector<16x1xf32> -> vector<16x1xf32>
    %160 = vector.broadcast %159 : vector<16x1xf32> to vector<16x128xf32>
    %161 = arith.mulf %156, %160 : vector<16x128xf32>
    %162 = arith.truncf %161 : vector<16x128xf32> to vector<16x128xbf16>
    %cst_77 = arith.constant dense<0.000000e+00> : vector<16x128xf32>
    %163 = tpu.matmul %162, %149, %cst_77 {dimension_numbers = #tpu.dot_dimension_numbers<[1], [0], [0], [1], [0, 0, 1, 1], [], []>} : vector<16x128xbf16>, vector<128x128xbf16>, vector<16x128xf32> -> vector<16x128xf32>
    %164 = arith.truncf %163 : vector<16x128xf32> to vector<16x128xbf16>
    %c0_78 = arith.constant 0 : index
    %c896_79 = arith.constant 896 : index
    %165 = vector.load %arg12[%c0_78, %c896_79] : memref<16x1024xbf16, #tpu.memory_space<vmem>>, vector<16x128xbf16>
    tpu.vector_store %arg12[%c0_78, %c896_79], %164 {strides = array<i32>} : memref<16x1024xbf16, #tpu.memory_space<vmem>>, vector<16x128xbf16>,
    %c0_80 = arith.constant 0 : index
    %c0_81 = arith.constant 0 : index
    %166 = vector.load %arg12[%c0_80, %c0_81] : memref<16x1024xbf16, #tpu.memory_space<vmem>>, vector<16x1024xbf16>
    %c0_82 = arith.constant 0 : index
    %c0_83 = arith.constant 0 : index
    %167 = vector.load %arg7[%c0_82, %c0_83] : memref<1024x128xbf16, #tpu.memory_space<vmem>>, vector<1024x128xbf16>
    %cst_84 = arith.constant dense<0.000000e+00> : vector<16x128xf32>
    %168 = tpu.matmul %166, %167, %cst_84 {dimension_numbers = #tpu.dot_dimension_numbers<[1], [0], [0], [1], [0, 0, 1, 1], [], []>} : vector<16x1024xbf16>, vector<1024x128xbf16>, vector<16x128xf32> -> vector<16x128xf32>
    %c0_85 = arith.constant 0 : index
    %c0_86 = arith.constant 0 : index
    %169 = vector.load %arg8[%c0_85, %c0_86] : memref<1x128xf32, #tpu.memory_space<vmem>>, vector<1x128xf32>
    %170 = vector.broadcast %169 : vector<1x128xf32> to vector<16x128xf32>
    %171 = arith.addf %168, %170 : vector<16x128xf32>
    %172 = arith.truncf %171 : vector<16x128xf32> to vector<16x128xbf16>
    %c0_87 = arith.constant 0 : index
    %c0_88 = arith.constant 0 : index
    %c0_89 = arith.constant 0 : index
    %173 = vector.load %arg9[%c0_87, %c0_88, %c0_89] : memref<1x16x128xbf16, #tpu.memory_space<vmem>>, vector<1x16x128xbf16>
    %174 = vector.shape_cast %173 : vector<1x16x128xbf16> to vector<16x128xbf16>
    %175 = vector.shape_cast %172 : vector<16x128xbf16> to vector<1x16x128xbf16>
    tpu.vector_store %arg9[%c0_87, %c0_88, %c0_89], %175 {strides = array<i32>} : memref<1x16x128xbf16, #tpu.memory_space<vmem>>, vector<1x16x128xbf16>,
    return
  }
  func.func @transform_0(%arg0: i32, %arg1: i32) -> (i32, i32, i32) {
    %c0_i32 = arith.constant 0 : i32
    %c0_i32_0 = arith.constant 0 : i32
    return %arg0, %arg1, %c0_i32 : i32, i32, i32
  }
  func.func @transform_1(%arg0: i32, %arg1: i32) -> (i32, i32, i32) {
    %c0_i32 = arith.constant 0 : i32
    %c0_i32_0 = arith.constant 0 : i32
    %c0_i32_1 = arith.constant 0 : i32
    return %arg0, %c0_i32, %c0_i32_0 : i32, i32, i32
  }
  func.func @transform_2(%arg0: i32, %arg1: i32) -> (i32, i32) {
    %c0_i32 = arith.constant 0 : i32
    %c0_i32_0 = arith.constant 0 : i32
    %c0_i32_1 = arith.constant 0 : i32
    return %c0_i32, %c0_i32_0 : i32, i32
  }
  func.func @transform_3(%arg0: i32, %arg1: i32) -> (i32, i32) {
    %c0_i32 = arith.constant 0 : i32
    %c0_i32_0 = arith.constant 0 : i32
    %c0_i32_1 = arith.constant 0 : i32
    return %c0_i32, %c0_i32_0 : i32, i32
  }
  func.func @transform_4(%arg0: i32, %arg1: i32) -> (i32, i32) {
    %c0_i32 = arith.constant 0 : i32
    %c0_i32_0 = arith.constant 0 : i32
    %c0_i32_1 = arith.constant 0 : i32
    return %c0_i32, %c0_i32_0 : i32, i32
  }
  func.func @transform_5(%arg0: i32, %arg1: i32) -> (i32, i32) {
    %c0_i32 = arith.constant 0 : i32
    %c0_i32_0 = arith.constant 0 : i32
    %c0_i32_1 = arith.constant 0 : i32
    return %c0_i32, %c0_i32_0 : i32, i32
  }
  func.func @transform_6(%arg0: i32, %arg1: i32) -> (i32, i32) {
    %c0_i32 = arith.constant 0 : i32
    %c0_i32_0 = arith.constant 0 : i32
    %c0_i32_1 = arith.constant 0 : i32
    return %c0_i32, %c0_i32_0 : i32, i32
  }
  func.func @transform_7(%arg0: i32, %arg1: i32) -> (i32, i32, i32) {
    %c0_i32 = arith.constant 0 : i32
    %c0_i32_0 = arith.constant 0 : i32
    return %arg0, %arg1, %c0_i32 : i32, i32, i32
  }
}

</mosaic_0001>

<bundles_post_ra>
// kernel: tpu_custom_call.1
= control target key start
LH: loop header
LB: loop body
LE: loop exit
PB: predicated region body
PF: predicated region fallthrough
CT: control target
= control target key end

     0   :  { %s8219_s0 = inlined_call_operand.hbm [shape: bf16[2,16,128], index: 0, kind: input, shape index: {}]   ;;  %s8220_s1 = inlined_call_operand.hbm [shape: bf16[2,128,128], index: 1, kind: input, shape index: {}]   ;;  %s8221_s2 = inlined_call_operand.hbm [shape: bf16[128,1024], index: 2, kind: input, shape index: {}]   ;;  %s8222_s3 = inlined_call_operand.hbm [shape: bf16[128,1024], index: 3, kind: input, shape index: {}]   ;;  %s8223_s4 = inlined_call_operand.hbm [shape: bf16[128,1024], index: 4, kind: input, shape index: {}]   ;;  %s8224_s5 = inlined_call_operand.hbm [shape: bf16[1024,128], index: 5, kind: input, shape index: {}]   ;;  %s8225_s6 = inlined_call_operand.vmem [shape: f32[1,128], index: 6, kind: input, shape index: {}]   ;;  %s8226_s7 = inlined_call_operand.hbm [shape: bf16[2,16,128], index: 7, kind: output, shape index: {}]  }
   0x1   :  { %8407 = sst [smem:[#allocation195_spill]] %s8219_s0 }
   0x2   :  { %8408 = sst [smem:[#allocation196_spill]] %s8221_s2 }
   0x3   :  { %8409 = sst [smem:[#allocation197_spill]] %s8222_s3 }
   0x4   :  { %8410 = sst [smem:[#allocation198_spill]] %s8223_s4 }
   0x5   :  { %8411 = sst [smem:[#allocation199_spill]] %s8226_s7 }
   0x6   :  { %12 = vsyncpa [#allocation6], 0 }
   0x7   :  { %14 = vsyncpa [#allocation6 + $0x1], 0 }
   0x8   :  { %15 = vsyncpa [#allocation9], 0 }
   0x9   :  { %17 = vsyncpa [#allocation9 + $0x1], 0 }
   0xa   :  { %18 = vsyncpa [#allocation12], 0 }
   0xb   :  { %19 = vsyncpa [#allocation15], 0 }
   0xc   :  { %20 = vsyncpa [#allocation7], 0 }
   0xd   :  { %22 = vsyncpa [#allocation7 + $0x1], 0  ;;  %s6250_s24 = smov 0   ;;  %s6252_s25 = smov 0  }
   0xe   :  { %s6254_s26 = smov 0   ;;  %s6256_s27 = smov 0  }
   0xf   :  { %s6258_s28 = smov 0   ;;  %s6260_s29 = smov 0  }
  0x10 LB: > { %8412 = sst [smem:[#allocation23_spill]] %s6171_s24  ;;  %s6281_s30 = sadd.s32 4294967295, %s6191_s29   ;;  %s6191_s29 = sphi %s6260_s29, %s28_s29   ;;  %s6187_s28 = sphi %s6258_s28, %s8905_s28   ;;  %s6183_s27 = sphi %s6256_s27, %s8904_s27   ;;  %s6179_s26 = sphi %s6254_s26, %s8903_s26   ;;  %s6175_s25 = sphi %s6252_s25, %s8902_s25   ;;  %s6171_s24 = sphi %s6250_s24, %s8901_s24  }
  0x11   : > { %s4806_s8 = sadd.s32 4294967294, %s6191_s29   ;;  %p62_p0 = scmp.ne.s32.totalorder %s6175_s25, %s6171_s24 }
  0x12   : > { %p8227_p1 = scmp.eq.s32.totalorder %s6281_s30, 0  ;;  %p225_p3 = scmp.eq.s32.totalorder %s4806_s8, 1 }
  0x13   : > { %p4807_p5 = scmp.ge.s32.totalorder %s6191_s29, 1  ;;  %p232_p7 = scmp.lt.s32.totalorder %s6191_s29, 3 }
  0x14   : > { %p6290_p4 = por %p8227_p1, %p62_p0  ;;  %p6295_p6 = por %p225_p3, %p62_p0 }
  0x15   : > { %p6300_p8 = pnand %p4807_p5, %p232_p7  ;;  %s6193_s12 = smov [#allocation10]  }
  0x16   : > { %s8413_s9 = scalar_select %p6290_p4, 1, 0 }
  0x17   : > { %s8414_s10 = scalar_select %p6295_p6, 1, 0 }
  0x18   : > { %s8416_s11 = scalar_select %p6300_p8, 1, 0 }
  0x19   : > { %8415 = sst [smem:[#allocation24_spill]] %s8414_s10  ;;  %s244_s13 = sshll.u32 %s6193_s12, 4  ;;  %s6304_s13 = int_to_ptr.vmem [resolvable:$true] %s244_s13 }
  0x1a   : > { %p5684_p9 = pneg %p6300_p8  ;;  %s6194_s15 = smov [#allocation11]  }
  0x1b   : > { %s257_s16 = sshll.u32 %s6194_s15, 4  ;;  %s6195_s17 = smov [#allocation13]   ;;  %s6315_s16 = int_to_ptr.vmem [resolvable:$true] %s257_s16 }
  0x1c   : > { %p6311_p11 = pnand %p5684_p9, %p8227_p1  ;;  %s6317_s18 = sshll.u32 %s6195_s17, 4  ;;  %s271_s18 = int_to_ptr.vmem [resolvable:$true] %s6317_s18 }
  0x1d   : > { %s8418_s2 = sld [smem:[#allocation196_spill]] }
  0x1e   : > { %p6327_p13 = pneg %p6311_p11 }
  0x23   : > { %s5921_s21 = scalar_lea.hbm %s8418_s2, 8192 }
  0x24   : > { %p5922_p12 = scmp.ne.s32.totalorder %s8418_s2, %s5921_s21  ;;  %p5928_p5 = scmp.lt.u32.totalorder %s5921_s21, %s8418_s2 }
  0x26   : > { %p5924_p0 = pnand %p6327_p13, %p5922_p12 }
  0x28   : > { %p5925_p3 = pneg %p5924_p0 }
  0x2a   : > { %p5930_p7 = pnand %p5928_p5, %p5925_p3 }
  0x2c   : > { %5933 = shalt.err (!%p5930_p7)
}
  0x2d   : > { %s5934_s17 = scalar_lea.vmem %s6304_s13, 8192  ;;  %p5942_p2 = scmp.lt.s32.totalorder %s6304_s13, %s6304_s13 }
  0x2e   : > { %p5935_p9 = scmp.ne.s32.totalorder %s6304_s13, %s5934_s17  ;;  %p5943_p6 = scmp.lt.s32.totalorder %s5934_s17, %s5934_s17 }
  0x30   : > { %p5937_p10 = pnand %p5935_p9, %p6327_p13  ;;  %p5944_p12 = por %p5943_p6, %p5942_p2 }
  0x32   : > { %p5938_p1 = pneg %p5937_p10 }
  0x34   : > { %p5945_p0 = pnand %p5944_p12, %p5938_p1 }
  0x36   : > { %5948 = shalt.err (!%p5945_p0)
}
  0x37   : > { %s6196_s19 = smov 512   ;;  %s6197_s20 = smov 32  }
  0x38   : > { %5687 = dma.hbm_to_vmem [thread:$0]  (!%p6311_p11), %s8418_s2, 8192, %s6304_s13, [#allocation9], %s6196_s19, %s6196_s19, %s6197_s20  }
  0x39   : > { %s8420_s3 = sld [smem:[#allocation197_spill]] }
  0x3f   : > { %s5949_s15 = scalar_lea.hbm %s8420_s3, 8192 }
  0x40   : > { %p5950_p1 = scmp.ne.s32.totalorder %s8420_s3, %s5949_s15  ;;  %p5956_p10 = scmp.lt.u32.totalorder %s5949_s15, %s8420_s3 }
  0x42   : > { %p5952_p2 = pnand %p5950_p1, %p6327_p13 }
  0x44   : > { %p5953_p6 = pneg %p5952_p2 }
  0x46   : > { %p5958_p3 = pnand %p5956_p10, %p5953_p6 }
  0x48   : > { %5961 = shalt.err (!%p5958_p3)
}
  0x49   : > { %s5962_s13 = scalar_lea.vmem %s6315_s16, 8192  ;;  %p5970_p12 = scmp.lt.s32.totalorder %s6315_s16, %s6315_s16 }
  0x4a   : > { %p5963_p5 = scmp.ne.s32.totalorder %s6315_s16, %s5962_s13  ;;  %p5971_p0 = scmp.lt.s32.totalorder %s5962_s13, %s5962_s13 }
  0x4c   : > { %p5965_p7 = pnand %p5963_p5, %p6327_p13  ;;  %p5972_p1 = por %p5971_p0, %p5970_p12 }
  0x4e   : > { %p5966_p9 = pneg %p5965_p7 }
  0x50   : > { %p5973_p2 = pnand %p5972_p1, %p5966_p9 }
  0x52   : > { %5976 = shalt.err (!%p5973_p2)
}
  0x53   : > { %5690 = dma.hbm_to_vmem [thread:$0]  (!%p6311_p11), %s8420_s3, 8192, %s6315_s16, [#allocation12], %s6196_s19, %s6196_s19, %s6197_s20  }
  0x54   : > { %s8421_s4 = sld [smem:[#allocation198_spill]] }
  0x5a   : > { %s5977_s22 = scalar_lea.hbm %s8421_s4, 8192 }
  0x5b   : > { %p5978_p6 = scmp.ne.s32.totalorder %s8421_s4, %s5977_s22  ;;  %p5984_p5 = scmp.lt.u32.totalorder %s5977_s22, %s8421_s4 }
  0x5d   : > { %p5980_p10 = pnand %p5978_p6, %p6327_p13 }
  0x5f   : > { %p5981_p3 = pneg %p5980_p10 }
  0x61   : > { %p5986_p7 = pnand %p5984_p5, %p5981_p3 }
  0x63   : > { %5989 = shalt.err (!%p5986_p7)
}
  0x64   : > { %s5990_s13 = scalar_lea.vmem %s271_s18, 8192  ;;  %p5998_p1 = scmp.lt.s32.totalorder %s271_s18, %s271_s18 }
  0x65   : > { %p5991_p9 = scmp.ne.s32.totalorder %s271_s18, %s5990_s13  ;;  %p5999_p2 = scmp.lt.s32.totalorder %s5990_s13, %s5990_s13 }
  0x67   : > { %p5993_p12 = pnand %p5991_p9, %p6327_p13  ;;  %p6000_p4 = por %p5999_p2, %p5998_p1 }
  0x69   : > { %p5994_p0 = pneg %p5993_p12 }
  0x6b   : > { %p6001_p8 = pnand %p6000_p4, %p5994_p0 }
  0x6d   : > { %6004 = shalt.err (!%p6001_p8)
}
  0x6e   : > { %5693 = dma.hbm_to_vmem [thread:$0]  (!%p6311_p11), %s8421_s4, 8192, %s271_s18, [#allocation12], %s6196_s19, %s6196_s19, %s6197_s20  }
  0x6f   : > { %s6198_s24 = smov [#allocation14]   ;;  %s6005_s23 = scalar_lea.hbm %s8224_s5, 8192 }
  0x70   : > { %s283_s10 = sshll.u32 %s6198_s24, 4  ;;  %p6006_p4 = scmp.ne.s32.totalorder %s8224_s5, %s6005_s23  ;;  %s284_s10 = int_to_ptr.vmem [resolvable:$true] %s283_s10 }
  0x71   : > { %p6012_p10 = scmp.lt.u32.totalorder %s6005_s23, %s8224_s5 }
  0x72   : > { %p6008_p8 = pnand %p6006_p4, %p6327_p13 }
  0x74   : > { %p6009_p6 = pneg %p6008_p8 }
  0x76   : > { %p6014_p3 = pnand %p6012_p10, %p6009_p6 }
  0x78   : > { %6017 = shalt.err (!%p6014_p3)
}
  0x79   : > { %s6018_s18 = scalar_lea.vmem %s284_s10, 8192  ;;  %p6026_p12 = scmp.lt.s32.totalorder %s284_s10, %s284_s10 }
  0x7a   : > { %p6019_p5 = scmp.ne.s32.totalorder %s284_s10, %s6018_s18  ;;  %p6027_p0 = scmp.lt.s32.totalorder %s6018_s18, %s6018_s18 }
  0x7c   : > { %p6021_p7 = pnand %p6019_p5, %p6327_p13  ;;  %p6028_p1 = por %p6027_p0, %p6026_p12 }
  0x7e   : > { %p6022_p9 = pneg %p6021_p7 }
  0x80   : > { %p6029_p2 = pnand %p6028_p1, %p6022_p9 }
  0x82   : > { %6032 = shalt.err (!%p6029_p2)
}
  0x83   : > { %s8233_s19 = smov 64   ;;  %s6200_s8 = smov 4  }
  0x84   : > { %5696 = dma.hbm_to_vmem [thread:$0]  (!%p6311_p11), %s8224_s5, 8192, %s284_s10, [#allocation15], %s8233_s19, %s8233_s19, %s6200_s8  }
  0x85   : > { %s40_s7 = sadd.s32 1, %s6187_s28  ;;  %s49_s24 = sadd.s32 1, %s6179_s26 }
  0x86   : > { %p42_p13 = scmp.ge.s32.totalorder %s40_s7, 2  ;;  %p56_p4 = scmp.ne.s32.totalorder %s6179_s26, %s6175_s25 }
  0x87   : > { %p57_p8 = scmp.eq.s32.totalorder %s6191_s29, 0  ;;  %p5712_p6 = scmp.lt.s32.totalorder %s6191_s29, 2 }
  0x88   : > { %s8907_s7 = smov (%p42_p13, %s40_s7), 0  ;;  %p8422_p3 = scmp.eq.s32.totalorder %s6281_s30, 1 }
  0x89   : > { %p58_p10 = por %p57_p8, %p56_p4  ;;  %s44_s21 = ssub.s32 %s6187_s28, %s8907_s7 }
  0x8a   : > { %p6430_p5 = por %p8422_p3, %p56_p4  ;;  %s6437_s22 = sand.u32 1, %s6179_s26  }
  0x8b   : > { %p47_p11 = scmp.eq.s32.totalorder %s44_s21, 0  ;;  %s4813_s10 = sshll.u32 %s6437_s22, 3 }
  0x8c   : > { %s5100_s23 = sshll.u32 %s6187_s28, 7  ;;  %s8424_s0 = sld [smem:[#allocation195_spill]] }
  0x8d   : > { %s6442_s12 = scalar_select %p47_p11, %s6179_s26, %s49_s24  }
  0x8e   : > { %s304_s18 = scalar_lea.vmem [#allocation5], %s4813_s10  ;;  %p6451_p7 = pnand %p5712_p6, %p58_p10 }
  0x8f   : > { %s313_s20 = sshll.u32 %s304_s18, 4  ;;  %s301_s21 = scalar_lea.sflag [#allocation6], %s6437_s22  ;;  %s6455_s20 = int_to_ptr.vmem [resolvable:$true] %s313_s20 }
  0x90   : > { %p6035_p12 = pneg %p6451_p7 }
  0x92   : > { %s6447_s13 = scalar_lea.hbm %s8424_s0, %s5100_s23  ;;  %s6038_s17 = scalar_lea.hbm %s8424_s0, 256 }
  0x93   : > { %s6033_s15 = scalar_lea.hbm %s6447_s13, 128  ;;  %p6039_p2 = scmp.lt.u32.totalorder %s6447_s13, %s8424_s0 }
  0x94   : > { %p6034_p9 = scmp.ne.s32.totalorder %s6447_s13, %s6033_s15  ;;  %p6040_p13 = scmp.lt.u32.totalorder %s6038_s17, %s6033_s15 }
  0x95   : > { %p6042_p8 = scmp.lt.u32.totalorder %s6033_s15, %s6447_s13 }
  0x96   : > { %p6036_p0 = pnand %p6035_p12, %p6034_p9  ;;  %p6041_p4 = por %p6040_p13, %p6039_p2 }
  0x98   : > { %p6037_p1 = pneg %p6036_p0  ;;  %p6043_p6 = por %p6042_p8, %p6041_p4 }
  0x9a   : > { %p6044_p10 = pnand %p6043_p6, %p6037_p1 }
  0x9c   : > { %6047 = shalt.err (!%p6044_p10)
}
  0x9d   : > { %s6048_s24 = scalar_lea.vmem %s6455_s20, 128  ;;  %s6201_s10 = smov [#allocation5]  }
  0x9e   : > { %p6049_p3 = scmp.ne.s32.totalorder %s6455_s20, %s6048_s24  ;;  %s6053_s23 = sshll.u32 %s6201_s10, 4  ;;  %s6054_s23 = int_to_ptr.vmem [resolvable:$false] %s6053_s23 }
  0x9f   : > { %s6055_s19 = scalar_lea.vmem %s6054_s23, 256  ;;  %p6056_p0 = scmp.lt.s32.totalorder %s6455_s20, %s6054_s23 }
  0xa0   : > { %p6051_p11 = pnand %p6049_p3, %p6035_p12  ;;  %p6057_p2 = scmp.lt.s32.totalorder %s6055_s19, %s6048_s24 }
  0xa2   : > { %p6052_p9 = pneg %p6051_p11  ;;  %p6058_p13 = por %p6057_p2, %p6056_p0 }
  0xa4   : > { %p6059_p4 = pnand %p6058_p13, %p6052_p9 }
  0xa6   : > { %6062 = shalt.err (!%p6059_p4)
}
  0xa7   : > { %s8426_s15 = smov 64   ;;  %s4816_s17 = sshll.u32 %s6437_s22, 6 }
  0xa8   : > { %5700 = dma.hbm_to_vmem [thread:$0]  (!%p6451_p7), %s6447_s13, 128, %s6455_s20, %s301_s21, %s8426_s15, %s8426_s15, %s6200_s8  }
  0xa9   : > { %s5101_s18 = sshll.u32 %s6187_s28, 10  ;;  %s327_s19 = scalar_lea.vmem [#allocation8], %s4816_s17 }
  0xaa   : > { %s6494_s23 = scalar_lea.hbm %s8220_s1, %s5101_s18  ;;  %s334_s0 = sshll.u32 %s327_s19, 4  ;;  %s6496_s0 = int_to_ptr.vmem [resolvable:$true] %s334_s0 }
  0xab   : > { %s8427_s2 = sand.u32 1, %s6191_s29   ;;  %s6063_s4 = scalar_lea.hbm %s6494_s23, 1024 }
  0xac   : > { %s6500_s3 = scalar_lea.sflag [#allocation9], %s8427_s2  ;;  %p6064_p1 = scmp.ne.s32.totalorder %s6494_s23, %s6063_s4 }
  0xad   : > { %s6068_s20 = scalar_lea.hbm %s8220_s1, 2048  ;;  %p6069_p10 = scmp.lt.u32.totalorder %s6494_s23, %s8220_s1 }
  0xae   : > { %p6066_p8 = pnand %p6064_p1, %p6035_p12  ;;  %p6070_p3 = scmp.lt.u32.totalorder %s6068_s20, %s6063_s4 }
  0xaf   : > { %p6072_p9 = scmp.lt.u32.totalorder %s6063_s4, %s6494_s23 }
  0xb0   : > { %p6067_p6 = pneg %p6066_p8  ;;  %p6071_p11 = por %p6070_p3, %p6069_p10 }
  0xb2   : > { %p6073_p0 = por %p6072_p9, %p6071_p11 }
  0xb4   : > { %p6074_p2 = pnand %p6073_p0, %p6067_p6 }
  0xb6   : > { %6077 = shalt.err (!%p6074_p2)
}
  0xb7   : > { %s6078_s2 = scalar_lea.vmem %s6496_s0, 1024  ;;  %s6202_s17 = smov [#allocation8]  }
  0xb8   : > { %p6079_p13 = scmp.ne.s32.totalorder %s6496_s0, %s6078_s2  ;;  %s6083_s24 = sshll.u32 %s6202_s17, 4  ;;  %s6084_s24 = int_to_ptr.vmem [resolvable:$false] %s6083_s24 }
  0xb9   : > { %s6085_s10 = scalar_lea.vmem %s6084_s24, 2048  ;;  %p6086_p8 = scmp.lt.s32.totalorder %s6496_s0, %s6084_s24 }
  0xba   : > { %p6081_p4 = pnand %p6079_p13, %p6035_p12  ;;  %p6087_p10 = scmp.lt.s32.totalorder %s6085_s10, %s6078_s2 }
  0xbc   : > { %p6082_p1 = pneg %p6081_p4  ;;  %p6088_p3 = por %p6087_p10, %p6086_p8 }
  0xbe   : > { %p6089_p11 = pnand %p6088_p3, %p6082_p1 }
  0xc0   : > { %6092 = shalt.err (!%p6089_p11)
}
  0xc1   : > { %5703 = dma.hbm_to_vmem [thread:$0]  (!%p6451_p7), %s6494_s23, 1024, %s6496_s0, %s6500_s3, %s8426_s15, %s8426_s15, %s6200_s8  }
  0xc2   : > { %p8428_p12 = scmp.ne.s32.totalorder %s8416_s11, 0 }
  0xc4   : > { %346 = sbr.rel (%p8428_p12) target bundleno = 5870 (0x16ee), region = 48 }
  0xcb   : > { %s6532_s4 = sand.u32 1, %s6175_s25   ;;  %p8429_p6 = scmp.ne.s32.totalorder %s8413_s9, 0 }
  0xcc   : > { %s4820_s19 = sshll.u32 %s6532_s4, 3  ;;  %s349_s22 = scalar_lea.sflag [#allocation6], %s6532_s4 }
  0xcd   : > { %s6538_s16 = scalar_lea.vmem [#allocation5], %s4820_s19 }
  0xce   : > { %6146 = dma.done.wait (%p8429_p6), %s349_s22, 128  }
  0xcf   : > { %6148 = vsyncadd (%p8429_p6), %s349_s22, 4294967168  ;;  %s357_s0 = sand.u32 1, %s6281_s30   ;;  %s4821_s3 = sshll.u32 %s6532_s4, 6 }
  0xd0   : > { %s358_s11 = scalar_lea.sflag [#allocation9], %s357_s0  ;;  %s6546_s8 = scalar_lea.vmem [#allocation8], %s4821_s3 }
  0xd1   : > { %6150 = dma.done.wait (%p8429_p6), %s358_s11, 1024  }
  0xd2   : > { %6152 = vsyncadd (%p8429_p6), %s358_s11, 4294966272  ;;  %p8430_p7 = scmp.eq.s32.totalorder %s6281_s30, 0 }
  0xd4   : > { %6154 = dma.done.wait (%p8430_p7), [#allocation9], 8192   ;;  %p8431_p9 = pmov %p8430_p7 }
  0xd5   : > { %p8432_p0 = pmov %p8430_p7 }
  0xd6   : > { %6156 = vsyncadd (%p8431_p9), [#allocation9], 4294959104 }
  0xd7   : > { %6158 = dma.done.wait (%p8432_p0), [#allocation12], 16384   ;;  %p8433_p2 = pmov %p8432_p0 }
  0xd8   : > { %p8434_p13 = pmov %p8432_p0 }
  0xd9   : > { %6160 = vsyncadd (%p8433_p2), [#allocation12], 4294950912 }
  0xda   : > { %6162 = dma.done.wait (%p8434_p13), [#allocation15], 8192   ;;  %p8435_p4 = pmov %p8432_p0 }
  0xdb   : > { %v6203_v0 = vmov 0   ;;  %v436_v1 = vld [vmem:[#allocation11] sm:$0xff]  ;;  %v437_v18 = vld [vmem:[#allocation11 + $0x8] sm:$0xff]  ;;  %v438_v53 = vld [vmem:[#allocation11 + $0x10] sm:$0xff]  ;;  %vm6205_vm0 = vmmov 0   ;;  %s5104_s15 = sshll.u32 %s6183_s27, 7 }
  0xdc   : > { %6164 = vsyncadd (%p8435_p4), [#allocation15], 4294959104  ;;  %900 = vmatprep.mubr.bf16.mxu0 %v6203_v0  ;;  %1013 = vmatprep.mubr.bf16.mxu1 %v6203_v0  ;;  %v440_v2 = vld [vmem:[#allocation11 + $0x20] sm:$0xff]  ;;  %v441_v19 = vld [vmem:[#allocation11 + $0x28] sm:$0xff]  ;;  %s412_s23 = scalar_lea.vmem [#allocation16], %s4820_s19  ;;  %s8896_s18 = sld [smem:[#allocation199_spill]] }
  0xdd   : > { %v444_v3 = vld [vmem:[#allocation11 + $0x40] sm:$0xff]  ;;  %v4836_v4 = vcombine.high %v436_v1, %v440_v2  ;;  %v4835_v5 = vcombine.low %v436_v1, %v440_v2  ;;  %v4838_v22 = vcombine.high %v437_v18, %v441_v19  ;;  %v4837_v23 = vcombine.low %v437_v18, %v441_v19  ;;  %v445_v24 = vld [vmem:[#allocation11 + $0x48] sm:$0xff]  ;;  %v442_v54 = vld [vmem:[#allocation11 + $0x30] sm:$0xff]  ;;  %s4657_s13 = sshll.u32 %s412_s23, 4  ;;  %s4642_s17 = scalar_lea.sflag [#allocation7], %s6532_s4  ;;  %s8170_s13 = int_to_ptr.vmem [resolvable:$true] %s4657_s13 }
  0xde   : > { %v448_v6 = vld [vmem:[#allocation11 + $0x60] sm:$0xff]  ;;  %v449_v26 = vld [vmem:[#allocation11 + $0x68] sm:$0xff]  ;;  %v4840_v58 = vcombine.high %v438_v53, %v442_v54  ;;  %v446_v59 = vld [vmem:[#allocation11 + $0x50] sm:$0xff]  ;;  %v4839_v2 = vcombine.low %v438_v53, %v442_v54  ;;  %s6093_s24 = scalar_lea.vmem %s8170_s13, 128  ;;  %s6207_s27 = smov [#allocation16]  }
  0xdf   : > { %v4844_v7 = vcombine.high %v444_v3, %v448_v6  ;;  %v452_v8 = vld [vmem:[#allocation11 + $0x80] sm:$0xff]  ;;  %868 = vmatprep.subr.bf16.mxu0 %v4836_v4  ;;  %v4843_v10 = vcombine.low %v444_v3, %v448_v6  ;;  %981 = vmatprep.subr.bf16.mxu1 %v4838_v22  ;;  %v4846_v28 = vcombine.high %v445_v24, %v449_v26  ;;  %v453_v29 = vld [vmem:[#allocation11 + $0x88] sm:$0xff]  ;;  %v450_v60 = vld [vmem:[#allocation11 + $0x70] sm:$0xff]  ;;  %p6094_p1 = scmp.ne.s32.totalorder %s8170_s13, %s6093_s24  ;;  %s6097_s10 = sshll.u32 %s6207_s27, 4  ;;  %s6098_s10 = int_to_ptr.vmem [resolvable:$false] %s6097_s10 }
  0xe0   : > { %v456_v9 = vld [vmem:[#allocation11 + $0xa0] sm:$0xff]  ;;  %869 = vmatpush1.bf16.msra.mxu0 %v4835_v5  ;;  %v457_v30 = vld [vmem:[#allocation11 + $0xa8] sm:$0xff]  ;;  %982 = vmatpush1.bf16.msra.mxu1 %v4837_v23  ;;  %v4845_v31 = vcombine.low %v445_v24, %v449_v26  ;;  %v4848_v3 = vcombine.high %v446_v59, %v450_v60  ;;  %v447_v19 = vld [vmem:[#allocation11 + $0x58] sm:$0xff]  ;;  %s6099_s19 = scalar_lea.vmem %s6098_s10, 256  ;;  %p6100_p3 = scmp.lt.s32.totalorder %s8170_s13, %s6098_s10 }
  0xe1   : > { %870 = vmatprep.subr.bf16.mxu0 %v4844_v7  ;;  %v4852_v11 = vcombine.high %v452_v8, %v456_v9  ;;  %v460_v12 = vld [vmem:[#allocation11 + $0xc0] sm:$0xff]  ;;  %v4851_v14 = vcombine.low %v452_v8, %v456_v9  ;;  %983 = vmatprep.subr.bf16.mxu1 %v4846_v28  ;;  %v4854_v33 = vcombine.high %v453_v29, %v457_v30  ;;  %v461_v35 = vld [vmem:[#allocation11 + $0xc8] sm:$0xff]  ;;  %v454_v7 = vld [vmem:[#allocation11 + $0x90] sm:$0xff]  ;;  %p6095_p8 = pnand %p6094_p1, %p6430_p5  ;;  %p6101_p11 = scmp.lt.s32.totalorder %s6099_s19, %s6093_s24 }
  0xe2   : > { %v464_v13 = vld [vmem:[#allocation11 + $0xe0] sm:$0xff]  ;;  %v465_v36 = vld [vmem:[#allocation11 + $0xe8] sm:$0xff]  ;;  %v4853_v39 = vcombine.low %v453_v29, %v457_v30  ;;  %v458_v8 = vld [vmem:[#allocation11 + $0xb0] sm:$0xff]  ;;  %s8168_s2 = scalar_lea.hbm %s8896_s18, %s5104_s15 }
  0xe3   : > { %v4860_v15 = vcombine.high %v460_v12, %v464_v13  ;;  %v468_v16 = vld [vmem:[#allocation11 + $0x100] sm:$0xff]  ;;  %v4859_v20 = vcombine.low %v460_v12, %v464_v13  ;;  %v4862_v41 = vcombine.high %v461_v35, %v465_v36  ;;  %v469_v44 = vld [vmem:[#allocation11 + $0x108] sm:$0xff]  ;;  %v4861_v47 = vcombine.low %v461_v35, %v465_v36  ;;  %v466_v12 = vld [vmem:[#allocation11 + $0xf0] sm:$0xff]  ;;  %p6096_p10 = pneg %p6095_p8  ;;  %p6102_p12 = por %p6101_p11, %p6100_p3 }
  0xe4   : > { %871 = vmatpush1.bf16.msra.mxu0 %v4843_v10  ;;  %v472_v17 = vld [vmem:[#allocation11 + $0x120] sm:$0xff]  ;;  %984 = vmatpush1.bf16.msra.mxu1 %v4845_v31  ;;  %v473_v45 = vld [vmem:[#allocation11 + $0x128] sm:$0xff]  ;;  %v4847_v10 = vcombine.low %v446_v59, %v450_v60  ;;  %v470_v22 = vld [vmem:[#allocation11 + $0x110] sm:$0xff] }
  0xe5   : > { %872 = vmatprep.subr.bf16.mxu0 %v4852_v11  ;;  %v476_v21 = vld [vmem:[#allocation11 + $0x140] sm:$0xff]  ;;  %v4868_v25 = vcombine.high %v468_v16, %v472_v17  ;;  %v4867_v32 = vcombine.low %v468_v16, %v472_v17  ;;  %985 = vmatprep.subr.bf16.mxu1 %v4854_v33  ;;  %v4870_v49 = vcombine.high %v469_v44, %v473_v45  ;;  %v477_v51 = vld [vmem:[#allocation11 + $0x148] sm:$0xff]  ;;  %v462_v11 = vld [vmem:[#allocation11 + $0xd0] sm:$0xff]  ;;  %p6103_p6 = pnand %p6102_p12, %p6096_p10 }
  0xe6   : > { %v480_v27 = vld [vmem:[#allocation11 + $0x160] sm:$0xff]  ;;  %v481_v52 = vld [vmem:[#allocation11 + $0x168] sm:$0xff]  ;;  %v4869_v55 = vcombine.low %v469_v44, %v473_v45  ;;  %v4856_v17 = vcombine.high %v454_v7, %v458_v8  ;;  %v474_v23 = vld [vmem:[#allocation11 + $0x130] sm:$0xff]  ;;  %v4864_v24 = vcombine.high %v462_v11, %v466_v12 }
  0xe7   : > { %v4876_v34 = vcombine.high %v476_v21, %v480_v27  ;;  %v484_v37 = vld [vmem:[#allocation11 + $0x180] sm:$0xff]  ;;  %v4875_v40 = vcombine.low %v476_v21, %v480_v27  ;;  %v4878_v57 = vcombine.high %v477_v51, %v481_v52  ;;  %v485_v61 = vld [vmem:[#allocation11 + $0x188] sm:$0xff]  ;;  %v4877_v1 = vcombine.low %v477_v51, %v481_v52  ;;  %v478_v28 = vld [vmem:[#allocation11 + $0x150] sm:$0xff] }
  0xe8   : > { %873 = vmatpush1.bf16.msra.mxu0 %v4851_v14  ;;  %v488_v38 = vld [vmem:[#allocation11 + $0x1a0] sm:$0xff]  ;;  %986 = vmatpush1.bf16.msra.mxu1 %v4853_v39  ;;  %v489_v62 = vld [vmem:[#allocation11 + $0x1a8] sm:$0xff]  ;;  %v439_v14 = vld [vmem:[#allocation11 + $0x18] sm:$0xff]  ;;  %v4855_v21 = vcombine.low %v454_v7, %v458_v8  ;;  %v4863_v27 = vcombine.low %v462_v11, %v466_v12 }
  0xe9   : > { %874 = vmatprep.subr.bf16.mxu0 %v4860_v15  ;;  %v4884_v42 = vcombine.high %v484_v37, %v488_v38  ;;  %v492_v43 = vld [vmem:[#allocation11 + $0x1c0] sm:$0xff]  ;;  %v4883_v48 = vcombine.low %v484_v37, %v488_v38  ;;  %987 = vmatprep.subr.bf16.mxu1 %v4862_v41  ;;  %v4886_v4 = vcombine.high %v485_v61, %v489_v62  ;;  %v493_v5 = vld [vmem:[#allocation11 + $0x1c8] sm:$0xff]  ;;  %v443_v15 = vld [vmem:[#allocation11 + $0x38] sm:$0xff] }
  0xea   : > { %v496_v46 = vld [vmem:[#allocation11 + $0x1e0] sm:$0xff]  ;;  %v497_v6 = vld [vmem:[#allocation11 + $0x1e8] sm:$0xff]  ;;  %v4885_v9 = vcombine.low %v485_v61, %v489_v62  ;;  %v4841_v26 = vcombine.low %v439_v14, %v443_v15  ;;  %v482_v29 = vld [vmem:[#allocation11 + $0x170] sm:$0xff]  ;;  %v4871_v38 = vcombine.low %v470_v22, %v474_v23 }
  0xeb   : > { %v4892_v50 = vcombine.high %v492_v43, %v496_v46  ;;  %v4891_v56 = vcombine.low %v492_v43, %v496_v46  ;;  %v6567_v63 = vld [vmem:[%s6546_s8] sm:$0xff]   ;;  %v4894_v13 = vcombine.high %v493_v5, %v497_v6  ;;  %v6572_v16 = vld [vmem:[%s6546_s8 + $0x8] sm:$0xff]   ;;  %v4893_v18 = vcombine.low %v493_v5, %v497_v6  ;;  %v455_v31 = vld [vmem:[#allocation11 + $0x98] sm:$0xff] }
  0xec   : > { %875 = vmatpush1.bf16.msra.mxu0 %v4859_v20  ;;  %988 = vmatpush1.bf16.msra.mxu1 %v4861_v47  ;;  %v451_v20 = vld [vmem:[#allocation11 + $0x78] sm:$0xff]  ;;  %v6577_v33 = vld [vmem:[%s6546_s8 + $0x10] sm:$0xff]   ;;  %v4880_v41 = vcombine.high %v478_v28, %v482_v29  ;;  %v4879_v44 = vcombine.low %v478_v28, %v482_v29  ;;  %v6588_v54 = vld [vmem:[#allocation13] sm:$0xff] }
  0xed   : > { %876 = vmatprep.subr.bf16.mxu0 %v4868_v25  ;;  %989 = vmatprep.subr.bf16.mxu1 %v4870_v49  ;;  %v4842_v25 = vcombine.high %v439_v14, %v443_v15  ;;  %v4850_v30 = vcombine.high %v447_v19, %v451_v20  ;;  %v4849_v35 = vcombine.low %v447_v19, %v451_v20  ;;  %v463_v36 = vld [vmem:[#allocation11 + $0xd8] sm:$0xff]  ;;  %v486_v39 = vld [vmem:[#allocation11 + $0x190] sm:$0xff]  ;;  %v1453_v12 = vld [vmem:[#allocation13 + $0x28] sm:$0xff] }
  0xee   : > { %v467_v37 = vld [vmem:[#allocation11 + $0xf8] sm:$0xff]  ;;  %v494_v45 = vld [vmem:[#allocation11 + $0x1d0] sm:$0xff]  ;;  %v1456_v19 = vld [vmem:[#allocation13 + $0x40] sm:$0xff] }
  0xef   : > { %v498_v46 = vld [vmem:[#allocation11 + $0x1f0] sm:$0xff]  ;;  %v4866_v47 = vcombine.high %v463_v36, %v467_v37  ;;  %v475_v49 = vld [vmem:[#allocation11 + $0x138] sm:$0xff]  ;;  %v4865_v52 = vcombine.low %v463_v36, %v467_v37  ;;  %v1460_v20 = vld [vmem:[#allocation13 + $0x60] sm:$0xff] }
  0xf0   : > { %877 = vmatpush1.bf16.msra.mxu0 %v4867_v32  ;;  %990 = vmatpush1.bf16.msra.mxu1 %v4869_v55  ;;  %v459_v32 = vld [vmem:[#allocation11 + $0xb8] sm:$0xff]  ;;  %v6590_v55 = vld [vmem:[#allocation13 + $0x20] sm:$0xff]  ;;  %v4895_v62 = vcombine.low %v494_v45, %v498_v46 }
  0xf1   : > { %878 = vmatprep.subr.bf16.mxu0 %v4876_v34  ;;  %991 = vmatprep.subr.bf16.mxu1 %v4878_v57  ;;  %v4872_v34 = vcombine.high %v470_v22, %v474_v23  ;;  %v4857_v43 = vcombine.low %v455_v31, %v459_v32  ;;  %v483_v57 = vld [vmem:[#allocation11 + $0x178] sm:$0xff]  ;;  %v4908_v22 = vcombine.high %v1456_v19, %v1460_v20  ;;  %v1464_v23 = vld [vmem:[#allocation13 + $0x80] sm:$0xff] }
  0xf2   : > { %v487_v61 = vld [vmem:[#allocation11 + $0x198] sm:$0xff]  ;;  %v1476_v28 = vld [vmem:[#allocation13 + $0xe0] sm:$0xff] }
  0xf3   : > { %v495_v7 = vld [vmem:[#allocation11 + $0x1d8] sm:$0xff] }
  0xf4   : > { %879 = vmatpush1.bf16.msra.mxu0 %v4875_v40  ;;  %992 = vmatpush1.bf16.msra.mxu1 %v4877_v1  ;;  %v490_v40 = vld [vmem:[#allocation11 + $0x1b0] sm:$0xff]  ;;  %v499_v8 = vld [vmem:[#allocation11 + $0x1f8] sm:$0xff] }
  0xf5   : > { %880 = vmatprep.subr.bf16.mxu0 %v4884_v42  ;;  %993 = vmatprep.subr.bf16.mxu1 %v4886_v4  ;;  %v4858_v42 = vcombine.high %v455_v31, %v459_v32  ;;  %v4888_v51 = vcombine.high %v486_v39, %v490_v40  ;;  %v4887_v53 = vcombine.low %v486_v39, %v490_v40  ;;  %v1457_v31 = vld [vmem:[#allocation13 + $0x48] sm:$0xff]  ;;  %v1488_v40 = vld [vmem:[#allocation13 + $0x140] sm:$0xff] }
  0xf6   : > { %v4900_v4 = vcombine.high %v6588_v54, %v6590_v55  ;;  %v4898_v11 = vcombine.high %v495_v7, %v499_v8  ;;  %v4897_v14 = vcombine.low %v495_v7, %v499_v8  ;;  %v1461_v32 = vld [vmem:[#allocation13 + $0x68] sm:$0xff]  ;;  %v1454_v7 = vld [vmem:[#allocation13 + $0x30] sm:$0xff] }
  0xf8   : > { %881 = vmatpush1.bf16.msra.mxu0 %v4883_v48  ;;  %994 = vmatpush1.bf16.msra.mxu1 %v4885_v9  ;;  %v471_v48 = vld [vmem:[#allocation11 + $0x118] sm:$0xff] }
  0xf9   : > { %882 = vmatprep.subr.bf16.mxu0 %v4892_v50  ;;  %995 = vmatprep.subr.bf16.mxu1 %v4894_v13  ;;  %v6584_v50 = vld [vmem:[%s6546_s8 + $0x18] sm:$0xff]   ;;  %v4874_v59 = vcombine.high %v471_v48, %v475_v49  ;;  %v4873_v60 = vcombine.low %v471_v48, %v475_v49  ;;  %v6606_v13 = vld [vmem:[%s6546_s8 + $0x28] sm:$0xff]  }
  0xfa   : > { %v1473_v48 = vld [vmem:[#allocation13 + $0xc8] sm:$0xff] }
  0xfb   : > { %v1477_v49 = vld [vmem:[#allocation13 + $0xe8] sm:$0xff] }
  0xfc   : > { %883 = vmatpush1.bf16.msra.mxu0 %v4891_v56  ;;  %996 = vmatpush1.bf16.msra.mxu1 %v4893_v18  ;;  %v479_v56 = vld [vmem:[#allocation11 + $0x158] sm:$0xff] }
  0xfd   : > { %1094 = vmatprep.subr.bf16.mxu0 %v4840_v58  ;;  %1207 = vmatprep.subr.bf16.mxu1 %v4842_v25  ;;  %v4896_v58 = vcombine.high %v494_v45, %v498_v46  ;;  %v4882_v1 = vcombine.high %v479_v56, %v483_v57  ;;  %v4881_v5 = vcombine.low %v479_v56, %v483_v57  ;;  %v6621_v18 = vld [vmem:[%s6546_s8 + $0x38] sm:$0xff]   ;;  %v1504_v57 = vld [vmem:[#allocation13 + $0x1c0] sm:$0xff] }
  0xfe   : > { %v4907_v25 = vcombine.low %v1456_v19, %v1460_v20  ;;  %v1505_v20 = vld [vmem:[#allocation13 + $0x1c8] sm:$0xff] }
  0xff   : > { %901 = vmatmul.mubr.bf16.vlgmr.msra.gmra.mrb[0].mxu0 %v6567_v63  ;;  %1014 = vmatmul.mubr.bf16.vlgmr.msra.gmra.mrb[0].mxu1 %v6567_v63 }
 0x100   : > { %1095 = vmatpush1.bf16.msra.mxu0 %v4839_v2  ;;  %910 = vmatprep.mubr.bf16.mxu0 %v6203_v0  ;;  %v491_v2 = vld [vmem:[#allocation11 + $0x1b8] sm:$0xff] }
 0x101   : > { %1096 = vmatprep.subr.bf16.mxu0 %v4848_v3  ;;  %1023 = vmatprep.mubr.bf16.mxu1 %v6203_v0  ;;  %v6595_v3 = vld [vmem:[%s6546_s8 + $0x20] sm:$0xff]   ;;  %v4890_v6 = vcombine.high %v487_v61, %v491_v2  ;;  %v4889_v9 = vcombine.low %v487_v61, %v491_v2  ;;  %v4925_v61 = vcombine.low %v1473_v48, %v1477_v49 }
 0x102   : > { %1208 = vmatpush1.bf16.msra.mxu1 %v4841_v26 }
 0x103   : > { %1209 = vmatprep.subr.bf16.mxu1 %v4850_v30 }
 0x104   : > { %1097 = vmatpush1.bf16.msra.mxu0 %v4847_v10  ;;  %v6602_v10 = vld [vmem:[#allocation13 + $0x8] sm:$0xff] }
 0x105   : > { %1098 = vmatprep.subr.bf16.mxu0 %v4856_v17  ;;  %v4902_v15 = vcombine.high %v6602_v10, %v1453_v12  ;;  %v6614_v17 = vld [vmem:[%s6546_s8 + $0x30] sm:$0xff]   ;;  %v4901_v36 = vcombine.low %v6602_v10, %v1453_v12  ;;  %v1497_v12 = vld [vmem:[#allocation13 + $0x188] sm:$0xff] }
 0x106   : > { %1210 = vmatpush1.bf16.msra.mxu1 %v4849_v35  ;;  %v1484_v35 = vld [vmem:[#allocation13 + $0x120] sm:$0xff] }
 0x107   : > { %911 = vmatmul.mubr.bf16.gmra.mrb[4].mxu0 %v6572_v16  ;;  %1211 = vmatprep.subr.bf16.mxu1 %v4858_v42  ;;  %v1465_v42 = vld [vmem:[#allocation13 + $0x88] sm:$0xff] }
 0x108   : > { %920 = vmatprep.mubr.bf16.mxu0 %v6203_v0  ;;  %1099 = vmatpush1.bf16.msra.mxu0 %v4855_v21  ;;  %v4899_v21 = vcombine.low %v6588_v54, %v6590_v55  ;;  %v4926_v55 = vcombine.high %v1473_v48, %v1477_v49  ;;  %v1490_v49 = vld [vmem:[#allocation13 + $0x150] sm:$0xff] }
 0x109   : > { %1100 = vmatprep.subr.bf16.mxu0 %v4864_v24  ;;  %1024 = vmatmul.mubr.bf16.gmra.mrb[4].mxu1 %v6572_v16  ;;  %v1468_v24 = vld [vmem:[#allocation13 + $0xa0] sm:$0xff] }
 0x10a   : > { %1033 = vmatprep.mubr.bf16.mxu1 %v6203_v0  ;;  %1212 = vmatpush1.bf16.msra.mxu1 %v4857_v43  ;;  %v4916_v26 = vcombine.high %v1464_v23, %v1468_v24  ;;  %v4915_v29 = vcombine.low %v1464_v23, %v1468_v24  ;;  %v1469_v43 = vld [vmem:[#allocation13 + $0xa8] sm:$0xff]  ;;  %v1451_v24 = vld [vmem:[#allocation13 + $0x18] sm:$0xff] }
 0x10b   : > { %1213 = vmatprep.subr.bf16.mxu1 %v4866_v47  ;;  %v4918_v47 = vcombine.high %v1465_v42, %v1469_v43 }
 0x10c   : > { %1101 = vmatpush1.bf16.msra.mxu0 %v4863_v27  ;;  %v1472_v27 = vld [vmem:[#allocation13 + $0xc0] sm:$0xff] }
 0x10d   : > { %1102 = vmatprep.subr.bf16.mxu0 %v4872_v34  ;;  %v4924_v30 = vcombine.high %v1472_v27, %v1476_v28  ;;  %v1480_v34 = vld [vmem:[#allocation13 + $0x100] sm:$0xff]  ;;  %v4923_v37 = vcombine.low %v1472_v27, %v1476_v28  ;;  %v1458_v28 = vld [vmem:[#allocation13 + $0x50] sm:$0xff] }
 0x10e   : > { %1214 = vmatpush1.bf16.msra.mxu1 %v4865_v52  ;;  %v4932_v39 = vcombine.high %v1480_v34, %v1484_v35  ;;  %v4931_v45 = vcombine.low %v1480_v34, %v1484_v35  ;;  %v1500_v52 = vld [vmem:[#allocation13 + $0x1a0] sm:$0xff]  ;;  %v1470_v34 = vld [vmem:[#allocation13 + $0xb0] sm:$0xff] }
 0x10f   : > { %921 = vmatmul.mubr.bf16.gmra.mrb[8].mxu0 %v6577_v33  ;;  %1215 = vmatprep.subr.bf16.mxu1 %v4874_v59  ;;  %v1481_v59 = vld [vmem:[#allocation13 + $0x108] sm:$0xff] }
 0x110   : > { %930 = vmatprep.mubr.bf16.mxu0 %v6203_v0  ;;  %1103 = vmatpush1.bf16.msra.mxu0 %v4871_v38  ;;  %v4910_v38 = vcombine.high %v1457_v31, %v1461_v32 }
 0x111   : > { %1104 = vmatprep.subr.bf16.mxu0 %v4880_v41  ;;  %1034 = vmatmul.mubr.bf16.gmra.mrb[8].mxu1 %v6577_v33  ;;  %v1492_v41 = vld [vmem:[#allocation13 + $0x160] sm:$0xff] }
 0x112   : > { %1043 = vmatprep.mubr.bf16.mxu1 %v6203_v0  ;;  %1216 = vmatpush1.bf16.msra.mxu1 %v4873_v60  ;;  %v4940_v46 = vcombine.high %v1488_v40, %v1492_v41  ;;  %v4939_v54 = vcombine.low %v1488_v40, %v1492_v41  ;;  %v1485_v60 = vld [vmem:[#allocation13 + $0x128] sm:$0xff]  ;;  %v1459_v41 = vld [vmem:[#allocation13 + $0x58] sm:$0xff] }
 0x113   : > { %1217 = vmatprep.subr.bf16.mxu1 %v4882_v1  ;;  %v4934_v2 = vcombine.high %v1481_v59, %v1485_v60  ;;  %v4933_v8 = vcombine.low %v1481_v59, %v1485_v60  ;;  %v1479_v59 = vld [vmem:[#allocation13 + $0xf8] sm:$0xff]  ;;  %v1498_v60 = vld [vmem:[#allocation13 + $0x190] sm:$0xff] }
 0x114   : > { %1105 = vmatpush1.bf16.msra.mxu0 %v4879_v44  ;;  %v4909_v44 = vcombine.low %v1457_v31, %v1461_v32  ;;  %v1466_v32 = vld [vmem:[#allocation13 + $0x90] sm:$0xff] }
 0x115   : > { %1106 = vmatprep.subr.bf16.mxu0 %v4888_v51  ;;  %v1496_v51 = vld [vmem:[#allocation13 + $0x180] sm:$0xff] }
 0x116   : > { %1218 = vmatpush1.bf16.msra.mxu1 %v4881_v5  ;;  %v4948_v56 = vcombine.high %v1496_v51, %v1500_v52  ;;  %v1493_v5 = vld [vmem:[#allocation13 + $0x168] sm:$0xff] }
 0x117   : > { %931 = vmatmul.mubr.bf16.gmra.mrb[12].mxu0 %v6584_v50  ;;  %1219 = vmatprep.subr.bf16.mxu1 %v4890_v6  ;;  %v1450_v6 = vld [vmem:[#allocation13 + $0x10] sm:$0xff] }
 0x118   : > { %940 = vmatprep.mubr.bf16.mxu0 %v6203_v0  ;;  %1107 = vmatpush1.bf16.msra.mxu0 %v4887_v53  ;;  %v4917_v53 = vcombine.low %v1465_v42, %v1469_v43  ;;  %v1463_v42 = vld [vmem:[#allocation13 + $0x78] sm:$0xff]  ;;  %v1482_v43 = vld [vmem:[#allocation13 + $0x110] sm:$0xff] }
 0x119   : > { %1108 = vmatprep.subr.bf16.mxu0 %v4896_v58  ;;  %1044 = vmatmul.mubr.bf16.gmra.mrb[12].mxu1 %v6584_v50  ;;  %v1508_v58 = vld [vmem:[#allocation13 + $0x1e0] sm:$0xff] }
 0x11a   : > { %1053 = vmatprep.mubr.bf16.mxu1 %v6203_v0  ;;  %1220 = vmatpush1.bf16.msra.mxu1 %v4889_v9  ;;  %v4956_v1 = vcombine.high %v1504_v57, %v1508_v58  ;;  %v4955_v9 = vcombine.low %v1504_v57, %v1508_v58  ;;  %v1475_v58 = vld [vmem:[#allocation13 + $0xd8] sm:$0xff] }
 0x11b   : > { %1221 = vmatprep.subr.bf16.mxu1 %v4898_v11  ;;  %v4904_v11 = vcombine.high %v1450_v6, %v1454_v7 }
 0x11c   : > { %1109 = vmatpush1.bf16.msra.mxu0 %v4895_v62  ;;  %v4947_v62 = vcombine.low %v1496_v51, %v1500_v52  ;;  %v1494_v51 = vld [vmem:[#allocation13 + $0x170] sm:$0xff]  ;;  %v1467_v52 = vld [vmem:[#allocation13 + $0x98] sm:$0xff] }
 0x11d   : > { %1832 = vmatprep.subr.bf16.mxu0 %v4900_v4  ;;  %v1489_v4 = vld [vmem:[#allocation13 + $0x148] sm:$0xff] }
 0x11e   : > { %1222 = vmatpush1.bf16.msra.mxu1 %v4897_v14  ;;  %v4942_v10 = vcombine.high %v1489_v4, %v1493_v5  ;;  %v1501_v14 = vld [vmem:[#allocation13 + $0x1a8] sm:$0xff] }
 0x11f   : > { %941 = vmatmul.mubr.bf16.gmra.mrb[16].mxu0 %v6595_v3  ;;  %1945 = vmatprep.subr.bf16.mxu1 %v4902_v15  ;;  %v4941_v15 = vcombine.low %v1489_v4, %v1493_v5  ;;  %v4950_v19 = vcombine.high %v1497_v12, %v1501_v14  ;;  %v1506_v4 = vld [vmem:[#allocation13 + $0x1d0] sm:$0xff] }
 0x120   : > { %950 = vmatprep.mubr.bf16.mxu0 %v6203_v0  ;;  %v1510_v5 = vld [vmem:[#allocation13 + $0x1f0] sm:$0xff] }
 0x121   : > { %1054 = vmatmul.mubr.bf16.gmra.mrb[16].mxu1 %v6595_v3 }
 0x122   : > { %1063 = vmatprep.mubr.bf16.mxu1 %v6203_v0 }
 0x127   : > { %951 = vmatmul.mubr.bf16.gmra.mrb[20].mxu0 %v6606_v13 }
 0x128   : > { %960 = vmatprep.mubr.bf16.mxu0 %v6203_v0 }
 0x129   : > { %1064 = vmatmul.mubr.bf16.gmra.mrb[20].mxu1 %v6606_v13 }
 0x12a   : > { %1073 = vmatprep.mubr.bf16.mxu1 %v6203_v0 }
 0x12f   : > { %961 = vmatmul.mubr.bf16.gmra.mrb[24].mxu0 %v6614_v17 }
 0x130   : > { %970 = vmatprep.mubr.bf16.mxu0 %v6203_v0 }
 0x131   : > { %1074 = vmatmul.mubr.bf16.gmra.mrb[24].mxu1 %v6614_v17 }
 0x132   : > { %1083 = vmatprep.mubr.bf16.mxu1 %v6203_v0 }
 0x137   : > { %971 = vmatmul.mubr.bf16.gmra.mrb[28].mxu0 %v6621_v18 }
 0x138   : > { %1126 = vmatprep.mubr.bf16.mxu0 %v6203_v0 }
 0x139   : > { %1084 = vmatmul.mubr.bf16.gmra.mrb[28].mxu1 %v6621_v18 }
 0x13a   : > { %1239 = vmatprep.mubr.bf16.mxu1 %v6203_v0 }
 0x13f   : > { %1127 = vmatmul.mubr.bf16.vlgmr.msra.gmra.mrb[32].mxu0 %v6567_v63 }
 0x140   : > { %1833 = vmatpush1.bf16.msra.mxu0 %v4899_v21  ;;  %1136 = vmatprep.mubr.bf16.mxu0 %v6203_v0  ;;  %v1509_v21 = vld [vmem:[#allocation13 + $0x1e8] sm:$0xff] }
 0x141   : > { %1834 = vmatprep.subr.bf16.mxu0 %v4908_v22  ;;  %1240 = vmatmul.mubr.bf16.vlgmr.msra.gmra.mrb[32].mxu1 %v6567_v63  ;;  %v4949_v22 = vcombine.low %v1497_v12, %v1501_v14  ;;  %v4958_v23 = vcombine.high %v1505_v20, %v1509_v21  ;;  %v1491_v12 = vld [vmem:[#allocation13 + $0x158] sm:$0xff] }
 0x142   : > { %1249 = vmatprep.mubr.bf16.mxu1 %v6203_v0  ;;  %1946 = vmatpush1.bf16.msra.mxu1 %v4901_v36  ;;  %v4920_v36 = vcombine.high %v1466_v32, %v1470_v34  ;;  %v1495_v14 = vld [vmem:[#allocation13 + $0x178] sm:$0xff] }
 0x143   : > { %1947 = vmatprep.subr.bf16.mxu1 %v4910_v38  ;;  %v1478_v38 = vld [vmem:[#allocation13 + $0xf0] sm:$0xff] }
 0x144   : > { %1835 = vmatpush1.bf16.msra.mxu0 %v4907_v25  ;;  %v1455_v25 = vld [vmem:[#allocation13 + $0x38] sm:$0xff] }
 0x145   : > { %1836 = vmatprep.subr.bf16.mxu0 %v4916_v26  ;;  %v4957_v26 = vcombine.low %v1505_v20, %v1509_v21  ;;  %v4906_v27 = vcombine.high %v1451_v24, %v1455_v25  ;;  %v4959_v20 = vcombine.low %v1506_v4, %v1510_v5  ;;  %v4946_v21 = vcombine.high %v1491_v12, %v1495_v14 }
 0x146   : > { %1948 = vmatpush1.bf16.msra.mxu1 %v4909_v44  ;;  %v1486_v44 = vld [vmem:[#allocation13 + $0x130] sm:$0xff] }
 0x147   : > { %1137 = vmatmul.mubr.bf16.gmra.mrb[36].mxu0 %v6572_v16  ;;  %1949 = vmatprep.subr.bf16.mxu1 %v4918_v47  ;;  %v4914_v47 = vcombine.high %v1459_v41, %v1463_v42  ;;  %v4936_v48 = vcombine.high %v1482_v43, %v1486_v44 }
 0x148   : > { %1146 = vmatprep.mubr.bf16.mxu0 %v6203_v0  ;;  %1837 = vmatpush1.bf16.msra.mxu0 %v4915_v29  ;;  %v1462_v29 = vld [vmem:[#allocation13 + $0x70] sm:$0xff] }
 0x149   : > { %1838 = vmatprep.subr.bf16.mxu0 %v4924_v30  ;;  %1250 = vmatmul.mubr.bf16.gmra.mrb[36].mxu1 %v6572_v16  ;;  %v4903_v30 = vcombine.low %v1450_v6, %v1454_v7  ;;  %v4912_v31 = vcombine.high %v1458_v28, %v1462_v29  ;;  %v4911_v35 = vcombine.low %v1458_v28, %v1462_v29  ;;  %v1483_v6 = vld [vmem:[#allocation13 + $0x118] sm:$0xff] }
 0x14a   : > { %1259 = vmatprep.mubr.bf16.mxu1 %v6203_v0  ;;  %1950 = vmatpush1.bf16.msra.mxu1 %v4917_v53  ;;  %v1471_v53 = vld [vmem:[#allocation13 + $0xb8] sm:$0xff] }
 0x14b   : > { %1951 = vmatprep.subr.bf16.mxu1 %v4926_v55  ;;  %v4935_v55 = vcombine.low %v1482_v43, %v1486_v44  ;;  %v4922_v57 = vcombine.high %v1467_v52, %v1471_v53  ;;  %v1487_v7 = vld [vmem:[#allocation13 + $0x138] sm:$0xff] }
 0x14c   : > { %1839 = vmatpush1.bf16.msra.mxu0 %v4923_v37  ;;  %v1474_v37 = vld [vmem:[#allocation13 + $0xd0] sm:$0xff]  ;;  %v1511_v28 = vld [vmem:[#allocation13 + $0x1f8] sm:$0xff] }
 0x14d   : > { %1840 = vmatprep.subr.bf16.mxu0 %v4932_v39  ;;  %v4919_v39 = vcombine.low %v1466_v32, %v1470_v34  ;;  %v4928_v40 = vcombine.high %v1474_v37, %v1478_v38  ;;  %v2419_v32 = vld [vmem:[#allocation10 + $0x28] sm:$0xff] }
 0x14e   : > { %1952 = vmatpush1.bf16.msra.mxu1 %v4925_v61  ;;  %v1502_v61 = vld [vmem:[#allocation13 + $0x1b0] sm:$0xff] }
 0x14f   : > { %1147 = vmatmul.mubr.bf16.gmra.mrb[40].mxu0 %v6577_v33  ;;  %1953 = vmatprep.subr.bf16.mxu1 %v4934_v2  ;;  %v4952_v2 = vcombine.high %v1498_v60, %v1502_v61 }
 0x150   : > { %1156 = vmatprep.mubr.bf16.mxu0 %v6203_v0  ;;  %1841 = vmatpush1.bf16.msra.mxu0 %v4931_v45  ;;  %v4905_v45 = vcombine.low %v1451_v24, %v1455_v25  ;;  %v1503_v24 = vld [vmem:[#allocation13 + $0x1b8] sm:$0xff]  ;;  %v4945_v25 = vcombine.low %v1491_v12, %v1495_v14  ;;  %v2470_v14 = vld [vmem:[#allocation10 + $0x1c0] sm:$0xff] }
 0x151   : > { %1842 = vmatprep.subr.bf16.mxu0 %v4940_v46  ;;  %1260 = vmatmul.mubr.bf16.gmra.mrb[40].mxu1 %v6577_v33  ;;  %v4927_v46 = vcombine.low %v1474_v37, %v1478_v38  ;;  %v2426_v37 = vld [vmem:[#allocation10 + $0x60] sm:$0xff] }
 0x152   : > { %1269 = vmatprep.mubr.bf16.mxu1 %v6203_v0  ;;  %1954 = vmatpush1.bf16.msra.mxu1 %v4933_v8  ;;  %v4929_v8 = vcombine.low %v1475_v58, %v1479_v59 }
 0x153   : > { %1955 = vmatprep.subr.bf16.mxu1 %v4942_v10  ;;  %v4960_v10 = vcombine.high %v1506_v4, %v1510_v5  ;;  %v2439_v5 = vld [vmem:[#allocation10 + $0xc8] sm:$0xff] }
 0x154   : > { %1843 = vmatpush1.bf16.msra.mxu0 %v4939_v54  ;;  %v4913_v54 = vcombine.low %v1459_v41, %v1463_v42  ;;  %v2434_v41 = vld [vmem:[#allocation10 + $0xa0] sm:$0xff] }
 0x155   : > { %1844 = vmatprep.subr.bf16.mxu0 %v4948_v56  ;;  %v4944_v56 = vcombine.high %v1490_v49, %v1494_v51  ;;  %v5917_v42 = vld [vmem:[%s6546_s8] sm:$0xff]  }
 0x156   : > { %1956 = vmatpush1.bf16.msra.mxu1 %v4941_v15  ;;  %v2414_v15 = vld [vmem:[#allocation10] sm:$0xff] }
 0x157   : > { %1157 = vmatmul.mubr.bf16.gmra.mrb[44].mxu0 %v6584_v50  ;;  %1957 = vmatprep.subr.bf16.mxu1 %v4950_v19  ;;  %v2418_v19 = vld [vmem:[#allocation10 + $0x20] sm:$0xff] }
 0x158   : > { %1166 = vmatprep.mubr.bf16.mxu0 %v6203_v0  ;;  %1845 = vmatpush1.bf16.msra.mxu0 %v4947_v62  ;;  %v4943_v62 = vcombine.low %v1490_v49, %v1494_v51  ;;  %v4964_v38 = vcombine.low %v2414_v15, %v2418_v19  ;;  %v2423_v49 = vld [vmem:[#allocation10 + $0x48] sm:$0xff] }
 0x159   : > { %1846 = vmatprep.subr.bf16.mxu0 %v4956_v1  ;;  %1270 = vmatmul.mubr.bf16.gmra.mrb[44].mxu1 %v6584_v50  ;;  %v4930_v1 = vcombine.high %v1475_v58, %v1479_v59  ;;  %v2427_v51 = vld [vmem:[#allocation10 + $0x68] sm:$0xff]  ;;  %v2454_v59 = vld [vmem:[#allocation10 + $0x140] sm:$0xff] }
 0x15a   : > { %1279 = vmatprep.mubr.bf16.mxu1 %v6203_v0  ;;  %1958 = vmatpush1.bf16.msra.mxu1 %v4949_v22  ;;  %v4965_v22 = vcombine.high %v2414_v15, %v2418_v19  ;;  %v2474_v19 = vld [vmem:[#allocation10 + $0x1e0] sm:$0xff] }
 0x15b   : > { %1959 = vmatprep.subr.bf16.mxu1 %v4958_v23  ;;  %v1499_v23 = vld [vmem:[#allocation13 + $0x198] sm:$0xff] }
 0x15c   : > { %1847 = vmatpush1.bf16.msra.mxu0 %v4955_v9  ;;  %v4951_v9 = vcombine.low %v1498_v60, %v1502_v61  ;;  %v4953_v29 = vcombine.low %v1499_v23, %v1503_v24  ;;  %v2458_v60 = vld [vmem:[#allocation10 + $0x160] sm:$0xff]  ;;  %v2431_v61 = vld [vmem:[#allocation10 + $0x88] sm:$0xff] }
 0x15d   : > { %2058 = vmatprep.subr.bf16.mxu0 %v4904_v11  ;;  %v4938_v11 = vcombine.high %v1483_v6, %v1487_v7 }
 0x15e   : > { %1960 = vmatpush1.bf16.msra.mxu1 %v4957_v26  ;;  %v4954_v26 = vcombine.high %v1499_v23, %v1503_v24 }
 0x15f   : > { %1167 = vmatmul.mubr.bf16.gmra.mrb[48].mxu0 %v6595_v3  ;;  %2171 = vmatprep.subr.bf16.mxu1 %v4906_v27  ;;  %v1507_v27 = vld [vmem:[#allocation13 + $0x1d8] sm:$0xff] }
 0x160   : > { %1176 = vmatprep.mubr.bf16.mxu0 %v6203_v0  ;;  %v4961_v34 = vcombine.low %v1507_v27, %v1511_v28 }
 0x161   : > { %1280 = vmatmul.mubr.bf16.gmra.mrb[48].mxu1 %v6595_v3 }
 0x162   : > { %1289 = vmatprep.mubr.bf16.mxu1 %v6203_v0 }
 0x167   : > { %1177 = vmatmul.mubr.bf16.gmra.mrb[52].mxu0 %v6606_v13 }
 0x168   : > { %1186 = vmatprep.mubr.bf16.mxu0 %v6203_v0 }
 0x169   : > { %1290 = vmatmul.mubr.bf16.gmra.mrb[52].mxu1 %v6606_v13 }
 0x16a   : > { %1299 = vmatprep.mubr.bf16.mxu1 %v6203_v0 }
 0x16f   : > { %1187 = vmatmul.mubr.bf16.gmra.mrb[56].mxu0 %v6614_v17 }
 0x170   : > { %1196 = vmatprep.mubr.bf16.mxu0 %v6203_v0 }
 0x171   : > { %1300 = vmatmul.mubr.bf16.gmra.mrb[56].mxu1 %v6614_v17 }
 0x172   : > { %1309 = vmatprep.mubr.bf16.mxu1 %v6203_v0 }
 0x177   : > { %1197 = vmatmul.mubr.bf16.gmra.mrb[60].mxu0 %v6621_v18 }
 0x178   : > { %1864 = vmatprep.mubr.bf16.mxu0 %v6203_v0 }
 0x179   : > { %1310 = vmatmul.mubr.bf16.gmra.mrb[60].mxu1 %v6621_v18 }
 0x17a   : > { %1977 = vmatprep.mubr.bf16.mxu1 %v6203_v0 }
 0x17f   : > { %1865 = vmatmul.mubr.bf16.vlgmr.msra.gmra.mrb[64].mxu0 %v6567_v63 }
 0x180   : > { %2059 = vmatpush1.bf16.msra.mxu0 %v4903_v30  ;;  %1874 = vmatprep.mubr.bf16.mxu0 %v6203_v0  ;;  %v4962_v30 = vcombine.high %v1507_v27, %v1511_v28  ;;  %v2455_v28 = vld [vmem:[#allocation10 + $0x148] sm:$0xff] }
 0x181   : > { %2060 = vmatprep.subr.bf16.mxu0 %v4912_v31  ;;  %1978 = vmatmul.mubr.bf16.vlgmr.msra.gmra.mrb[64].mxu1 %v6567_v63  ;;  %v4921_v63 = vcombine.low %v1467_v52, %v1471_v53  ;;  %v2415_v31 = vld [vmem:[#allocation10 + $0x8] sm:$0xff]  ;;  %v2446_v52 = vld [vmem:[#allocation10 + $0x100] sm:$0xff] }
 0x182   : > { %1987 = vmatprep.mubr.bf16.mxu1 %v6203_v0  ;;  %2172 = vmatpush1.bf16.msra.mxu1 %v4905_v45  ;;  %v2438_v45 = vld [vmem:[#allocation10 + $0xc0] sm:$0xff] }
 0x183   : > { %2173 = vmatprep.subr.bf16.mxu1 %v4914_v47  ;;  %v2450_v53 = vld [vmem:[#allocation10 + $0x120] sm:$0xff] }
 0x184   : > { %2061 = vmatpush1.bf16.msra.mxu0 %v4911_v35  ;;  %v4967_v35 = vcombine.high %v2415_v31, %v2419_v32  ;;  %v4997_v58 = vcombine.high %v2446_v52, %v2450_v53 }
 0x185   : > { %2062 = vmatprep.subr.bf16.mxu0 %v4920_v36  ;;  %v2422_v36 = vld [vmem:[#allocation10 + $0x40] sm:$0xff] }
 0x186   : > { %2174 = vmatpush1.bf16.msra.mxu1 %v4913_v54  ;;  %v4972_v43 = vcombine.low %v2422_v36, %v2426_v37  ;;  %v5918_v54 = vld [vmem:[%s6546_s8 + $0x8] sm:$0xff]  }
 0x187   : > { %1875 = vmatmul.mubr.bf16.gmra.mrb[68].mxu0 %v6572_v16  ;;  %2175 = vmatprep.subr.bf16.mxu1 %v4922_v57  ;;  %v4975_v57 = vcombine.high %v2423_v49, %v2427_v51 }
 0x188   : > { %1884 = vmatprep.mubr.bf16.mxu0 %v6203_v0  ;;  %2063 = vmatpush1.bf16.msra.mxu0 %v4919_v39  ;;  %v4973_v39 = vcombine.high %v2422_v36, %v2426_v37 }
 0x189   : > { %2064 = vmatprep.subr.bf16.mxu0 %v4928_v40  ;;  %1988 = vmatmul.mubr.bf16.gmra.mrb[68].mxu1 %v6572_v16  ;;  %v4937_v16 = vcombine.low %v1483_v6, %v1487_v7  ;;  %v2430_v40 = vld [vmem:[#allocation10 + $0x80] sm:$0xff]  ;;  %v2443_v6 = vld [vmem:[#allocation10 + $0xe8] sm:$0xff] }
 0x18a   : > { %1997 = vmatprep.mubr.bf16.mxu1 %v6203_v0  ;;  %2176 = vmatpush1.bf16.msra.mxu1 %v4921_v63  ;;  %v4981_v44 = vcombine.high %v2430_v40, %v2434_v41  ;;  %v4980_v47 = vcombine.low %v2430_v40, %v2434_v41  ;;  %v2435_v63 = vld [vmem:[#allocation10 + $0xa8] sm:$0xff]  ;;  %v2462_v7 = vld [vmem:[#allocation10 + $0x180] sm:$0xff]  ;;  %v5919_v41 = vld [vmem:[%s6546_s8 + $0x10] sm:$0xff]  }
 0x18b   : > { %2177 = vmatprep.subr.bf16.mxu1 %v4930_v1  ;;  %v4996_v1 = vcombine.low %v2446_v52, %v2450_v53  ;;  %v4983_v4 = vcombine.high %v2431_v61, %v2435_v63  ;;  %v6742_v53 = vld [vmem:[#allocation10 + $0x18] sm:$0xff] }
 0x18c   : > { %2065 = vmatpush1.bf16.msra.mxu0 %v4927_v46  ;;  %v2442_v46 = vld [vmem:[#allocation10 + $0xe0] sm:$0xff] }
 0x18d   : > { %2066 = vmatprep.subr.bf16.mxu0 %v4936_v48  ;;  %v4989_v48 = vcombine.high %v2438_v45, %v2442_v46 }
 0x18e   : > { %2178 = vmatpush1.bf16.msra.mxu1 %v4929_v8  ;;  %v2466_v8 = vld [vmem:[#allocation10 + $0x1a0] sm:$0xff] }
 0x18f   : > { %1885 = vmatmul.mubr.bf16.gmra.mrb[72].mxu0 %v6577_v33  ;;  %2179 = vmatprep.subr.bf16.mxu1 %v4938_v11  ;;  %v4991_v11 = vcombine.high %v2439_v5, %v2443_v6  ;;  %v5013_v12 = vcombine.high %v2462_v7, %v2466_v8  ;;  %v5012_v23 = vcombine.low %v2462_v7, %v2466_v8  ;;  %v2453_v7 = vld [vmem:[#allocation10 + $0x138] sm:$0xff] }
 0x190   : > { %1894 = vmatprep.mubr.bf16.mxu0 %v6203_v0  ;;  %2067 = vmatpush1.bf16.msra.mxu0 %v4935_v55  ;;  %v4966_v55 = vcombine.low %v2415_v31, %v2419_v32  ;;  %v6718_v31 = vld [vmem:[#allocation10 + $0x10] sm:$0xff] }
 0x191   : > { %2068 = vmatprep.subr.bf16.mxu0 %v4944_v56  ;;  %1998 = vmatmul.mubr.bf16.gmra.mrb[72].mxu1 %v6577_v33  ;;  %v4988_v56 = vcombine.low %v2438_v45, %v2442_v46  ;;  %v6720_v32 = vld [vmem:[#allocation10 + $0x30] sm:$0xff] }
 0x192   : > { %2007 = vmatprep.mubr.bf16.mxu1 %v6203_v0  ;;  %2180 = vmatpush1.bf16.msra.mxu1 %v4937_v16  ;;  %v2447_v16 = vld [vmem:[#allocation10 + $0x108] sm:$0xff]  ;;  %v4969_v37 = vcombine.high %v6718_v31, %v6720_v32 }
 0x193   : > { %2181 = vmatprep.subr.bf16.mxu1 %v4946_v21 }
 0x194   : > { %2069 = vmatpush1.bf16.msra.mxu0 %v4943_v62  ;;  %v4974_v62 = vcombine.low %v2423_v49, %v2427_v51  ;;  %v2476_v49 = vld [vmem:[#allocation10 + $0x1f0] sm:$0xff] }
 0x195   : > { %2070 = vmatprep.subr.bf16.mxu0 %v4952_v2  ;;  %v5005_v2 = vcombine.high %v2454_v59, %v2458_v60 }
 0x196   : > { %2182 = vmatpush1.bf16.msra.mxu1 %v4945_v25 }
 0x197   : > { %1895 = vmatmul.mubr.bf16.gmra.mrb[76].mxu0 %v6584_v50  ;;  %2183 = vmatprep.subr.bf16.mxu1 %v4954_v26  ;;  %v5021_v26 = vcombine.high %v2470_v14, %v2474_v19 }
 0x198   : > { %1904 = vmatprep.mubr.bf16.mxu0 %v6203_v0  ;;  %2071 = vmatpush1.bf16.msra.mxu0 %v4951_v9  ;;  %v4982_v9 = vcombine.low %v2431_v61, %v2435_v63 }
 0x199   : > { %2072 = vmatprep.subr.bf16.mxu0 %v4960_v10  ;;  %2008 = vmatmul.mubr.bf16.gmra.mrb[76].mxu1 %v6584_v50  ;;  %v5004_v10 = vcombine.low %v2454_v59, %v2458_v60 }
 0x19a   : > { %2017 = vmatprep.mubr.bf16.mxu1 %v6203_v0  ;;  %2184 = vmatpush1.bf16.msra.mxu1 %v4953_v29  ;;  %v2459_v29 = vld [vmem:[#allocation10 + $0x168] sm:$0xff] }
 0x19b   : > { %2185 = vmatprep.subr.bf16.mxu1 %v4962_v30  ;;  %v5007_v36 = vcombine.high %v2455_v28, %v2459_v29 }
 0x19c   : > { %2073 = vmatpush1.bf16.msra.mxu0 %v4959_v20  ;;  %v2451_v20 = vld [vmem:[#allocation10 + $0x128] sm:$0xff] }
 0x19d   : > { %2804 = vmatprep.subr.bf16.mxu0 %v4965_v22  ;;  %v4999_v27 = vcombine.high %v2447_v16, %v2451_v20 }
 0x19e   : > { %2186 = vmatpush1.bf16.msra.mxu1 %v4961_v34  ;;  %v4998_v34 = vcombine.low %v2447_v16, %v2451_v20  ;;  %v6802_v20 = vld [vmem:[%s6538_s16] sm:$0xff]  }
 0x19f   : > { %1905 = vmatmul.mubr.bf16.gmra.mrb[80].mxu0 %v6595_v3  ;;  %2847 = vmatprep.subr.bf16.mxu1 %v4967_v35  ;;  %v5020_v35 = vcombine.low %v2470_v14, %v2474_v19  ;;  %v2428_v19 = vld [vmem:[#allocation10 + $0x70] sm:$0xff] }
 0x1a0   : > { %1914 = vmatprep.mubr.bf16.mxu0 %v6203_v0 }
 0x1a1   : > { %2018 = vmatmul.mubr.bf16.gmra.mrb[80].mxu1 %v6595_v3 }
 0x1a2   : > { %2027 = vmatprep.mubr.bf16.mxu1 %v6203_v0 }
 0x1a7   : > { %1915 = vmatmul.mubr.bf16.gmra.mrb[84].mxu0 %v6606_v13 }
 0x1a8   : > { %1924 = vmatprep.mubr.bf16.mxu0 %v6203_v0 }
 0x1a9   : > { %2028 = vmatmul.mubr.bf16.gmra.mrb[84].mxu1 %v6606_v13 }
 0x1aa   : > { %2037 = vmatprep.mubr.bf16.mxu1 %v6203_v0 }
 0x1af   : > { %1925 = vmatmul.mubr.bf16.gmra.mrb[88].mxu0 %v6614_v17 }
 0x1b0   : > { %1934 = vmatprep.mubr.bf16.mxu0 %v6203_v0 }
 0x1b1   : > { %2038 = vmatmul.mubr.bf16.gmra.mrb[88].mxu1 %v6614_v17 }
 0x1b2   : > { %2047 = vmatprep.mubr.bf16.mxu1 %v6203_v0 }
 0x1b7   : > { %1935 = vmatmul.mubr.bf16.gmra.mrb[92].mxu0 %v6621_v18 }
 0x1b8   : > { %2090 = vmatprep.mubr.bf16.mxu0 %v6203_v0 }
 0x1b9   : > { %2048 = vmatmul.mubr.bf16.gmra.mrb[92].mxu1 %v6621_v18 }
 0x1ba   : > { %2203 = vmatprep.mubr.bf16.mxu1 %v6203_v0 }
 0x1bf   : > { %2091 = vmatmul.mubr.bf16.vlgmr.msra.gmra.mrb[96].mxu0 %v5917_v42 }
 0x1c0   : > { %2805 = vmatpush1.bf16.msra.mxu0 %v4964_v38  ;;  %2100 = vmatprep.mubr.bf16.mxu0 %v6203_v0  ;;  %v2463_v38 = vld [vmem:[#allocation10 + $0x188] sm:$0xff] }
 0x1c1   : > { %2806 = vmatprep.subr.bf16.mxu0 %v4973_v39  ;;  %2204 = vmatmul.mubr.bf16.vlgmr.msra.gmra.mrb[96].mxu1 %v5917_v42  ;;  %v2467_v39 = vld [vmem:[#allocation10 + $0x1a8] sm:$0xff] }
 0x1c2   : > { %2213 = vmatprep.mubr.bf16.mxu1 %v6203_v0  ;;  %2848 = vmatpush1.bf16.msra.mxu1 %v4966_v55  ;;  %v5014_v51 = vcombine.low %v2463_v38, %v2467_v39 }
 0x1c3   : > { %2849 = vmatprep.subr.bf16.mxu1 %v4975_v57 }
 0x1c4   : > { %2807 = vmatpush1.bf16.msra.mxu0 %v4972_v43 }
 0x1c5   : > { %2808 = vmatprep.subr.bf16.mxu0 %v4981_v44  ;;  %v5015_v44 = vcombine.high %v2463_v38, %v2467_v39 }
 0x1c6   : > { %2850 = vmatpush1.bf16.msra.mxu1 %v4974_v62 }
 0x1c7   : > { %2101 = vmatmul.mubr.bf16.gmra.mrb[100].mxu0 %v5918_v54  ;;  %2851 = vmatprep.subr.bf16.mxu1 %v4983_v4 }
 0x1c8   : > { %2110 = vmatprep.mubr.bf16.mxu0 %v6203_v0  ;;  %2809 = vmatpush1.bf16.msra.mxu0 %v4980_v47  ;;  %v2471_v47 = vld [vmem:[#allocation10 + $0x1c8] sm:$0xff] }
 0x1c9   : > { %2810 = vmatprep.subr.bf16.mxu0 %v4989_v48  ;;  %2214 = vmatmul.mubr.bf16.gmra.mrb[100].mxu1 %v5918_v54  ;;  %v2475_v48 = vld [vmem:[#allocation10 + $0x1e8] sm:$0xff]  ;;  %v6744_v54 = vld [vmem:[#allocation10 + $0x38] sm:$0xff] }
 0x1ca   : > { %2223 = vmatprep.mubr.bf16.mxu1 %v6203_v0  ;;  %2852 = vmatpush1.bf16.msra.mxu1 %v4982_v9  ;;  %v5023_v52 = vcombine.high %v2471_v47, %v2475_v48  ;;  %v4971_v60 = vcombine.high %v6742_v53, %v6744_v54 }
 0x1cb   : > { %2853 = vmatprep.subr.bf16.mxu1 %v4991_v11 }
 0x1cc   : > { %2811 = vmatpush1.bf16.msra.mxu0 %v4988_v56  ;;  %v5920_v56 = vld [vmem:[%s6546_s8 + $0x18] sm:$0xff]  }
 0x1cd   : > { %2812 = vmatprep.subr.bf16.mxu0 %v4997_v58  ;;  %v5022_v58 = vcombine.low %v2471_v47, %v2475_v48  ;;  %v2425_v48 = vld [vmem:[#allocation10 + $0x58] sm:$0xff] }
 0x1cf   : > { %2111 = vmatmul.mubr.bf16.gmra.mrb[104].mxu0 %v6577_v33  ;;  %v4990_v33 = vcombine.low %v2439_v5, %v2443_v6 }
 0x1d0   : > { %2120 = vmatprep.mubr.bf16.mxu0 %v6203_v0  ;;  %2813 = vmatpush1.bf16.msra.mxu0 %v4996_v1 }
 0x1d1   : > { %2814 = vmatprep.subr.bf16.mxu0 %v5005_v2  ;;  %2854 = vmatpush1.bf16.msra.mxu1 %v4990_v33 }
 0x1d2   : > { %v6705_v15 = vpop.f32.mrb[0].mxu0  ;;  %2855 = vmatprep.subr.bf16.mxu1 %v4999_v27  ;;  %2224 = vmatmul.mubr.bf16.gmra.mrb[104].mxu1 %v5919_v41 }
 0x1d3   : > { %v6707_v21 = vpop.f32.mrb[1].mxu0  ;;  %2233 = vmatprep.mubr.bf16.mxu1 %v6203_v0 }
 0x1d4   : > { %v6710_v22 = vpop.f32.mrb[2].mxu0  ;;  %2815 = vmatpush1.bf16.msra.mxu0 %v5004_v10 }
 0x1d5   : > { %v1320_v24 = vpack.c.bf16 %v6710_v22, %v6705_v15  ;;  %v6714_v25 = vpop.f32.mrb[3].mxu0  ;;  %2816 = vmatprep.subr.bf16.mxu0 %v5013_v12  ;;  %2856 = vmatpush1.bf16.msra.mxu1 %v4998_v34  ;;  %v2436_v34 = vld [vmem:[#allocation10 + $0xb0] sm:$0xff]  ;;  %v2445_v12 = vld [vmem:[#allocation10 + $0xf8] sm:$0xff] }
 0x1d6   : > { %2857 = vmatprep.subr.bf16.mxu1 %v5007_v36 }
 0x1d7   : > { %2121 = vmatmul.mubr.bf16.gmra.mrb[108].mxu0 %v6584_v50  ;;  %v5006_v50 = vcombine.low %v2455_v28, %v2459_v29  ;;  %v2432_v29 = vld [vmem:[#allocation10 + $0x90] sm:$0xff] }
 0x1d8   : > { %2130 = vmatprep.mubr.bf16.mxu0 %v6203_v0  ;;  %2817 = vmatpush1.bf16.msra.mxu0 %v5012_v23  ;;  %v4968_v23 = vcombine.low %v6718_v31, %v6720_v32  ;;  %v4985_v36 = vcombine.high %v2432_v29, %v2436_v34  ;;  %v2440_v32 = vld [vmem:[#allocation10 + $0xd0] sm:$0xff]  ;;  %v4984_v41 = vcombine.low %v2432_v29, %v2436_v34 }
 0x1d9   : > { %2818 = vmatprep.subr.bf16.mxu0 %v5021_v26  ;;  %2858 = vmatpush1.bf16.msra.mxu1 %v5006_v50  ;;  %v2456_v34 = vld [vmem:[#allocation10 + $0x150] sm:$0xff] }
 0x1da   : > { %v6726_v40 = vpop.f32.mrb[4].mxu0  ;;  %2859 = vmatprep.subr.bf16.mxu1 %v5015_v44  ;;  %2234 = vmatmul.mubr.bf16.gmra.mrb[108].mxu1 %v5920_v56  ;;  %v2452_v56 = vld [vmem:[#allocation10 + $0x130] sm:$0xff] }
 0x1db   : > { %v6729_v42 = vpop.f32.mrb[5].mxu0  ;;  %2243 = vmatprep.mubr.bf16.mxu1 %v6203_v0 }
 0x1dc   : > { %v6732_v43 = vpop.f32.mrb[6].mxu0  ;;  %2819 = vmatpush1.bf16.msra.mxu0 %v5020_v35 }
 0x1dd   : > { %v1328_v45 = vpack.c.bf16 %v6732_v43, %v6726_v40  ;;  %v6736_v46 = vpop.f32.mrb[7].mxu0  ;;  %2890 = vmatprep.subr.bf16.mxu0 %v4969_v37  ;;  %2860 = vmatpush1.bf16.msra.mxu1 %v5014_v51  ;;  %v2444_v37 = vld [vmem:[#allocation10 + $0xf0] sm:$0xff]  ;;  %v2429_v51 = vld [vmem:[#allocation10 + $0x78] sm:$0xff] }
 0x1de   : > { %2861 = vmatprep.subr.bf16.mxu1 %v5023_v52  ;;  %v4993_v47 = vcombine.high %v2440_v32, %v2444_v37  ;;  %v2448_v52 = vld [vmem:[#allocation10 + $0x110] sm:$0xff] }
 0x1df   : > { %2131 = vmatmul.mubr.bf16.gmra.mrb[112].mxu0 %v6595_v3 }
 0x1e0   : > { %2140 = vmatprep.mubr.bf16.mxu0 %v6203_v0 }
 0x1e1   : > { %2862 = vmatpush1.bf16.msra.mxu1 %v5022_v58  ;;  %v4970_v58 = vcombine.low %v6742_v53, %v6744_v54  ;;  %v5000_v54 = vcombine.low %v2448_v52, %v2452_v56 }
 0x1e2   : > { %v6746_v55 = vpop.f32.mrb[8].mxu0  ;;  %2933 = vmatprep.subr.bf16.mxu1 %v4971_v60  ;;  %2244 = vmatmul.mubr.bf16.gmra.mrb[112].mxu1 %v6595_v3  ;;  %v4992_v60 = vcombine.low %v2440_v32, %v2444_v37 }
 0x1e3   : > { %v6749_v57 = vpop.f32.mrb[9].mxu0  ;;  %2253 = vmatprep.mubr.bf16.mxu1 %v6203_v0 }
 0x1e4   : > { %v6752_v59 = vpop.f32.mrb[10].mxu0 }
 0x1e5   : > { %v1336_v61 = vpack.c.bf16 %v6752_v59, %v6746_v55  ;;  %v6758_v63 = vpop.f32.mrb[11].mxu0 }
 0x1e7   : > { %2141 = vmatmul.mubr.bf16.gmra.mrb[116].mxu0 %v6606_v13 }
 0x1e8   : > { %2150 = vmatprep.mubr.bf16.mxu0 %v6203_v0 }
 0x1ea   : > { %v6764_v1 = vpop.f32.mrb[12].mxu0  ;;  %2254 = vmatmul.mubr.bf16.gmra.mrb[116].mxu1 %v6606_v13  ;;  %v2424_v13 = vld [vmem:[#allocation10 + $0x50] sm:$0xff] }
 0x1eb   : > { %v6767_v2 = vpop.f32.mrb[13].mxu0  ;;  %2263 = vmatprep.mubr.bf16.mxu1 %v6203_v0  ;;  %v4977_v28 = vcombine.high %v2424_v13, %v2428_v19  ;;  %v4976_v35 = vcombine.low %v2424_v13, %v2428_v19  ;;  %v4979_v13 = vcombine.high %v2425_v48, %v2429_v51  ;;  %v5001_v19 = vcombine.high %v2448_v52, %v2452_v56 }
 0x1ec   : > { %v6770_v4 = vpop.f32.mrb[14].mxu0 }
 0x1ed   : > { %v1344_v5 = vpack.c.bf16 %v6770_v4, %v6764_v1  ;;  %v6774_v6 = vpop.f32.mrb[15].mxu0 }
 0x1ef   : > { %2151 = vmatmul.mubr.bf16.gmra.mrb[120].mxu0 %v6614_v17 }
 0x1f0   : > { %2160 = vmatprep.mubr.bf16.mxu0 %v6203_v0 }
 0x1f2   : > { %v6780_v3 = vpop.f32.mrb[16].mxu0  ;;  %2264 = vmatmul.mubr.bf16.gmra.mrb[120].mxu1 %v6614_v17  ;;  %v2441_v17 = vld [vmem:[#allocation10 + $0xd8] sm:$0xff] }
 0x1f3   : > { %v6783_v8 = vpop.f32.mrb[17].mxu0  ;;  %2273 = vmatprep.mubr.bf16.mxu1 %v6203_v0  ;;  %v4995_v56 = vcombine.high %v2441_v17, %v2445_v12 }
 0x1f4   : > { %v6786_v9 = vpop.f32.mrb[18].mxu0 }
 0x1f5   : > { %v1352_v10 = vpack.c.bf16 %v6786_v9, %v6780_v3  ;;  %v6790_v11 = vpop.f32.mrb[19].mxu0 }
 0x1f7   : > { %2161 = vmatmul.mubr.bf16.gmra.mrb[124].mxu0 %v6621_v18 }
 0x1f8   : > { %2836 = vmatprep.mubr.bf16.mxu0 %v6203_v0 }
 0x1fa   : > { %v6796_v14 = vpop.f32.mrb[20].mxu0  ;;  %2274 = vmatmul.mubr.bf16.gmra.mrb[124].mxu1 %v6621_v18  ;;  %v4978_v18 = vcombine.low %v2425_v48, %v2429_v51  ;;  %v2464_v51 = vld [vmem:[#allocation10 + $0x190] sm:$0xff]  ;;  %v4994_v48 = vcombine.low %v2441_v17, %v2445_v12 }
 0x1fb   : > { %v6799_v16 = vpop.f32.mrb[21].mxu0  ;;  %2879 = vmatprep.mubr.bf16.mxu1 %v6203_v0 }
 0x1fc   : > { %v6805_v33 = vpop.f32.mrb[22].mxu0 }
 0x1fd   : > { %v1360_v26 = vpack.c.bf16 %v6805_v33, %v6796_v14  ;;  %v6811_v27 = vpop.f32.mrb[23].mxu0 }
 0x1ff   : > { %2837 = vmatmul.mubr.bf16.vlgmr.msra.gmra.mrb[128].mxu0 %v6802_v20 }
 0x200   : > { %2891 = vmatpush1.bf16.msra.mxu0 %v4968_v23  ;;  %2922 = vmatprep.mubr.bf16.mxu0 %v6203_v0  ;;  %v2433_v23 = vld [vmem:[#allocation10 + $0x98] sm:$0xff] }
 0x201   : > { %2892 = vmatprep.subr.bf16.mxu0 %v4977_v28  ;;  %v2437_v28 = vld [vmem:[#allocation10 + $0xb8] sm:$0xff] }
 0x202   : > { %v6817_v31 = vpop.f32.mrb[24].mxu0  ;;  %2880 = vmatmul.mubr.bf16.vlgmr.msra.gmra.mrb[128].mxu1 %v6802_v20  ;;  %v4987_v32 = vcombine.high %v2433_v23, %v2437_v28 }
 0x203   : > { %v6820_v38 = vpop.f32.mrb[25].mxu0  ;;  %2934 = vmatpush1.bf16.msra.mxu1 %v4970_v58  ;;  %2965 = vmatprep.mubr.bf16.mxu1 %v6203_v0  ;;  %v2468_v0 = vld [vmem:[#allocation10 + $0x1b0] sm:$0xff]  ;;  %v4986_v58 = vcombine.low %v2433_v23, %v2437_v28 }
 0x204   : > { %2893 = vmatpush1.bf16.msra.mxu0 %v4976_v35  ;;  %v6823_v39 = vpop.f32.mrb[26].mxu0  ;;  %v2460_v35 = vld [vmem:[#allocation10 + $0x170] sm:$0xff]  ;;  %2935 = vmatprep.subr.bf16.mxu1 %v4979_v13  ;;  %v2449_v13 = vld [vmem:[#allocation10 + $0x118] sm:$0xff] }
 0x205   : > { %v1368_v50 = vpack.c.bf16 %v6823_v39, %v6817_v31  ;;  %v6827_v44 = vpop.f32.mrb[27].mxu0  ;;  %2894 = vmatprep.subr.bf16.mxu0 %v4985_v36  ;;  %v5008_v52 = vcombine.low %v2456_v34, %v2460_v35  ;;  %v5003_v23 = vcombine.high %v2449_v13, %v2453_v7  ;;  %v5002_v12 = vcombine.low %v2449_v13, %v2453_v7  ;;  %v2473_v13 = vld [vmem:[#allocation10 + $0x1d8] sm:$0xff] }
 0x207   : > { %2936 = vmatpush1.bf16.msra.mxu1 %v4978_v18  ;;  %v5016_v18 = vcombine.low %v2464_v51, %v2468_v0 }
 0x208   : > { %2895 = vmatpush1.bf16.msra.mxu0 %v4984_v41  ;;  %2937 = vmatprep.subr.bf16.mxu1 %v4987_v32  ;;  %v2461_v32 = vld [vmem:[#allocation10 + $0x178] sm:$0xff] }
 0x209   : > { %2896 = vmatprep.subr.bf16.mxu0 %v4993_v47  ;;  %v5009_v47 = vcombine.high %v2456_v34, %v2460_v35 }
 0x20a   : > { %v6833_v29 = vpop.f32.mrb[28].mxu0 }
 0x20b   : > { %v6836_v36 = vpop.f32.mrb[29].mxu0  ;;  %2938 = vmatpush1.bf16.msra.mxu1 %v4986_v58  ;;  %v2469_v58 = vld [vmem:[#allocation10 + $0x1b8] sm:$0xff] }
 0x20c   : > { %2897 = vmatpush1.bf16.msra.mxu0 %v4992_v60  ;;  %v6839_v53 = vpop.f32.mrb[30].mxu0  ;;  %v5017_v60 = vcombine.high %v2464_v51, %v2468_v0  ;;  %2939 = vmatprep.subr.bf16.mxu1 %v4995_v56  ;;  %v2465_v0 = vld [vmem:[#allocation10 + $0x198] sm:$0xff] }
 0x20d   : > { %v6843_v41 = vpop.f32.mrb[31].mxu0  ;;  %2898 = vmatprep.subr.bf16.mxu0 %v5001_v19  ;;  %v2472_v19 = vld [vmem:[#allocation10 + $0x1d0] sm:$0xff] }
 0x20e   : > { %v5025_v35 = vcombine.high %v2472_v19, %v2476_v49  ;;  %v5024_v17 = vcombine.low %v2472_v19, %v2476_v49  ;;  %v2477_v19 = vld [vmem:[#allocation10 + $0x1f8] sm:$0xff] }
 0x20f   : > { %2940 = vmatpush1.bf16.msra.mxu1 %v4994_v48  ;;  %v8245_v48 = vmov 0.0  }
 0x210   : > { %2899 = vmatpush1.bf16.msra.mxu0 %v5000_v54  ;;  %v2457_v54 = vld [vmem:[#allocation10 + $0x158] sm:$0xff]  ;;  %2941 = vmatprep.subr.bf16.mxu1 %v5003_v23  ;;  %v5018_v23 = vcombine.low %v2465_v0, %v2469_v58 }
 0x211   : > { %2900 = vmatprep.subr.bf16.mxu0 %v5009_v47  ;;  %v5011_v51 = vcombine.high %v2457_v54, %v2461_v32  ;;  %v5019_v47 = vcombine.high %v2465_v0, %v2469_v58 }
 0x212   : > { %v6847_v62 = vpop.f32.mrb[32].mxu0 }
 0x213   : > { %8436 = vst [vmem:[#allocation25_spill] sm:$0xff] %v6847_v62  ;;  %v6849_v30 = vpop.f32.mrb[33].mxu0  ;;  %2942 = vmatpush1.bf16.msra.mxu1 %v5002_v12  ;;  %v5026_v12 = vcombine.low %v2473_v13, %v2477_v19 }
 0x214   : > { %8437 = vst [vmem:[#allocation26_spill] sm:$0xff] %v6849_v30  ;;  %2901 = vmatpush1.bf16.msra.mxu0 %v5008_v52  ;;  %v6851_v37 = vpop.f32.mrb[34].mxu0  ;;  %2943 = vmatprep.subr.bf16.mxu1 %v5011_v51 }
 0x215   : > { %8438 = vst [vmem:[#allocation27_spill] sm:$0xff] %v6851_v37  ;;  %v6855_v34 = vpop.f32.mrb[35].mxu0  ;;  %2902 = vmatprep.subr.bf16.mxu0 %v5017_v60  ;;  %v5010_v60 = vcombine.low %v2457_v54, %v2461_v32 }
 0x216   : > { %8439 = vst [vmem:[#allocation28_spill] sm:$0xff] %v6855_v34 }
 0x217   : > { %2944 = vmatpush1.bf16.msra.mxu1 %v5010_v60 }
 0x218   : > { %2903 = vmatpush1.bf16.msra.mxu0 %v5016_v18  ;;  %2945 = vmatprep.subr.bf16.mxu1 %v5019_v47 }
 0x219   : > { %2904 = vmatprep.subr.bf16.mxu0 %v5025_v35  ;;  %v5027_v35 = vcombine.high %v2473_v13, %v2477_v19 }
 0x21a   : > { %v6859_v52 = vpop.f32.mrb[36].mxu0 }
 0x21b   : > { %8440 = vst [vmem:[#allocation29_spill] sm:$0xff] %v6859_v52  ;;  %v6861_v56 = vpop.f32.mrb[37].mxu0  ;;  %2946 = vmatpush1.bf16.msra.mxu1 %v5018_v23 }
 0x21c   : > { %8441 = vst [vmem:[#allocation30_spill] sm:$0xff] %v6861_v56  ;;  %2905 = vmatpush1.bf16.msra.mxu0 %v5024_v17  ;;  %v6863_v28 = vpop.f32.mrb[38].mxu0  ;;  %2947 = vmatprep.subr.bf16.mxu1 %v5027_v35 }
 0x21d   : > { %8442 = vst [vmem:[#allocation31_spill] sm:$0xff] %v6863_v28  ;;  %v6867_v49 = vpop.f32.mrb[39].mxu0  ;;  %5342 = vmatprep.subr.bf16.mxu0 %v8245_v48 }
 0x21e   : > { %8443 = vst [vmem:[#allocation32_spill] sm:$0xff] %v6867_v49 }
 0x21f   : > { %2923 = vmatmul.mubr.bf16.vlgmr.msra.gmra.mrb[132].mxu0 %v6802_v20  ;;  %2948 = vmatpush1.bf16.msra.mxu1 %v5026_v12 }
 0x220   : > { %5362 = vmatprep.subr.bf16.mxu1 %v8245_v48  ;;  %5358 = vmatprep.mubr.msk.bf16.mxu0 %vm6205_vm0, %v8245_v48 }
 0x222   : > { %v6873_v54 = vpop.f32.mrb[40].mxu0  ;;  %2966 = vmatmul.mubr.bf16.vlgmr.msra.gmra.mrb[132].mxu1 %v6802_v20 }
 0x223   : > { %8444 = vst [vmem:[#allocation33_spill] sm:$0xff] %v6873_v54  ;;  %v6875_v32 = vpop.f32.mrb[41].mxu0  ;;  %5378 = vmatprep.mubr.msk.bf16.mxu1 %vm6205_vm0, %v8245_v48 }
 0x224   : > { %8445 = vst [vmem:[#allocation34_spill] sm:$0xff] %v6875_v32  ;;  %v6877_v17 = vpop.f32.mrb[42].mxu0 }
 0x225   : > { %8446 = vst [vmem:[#allocation35_spill] sm:$0xff] %v6877_v17  ;;  %5343 = vmatpush3.bf16.xpose.msra.mxu0 %v1320_v24  ;;  %v6884_v60 = vpop.f32.mrb[43].mxu0 }
 0x226   : > { %8447 = vst [vmem:[#allocation36_spill] sm:$0xff] %v6884_v60  ;;  %5344 = vmatprep.subr.bf16.mxu0 %v8245_v48 }
 0x22a   : > { %v6890_v0 = vpop.f32.mrb[44].mxu0 }
 0x22b   : > { %8448 = vst [vmem:[#allocation37_spill] sm:$0xff] %v6890_v0  ;;  %v6893_v58 = vpop.f32.mrb[45].mxu0 }
 0x22c   : > { %8449 = vst [vmem:[#allocation38_spill] sm:$0xff] %v6893_v58  ;;  %v6895_v13 = vpop.f32.mrb[46].mxu0 }
 0x22d   : > { %8450 = vst [vmem:[#allocation39_spill] sm:$0xff] %v6895_v13  ;;  %5345 = vmatpush3.bf16.xpose.msra.mxu0 %v1328_v45  ;;  %v6902_v22 = vpop.f32.mrb[47].mxu0 }
 0x22e   : > { %8451 = vst [vmem:[#allocation40_spill] sm:$0xff] %v6902_v22  ;;  %5346 = vmatprep.subr.bf16.mxu0 %v8245_v48 }
 0x232   : > { %v6907_v19 = vpop.f32.mrb[48].mxu0 }
 0x233   : > { %8452 = vst [vmem:[#allocation41_spill] sm:$0xff] %v6907_v19  ;;  %v6909_v20 = vpop.f32.mrb[49].mxu0 }
 0x234   : > { %8453 = vst [vmem:[#allocation42_spill] sm:$0xff] %v6909_v20  ;;  %v6911_v23 = vpop.f32.mrb[50].mxu0 }
 0x235   : > { %8454 = vst [vmem:[#allocation43_spill] sm:$0xff] %v6911_v23  ;;  %5347 = vmatpush3.bf16.xpose.msra.mxu0 %v1336_v61  ;;  %v6918_v40 = vpop.f32.mrb[51].mxu0 }
 0x236   : > { %8455 = vst [vmem:[#allocation44_spill] sm:$0xff] %v6918_v40  ;;  %5348 = vmatprep.subr.bf16.mxu0 %v8245_v48 }
 0x23a   : > { %v6923_v45 = vpop.f32.mrb[52].mxu0 }
 0x23b   : > { %8456 = vst [vmem:[#allocation45_spill] sm:$0xff] %v6923_v45  ;;  %v6925_v12 = vpop.f32.mrb[53].mxu0 }
 0x23c   : > { %8457 = vst [vmem:[#allocation46_spill] sm:$0xff] %v6925_v12  ;;  %v6927_v24 = vpop.f32.mrb[54].mxu0 }
 0x23d   : > { %8458 = vst [vmem:[#allocation47_spill] sm:$0xff] %v6927_v24  ;;  %5349 = vmatpush3.bf16.xpose.msra.mxu0 %v1344_v5  ;;  %v6934_v55 = vpop.f32.mrb[55].mxu0 }
 0x23e   : > { %8459 = vst [vmem:[#allocation48_spill] sm:$0xff] %v6934_v55  ;;  %5350 = vmatprep.subr.bf16.mxu0 %v8245_v48 }
 0x242   : > { %v6939_v61 = vpop.f32.mrb[56].mxu0 }
 0x243   : > { %8460 = vst [vmem:[#allocation49_spill] sm:$0xff] %v6939_v61  ;;  %v6941_v43 = vpop.f32.mrb[57].mxu0 }
 0x244   : > { %8461 = vst [vmem:[#allocation50_spill] sm:$0xff] %v6941_v43  ;;  %v6943_v18 = vpop.f32.mrb[58].mxu0 }
 0x245   : > { %8462 = vst [vmem:[#allocation51_spill] sm:$0xff] %v6943_v18  ;;  %5351 = vmatpush3.bf16.xpose.msra.mxu0 %v1352_v10  ;;  %v6950_v1 = vpop.f32.mrb[59].mxu0 }
 0x246   : > { %8463 = vst [vmem:[#allocation52_spill] sm:$0xff] %v6950_v1  ;;  %5352 = vmatprep.subr.bf16.mxu0 %v8245_v48 }
 0x24a   : > { %v6955_v5 = vpop.f32.mrb[60].mxu0 }
 0x24b   : > { %8464 = vst [vmem:[#allocation53_spill] sm:$0xff] %v6955_v5  ;;  %v6957_v59 = vpop.f32.mrb[61].mxu0 }
 0x24c   : > { %8465 = vst [vmem:[#allocation54_spill] sm:$0xff] %v6957_v59  ;;  %v6959_v35 = vpop.f32.mrb[62].mxu0 }
 0x24d   : > { %8466 = vst [vmem:[#allocation55_spill] sm:$0xff] %v6959_v35  ;;  %5353 = vmatpush3.bf16.xpose.msra.mxu0 %v1360_v26  ;;  %v6966_v3 = vpop.f32.mrb[63].mxu0 }
 0x24e   : > { %8467 = vst [vmem:[#allocation56_spill] sm:$0xff] %v6966_v3  ;;  %5354 = vmatprep.subr.bf16.mxu0 %v8245_v48 }
 0x252   : > { %v1866_v10 = vpop.f32.mrb[64].mxu0 }
 0x253   : > { %v6971_v4 = vpop.f32.mrb[65].mxu0 }
 0x254   : > { %v1870_v15 = vpop.f32.mrb[66].mxu0 }
 0x255   : > { %v2284_v51 = vpack.c.bf16 %v1870_v15, %v1866_v10  ;;  %5355 = vmatpush3.bf16.xpose.msra.mxu0 %v1368_v50  ;;  %v6976_v47 = vpop.f32.mrb[67].mxu0  ;;  %v8468_v50 = vpack.c.bf16 %v6839_v53, %v6833_v29 }
 0x256   : > { %5356 = vmatprep.subr.bf16.mxu0 %v8245_v48 }
 0x257   : > { %5363 = vmatpush3.bf16.msra.mxu1 %v2284_v51 }
 0x258   : > { %5364 = vmatprep.subr.bf16.mxu1 %v8245_v48 }
 0x25a   : > { %v1876_v33 = vpop.f32.mrb[68].mxu0 }
 0x25b   : > { %v6986_v26 = vpop.f32.mrb[69].mxu0 }
 0x25c   : > { %v1880_v31 = vpop.f32.mrb[70].mxu0 }
 0x25d   : > { %v2292_v39 = vpack.c.bf16 %v1880_v31, %v1876_v33  ;;  %5357 = vmatpush3.bf16.xpose.msra.mxu0 %v8468_v50  ;;  %v6991_v15 = vpop.f32.mrb[71].mxu0 }
 0x25e   : > { %5402 = vmatprep.subr.bf16.mxu0 %v8245_v48 }
 0x25f   : > { %5365 = vmatpush3.bf16.msra.mxu1 %v2292_v39 }
 0x260   : > { %5366 = vmatprep.subr.bf16.mxu1 %v8245_v48 }
 0x262   : > { %v1886_v10 = vpop.f32.mrb[72].mxu0 }
 0x263   : > { %v6997_v9 = vpop.f32.mrb[73].mxu0 }
 0x264   : > { %v1890_v7 = vpop.f32.mrb[74].mxu0 }
 0x265   : > { %v2300_v14 = vpack.c.bf16 %v1890_v7, %v1886_v10  ;;  %v6999_v33 = vpop.f32.mrb[75].mxu0 }
 0x267   : > { %5367 = vmatpush3.bf16.msra.mxu1 %v2300_v14 }
 0x268   : > { %5368 = vmatprep.subr.bf16.mxu1 %v8245_v48 }
 0x26a   : > { %v1896_v53 = vpop.f32.mrb[76].mxu0 }
 0x26b   : > { %v7004_v31 = vpop.f32.mrb[77].mxu0 }
 0x26c   : > { %v1900_v50 = vpop.f32.mrb[78].mxu0 }
 0x26d   : > { %v2308_v39 = vpack.c.bf16 %v1900_v50, %v1896_v53  ;;  %v7006_v51 = vpop.f32.mrb[79].mxu0 }
 0x26f   : > { %5369 = vmatpush3.bf16.msra.mxu1 %v2308_v39 }
 0x270   : > { %5370 = vmatprep.subr.bf16.mxu1 %v8245_v48 }
 0x272   : > { %v1906_v7 = vpop.f32.mrb[80].mxu0 }
 0x273   : > { %v7011_v10 = vpop.f32.mrb[81].mxu0 }
 0x274   : > { %v1910_v29 = vpop.f32.mrb[82].mxu0 }
 0x275   : > { %v2316_v14 = vpack.c.bf16 %v1910_v29, %v1906_v7  ;;  %v7013_v3 = vpop.f32.mrb[83].mxu0 }
 0x277   : > { %5371 = vmatpush3.bf16.msra.mxu1 %v2316_v14 }
 0x278   : > { %5372 = vmatprep.subr.bf16.mxu1 %v8245_v48 }
 0x27a   : > { %v1916_v53 = vpop.f32.mrb[84].mxu0 }
 0x27b   : > { %v7018_v50 = vpop.f32.mrb[85].mxu0 }
 0x27c   : > { %v1920_v59 = vpop.f32.mrb[86].mxu0 }
 0x27d   : > { %v2324_v39 = vpack.c.bf16 %v1920_v59, %v1916_v53  ;;  %v7020_v1 = vpop.f32.mrb[87].mxu0 }
 0x27f   : > { %5373 = vmatpush3.bf16.msra.mxu1 %v2324_v39 }
 0x280   : > { %5374 = vmatprep.subr.bf16.mxu1 %v8245_v48 }
 0x282   : > { %v1926_v29 = vpop.f32.mrb[88].mxu0 }
 0x283   : > { %v7025_v7 = vpop.f32.mrb[89].mxu0 }
 0x284   : > { %v1930_v43 = vpop.f32.mrb[90].mxu0 }
 0x285   : > { %v2332_v14 = vpack.c.bf16 %v1930_v43, %v1926_v29  ;;  %v7027_v55 = vpop.f32.mrb[91].mxu0 }
 0x287   : > { %5375 = vmatpush3.bf16.msra.mxu1 %v2332_v14 }
 0x288   : > { %5376 = vmatprep.subr.bf16.mxu1 %v8245_v48 }
 0x28a   : > { %v1936_v59 = vpop.f32.mrb[92].mxu0 }
 0x28b   : > { %v7032_v53 = vpop.f32.mrb[93].mxu0 }
 0x28c   : > { %v1940_v12 = vpop.f32.mrb[94].mxu0 }
 0x28d   : > { %v2340_v39 = vpack.c.bf16 %v1940_v12, %v1936_v59  ;;  %v7034_v40 = vpop.f32.mrb[95].mxu0 }
 0x28f   : > { %5377 = vmatpush3.bf16.msra.mxu1 %v2340_v39 }
 0x290   : > { %5382 = vmatprep.subr.bf16.mxu1 %v8245_v48 }
 0x292   : > { %v7039_v43 = vpop.f32.mrb[96].mxu0 }
 0x293   : > { %8469 = vst [vmem:[#allocation57_spill] sm:$0xff] %v7039_v43  ;;  %v7041_v29 = vpop.f32.mrb[97].mxu0 }
 0x294   : > { %8470 = vst [vmem:[#allocation58_spill] sm:$0xff] %v7041_v29  ;;  %v7043_v14 = vpop.f32.mrb[98].mxu0 }
 0x295   : > { %8471 = vst [vmem:[#allocation59_spill] sm:$0xff] %v7043_v14  ;;  %v7047_v22 = vpop.f32.mrb[99].mxu0 }
 0x296   : > { %8472 = vst [vmem:[#allocation60_spill] sm:$0xff] %v7047_v22 }
 0x29a   : > { %v7051_v59 = vpop.f32.mrb[100].mxu0 }
 0x29b   : > { %8473 = vst [vmem:[#allocation61_spill] sm:$0xff] %v7051_v59  ;;  %v7053_v58 = vpop.f32.mrb[101].mxu0 }
 0x29c   : > { %8474 = vst [vmem:[#allocation62_spill] sm:$0xff] %v7053_v58  ;;  %v7055_v39 = vpop.f32.mrb[102].mxu0 }
 0x29d   : > { %8475 = vst [vmem:[#allocation63_spill] sm:$0xff] %v7055_v39  ;;  %v7059_v32 = vpop.f32.mrb[103].mxu0 }
 0x29e   : > { %8476 = vst [vmem:[#allocation64_spill] sm:$0xff] %v7059_v32 }
 0x2a2   : > { %v7063_v20 = vpop.f32.mrb[104].mxu0 }
 0x2a3   : > { %8477 = vst [vmem:[#allocation65_spill] sm:$0xff] %v7063_v20  ;;  %v7065_v56 = vpop.f32.mrb[105].mxu0 }
 0x2a4   : > { %8478 = vst [vmem:[#allocation66_spill] sm:$0xff] %v7065_v56  ;;  %v7067_v49 = vpop.f32.mrb[106].mxu0 }
 0x2a5   : > { %8479 = vst [vmem:[#allocation67_spill] sm:$0xff] %v7067_v49  ;;  %v7071_v30 = vpop.f32.mrb[107].mxu0 }
 0x2a6   : > { %8480 = vst [vmem:[#allocation68_spill] sm:$0xff] %v7071_v30 }
 0x2aa   : > { %v7075_v48 = vpop.f32.mrb[108].mxu0 }
 0x2ab   : > { %8481 = vst [vmem:[#allocation69_spill] sm:$0xff] %v7075_v48  ;;  %v7077_v29 = vpop.f32.mrb[109].mxu0 }
 0x2ac   : > { %8482 = vst [vmem:[#allocation70_spill] sm:$0xff] %v7077_v29  ;;  %v7079_v22 = vpop.f32.mrb[110].mxu0 }
 0x2ad   : > { %8483 = vst [vmem:[#allocation71_spill] sm:$0xff] %v7079_v22  ;;  %v7083_v58 = vpop.f32.mrb[111].mxu0 }
 0x2ae   : > { %8484 = vst [vmem:[#allocation72_spill] sm:$0xff] %v7083_v58  ;;  %v8502_v58 = vmov 0.0  }
 0x2b2   : > { %v7087_v12 = vpop.f32.mrb[112].mxu0 }
 0x2b3   : > { %8485 = vst [vmem:[#allocation73_spill] sm:$0xff] %v7087_v12  ;;  %v7089_v5 = vpop.f32.mrb[113].mxu0 }
 0x2b4   : > { %8486 = vst [vmem:[#allocation74_spill] sm:$0xff] %v7089_v5  ;;  %v7091_v35 = vpop.f32.mrb[114].mxu0 }
 0x2b5   : > { %8487 = vst [vmem:[#allocation75_spill] sm:$0xff] %v7091_v35  ;;  %v7095_v56 = vpop.f32.mrb[115].mxu0 }
 0x2b6   : > { %8488 = vst [vmem:[#allocation76_spill] sm:$0xff] %v7095_v56 }
 0x2ba   : > { %v7099_v60 = vpop.f32.mrb[116].mxu0 }
 0x2bb   : > { %8489 = vst [vmem:[#allocation77_spill] sm:$0xff] %v7099_v60  ;;  %v7101_v61 = vpop.f32.mrb[117].mxu0 }
 0x2bc   : > { %8490 = vst [vmem:[#allocation78_spill] sm:$0xff] %v7101_v61  ;;  %v7103_v18 = vpop.f32.mrb[118].mxu0 }
 0x2bd   : > { %8491 = vst [vmem:[#allocation79_spill] sm:$0xff] %v7103_v18  ;;  %v7107_v29 = vpop.f32.mrb[119].mxu0 }
 0x2be   : > { %8492 = vst [vmem:[#allocation80_spill] sm:$0xff] %v7107_v29  ;;  %v8503_v29 = vpack.c.bf16 %v6991_v15, %v6986_v26 }
 0x2c2   : > { %v7111_v34 = vpop.f32.mrb[120].mxu0 }
 0x2c3   : > { %8493 = vst [vmem:[#allocation81_spill] sm:$0xff] %v7111_v34  ;;  %v7113_v45 = vpop.f32.mrb[121].mxu0 }
 0x2c4   : > { %8494 = vst [vmem:[#allocation82_spill] sm:$0xff] %v7113_v45  ;;  %v7115_v24 = vpop.f32.mrb[122].mxu0 }
 0x2c5   : > { %8495 = vst [vmem:[#allocation83_spill] sm:$0xff] %v7115_v24  ;;  %v7119_v5 = vpop.f32.mrb[123].mxu0 }
 0x2c6   : > { %8496 = vst [vmem:[#allocation84_spill] sm:$0xff] %v7119_v5  ;;  %v8501_v5 = vpack.c.bf16 %v6976_v47, %v6971_v4  ;;  %v8506_v47 = vpack.c.bf16 %v7013_v3, %v7011_v10  ;;  %v8508_v4 = vpack.c.bf16 %v7027_v55, %v7025_v7  ;;  %v8511_v3 = vpack.c.bf16 %v7034_v40, %v7032_v53 }
 0x2ca   : > { %v7123_v32 = vpop.f32.mrb[124].mxu0 }
 0x2cb   : > { %8497 = vst [vmem:[#allocation85_spill] sm:$0xff] %v7123_v32  ;;  %v7125_v19 = vpop.f32.mrb[125].mxu0 }
 0x2cc   : > { %8498 = vst [vmem:[#allocation86_spill] sm:$0xff] %v7125_v19  ;;  %v7127_v23 = vpop.f32.mrb[126].mxu0 }
 0x2cd   : > { %8499 = vst [vmem:[#allocation87_spill] sm:$0xff] %v7127_v23  ;;  %v7131_v61 = vpop.f32.mrb[127].mxu0 }
 0x2ce   : > { %8500 = vst [vmem:[#allocation88_spill] sm:$0xff] %v7131_v61 }
 0x2d2   : > { %v2838_v30 = vpop.f32.mrb[128].mxu0 }
 0x2d3   : > { %v7135_v0 = vpop.f32.mrb[129].mxu0 }
 0x2d4   : > { %v2842_v13 = vpop.f32.mrb[130].mxu0 }
 0x2d5   : > { %v2976_v54 = vpack.c.bf16 %v2842_v13, %v2838_v30  ;;  %v7137_v56 = vpop.f32.mrb[131].mxu0  ;;  %v8504_v30 = vpack.c.bf16 %v6999_v33, %v6997_v9  ;;  %v8507_v13 = vpack.c.bf16 %v7020_v1, %v7018_v50 }
 0x2d7   : > { %5359 = vmatmul.mubr.bf16.vlgmr.msra.gmra.mrb[136].mxu0 %v2976_v54  ;;  %v8505_v54 = vpack.c.bf16 %v7006_v51, %v7004_v31  ;;  %v2984_v51 = vlaneseq  ;;  %v6206_v31 = vmov -1e+30  }
 0x2d8   : > { %5403 = vmatpush3.bf16.msra.mxu0 %v8501_v5  ;;  %5418 = vmatprep.mubr.msk.bf16.mxu0 %vm6205_vm0, %v8502_v58 }
 0x2d9   : > { %5404 = vmatprep.subr.bf16.mxu0 %v8502_v58  ;;  %v2985_v33 = vand.u32 127, %v2984_v51 }
 0x2db   : > { %vm2986_vm1 = vcmp.lt.s32.totalorder %v2985_v33, 8 }
 0x2dc   : > { %5405 = vmatpush3.bf16.msra.mxu0 %v8503_v29  ;;  %v7187_v10 = vsel %vm2986_vm1, 0.0, %v6206_v31 }
 0x2dd   : > { %5406 = vmatprep.subr.bf16.mxu0 %v8502_v58 }
 0x2e0   : > { %5407 = vmatpush3.bf16.msra.mxu0 %v8504_v30 }
 0x2e1   : > { %5408 = vmatprep.subr.bf16.mxu0 %v8502_v58 }
 0x2e4   : > { %5409 = vmatpush3.bf16.msra.mxu0 %v8505_v54  ;;  %v7197_v54 = vpop.f32.mrb[0].mxu1 }
 0x2e5   : > { %5410 = vmatprep.subr.bf16.mxu0 %v8502_v58 }
 0x2e8   : > { %5411 = vmatpush3.bf16.msra.mxu0 %v8506_v47  ;;  %v7199_v47 = vpop.f32.mrb[1].mxu1 }
 0x2e9   : > { %5412 = vmatprep.subr.bf16.mxu0 %v8502_v58  ;;  %8514 = vst [vmem:[#allocation93_spill] sm:$0xff] %v7199_v47 }
 0x2ec   : > { %5413 = vmatpush3.bf16.msra.mxu0 %v8507_v13  ;;  %v7201_v13 = vpop.f32.mrb[2].mxu1 }
 0x2ed   : > { %5414 = vmatprep.subr.bf16.mxu0 %v8502_v58 }
 0x2f0   : > { %5415 = vmatpush3.bf16.msra.mxu0 %v8508_v4 }
 0x2f1   : > { %5416 = vmatprep.subr.bf16.mxu0 %v8502_v58 }
 0x2f2   : > { %v7171_v5 = vpop.f32.mrb[132].mxu0 }
 0x2f3   : > { %8509 = vst [vmem:[#allocation89_spill] sm:$0xff] %v7171_v5  ;;  %v7173_v9 = vpop.f32.mrb[133].mxu0 }
 0x2f4   : > { %8510 = vst [vmem:[#allocation90_spill] sm:$0xff] %v7173_v9  ;;  %5417 = vmatpush3.bf16.msra.mxu0 %v8511_v3  ;;  %v7178_v26 = vpop.f32.mrb[134].mxu0  ;;  %v7205_v3 = vpop.f32.mrb[3].mxu1 }
 0x2f5   : > { %8512 = vst [vmem:[#allocation91_spill] sm:$0xff] %v7178_v26  ;;  %v7182_v15 = vpop.f32.mrb[135].mxu0  ;;  %5422 = vmatprep.subr.bf16.mxu0 %v8502_v58  ;;  %8515 = vst [vmem:[#allocation94_spill] sm:$0xff] %v7205_v3  ;;  %v7209_v33 = vpop.f32.mrb[4].mxu1 }
 0x2f6   : > { %8513 = vst [vmem:[#allocation92_spill] sm:$0xff] %v7182_v15  ;;  %v7211_v31 = vpop.f32.mrb[5].mxu1 }
 0x2f7   : > { %8516 = vst [vmem:[#allocation95_spill] sm:$0xff] %v7211_v31 }
 0x3aa   : > { %v3038_v40 = vpop.f32.mrb[136].mxu0 }
 0x3ab   : > { %v7190_v50 = vadd.f32 %v3038_v40, %v7187_v10  ;;  %v5360_v7 = vpop.f32.mrb[137].mxu0  ;;  %v7213_v40 = vpop.f32.mrb[6].mxu1 }
 0x3ac   : > { %v3041_v53 = vpop.f32.mrb[138].mxu0 }
 0x3ad   : > { %3045 = vmax.xlane.f32.xlu0 %v7190_v50  ;;  %v5361_v29 = vpop.f32.mrb[139].mxu0  ;;  %v7194_v30 = vadd.f32 %v3041_v53, %v7187_v10  ;;  %v7217_v53 = vpop.f32.mrb[7].mxu1 }
 0x3ae   : > { %8517 = vst [vmem:[#allocation96_spill] sm:$0xff] %v7217_v53  ;;  %v7221_v55 = vpop.f32.mrb[8].mxu1 }
 0x3af   : > { %v7223_v1 = vpop.f32.mrb[9].mxu1 }
 0x3b0   : > { %8518 = vst [vmem:[#allocation97_spill] sm:$0xff] %v7223_v1  ;;  %v7225_v4 = vpop.f32.mrb[10].mxu1 }
 0x3b1   : > { %3047 = vmax.xlane.f32.xlu0 %v7194_v30  ;;  %v7229_v45 = vpop.f32.mrb[11].mxu1 }
 0x3b2   : > { %8519 = vst [vmem:[#allocation98_spill] sm:$0xff] %v7229_v45  ;;  %v7233_v7 = vpop.f32.mrb[12].mxu1 }
 0x3b3   : > { %v7235_v15 = vpop.f32.mrb[13].mxu1 }
 0x3b4   : > { %8520 = vst [vmem:[#allocation99_spill] sm:$0xff] %v7235_v15  ;;  %v7237_v19 = vpop.f32.mrb[14].mxu1 }
 0x3b5   : > { %v7241_v61 = vpop.f32.mrb[15].mxu1 }
 0x3b6   : > { %8521 = vst [vmem:[#allocation100_spill] sm:$0xff] %v7241_v61  ;;  %v7245_v51 = vpop.f32.mrb[16].mxu1 }
 0x3b7   : > { %v7247_v26 = vpop.f32.mrb[17].mxu1 }
 0x3b8   : > { %8522 = vst [vmem:[#allocation101_spill] sm:$0xff] %v7247_v26  ;;  %v7249_v17 = vpop.f32.mrb[18].mxu1 }
 0x3b9   : > { %v7253_v52 = vpop.f32.mrb[19].mxu1 }
 0x3ba   : > { %8523 = vst [vmem:[#allocation102_spill] sm:$0xff] %v7253_v52  ;;  %v7257_v29 = vpop.f32.mrb[20].mxu1 }
 0x3bb   : > { %v7259_v62 = vpop.f32.mrb[21].mxu1 }
 0x3bc   : > { %8524 = vst [vmem:[#allocation103_spill] sm:$0xff] %v7259_v62  ;;  %v7261_v37 = vpop.f32.mrb[22].mxu1 }
 0x3bd   : > { %v7265_v32 = vpop.f32.mrb[23].mxu1 }
 0x3be   : > { %8525 = vst [vmem:[#allocation104_spill] sm:$0xff] %v7265_v32  ;;  %v7269_v9 = vpop.f32.mrb[24].mxu1 }
 0x3bf   : > { %8526 = vst [vmem:[#allocation105_spill] sm:$0xff] %v7269_v9  ;;  %v7271_v34 = vpop.f32.mrb[25].mxu1 }
 0x3c0   : > { %8527 = vst [vmem:[#allocation106_spill] sm:$0xff] %v7271_v34  ;;  %v7273_v24 = vpop.f32.mrb[26].mxu1 }
 0x3c1   : > { %v7277_v60 = vpop.f32.mrb[27].mxu1 }
 0x3c2   : > { %8528 = vst [vmem:[#allocation107_spill] sm:$0xff] %v7277_v60  ;;  %v7281_v5 = vpop.f32.mrb[28].mxu1 }
 0x3c3   : > { %8529 = vst [vmem:[#allocation108_spill] sm:$0xff] %v7281_v5  ;;  %v7283_v12 = vpop.f32.mrb[29].mxu1 }
 0x3c4   : > { %8530 = vst [vmem:[#allocation109_spill] sm:$0xff] %v7283_v12  ;;  %v7285_v35 = vpop.f32.mrb[30].mxu1 }
 0x3c5   : > { %8531 = vst [vmem:[#allocation110_spill] sm:$0xff] %v7285_v35  ;;  %v7289_v48 = vpop.f32.mrb[31].mxu1 }
 0x3c6   : > { %8532 = vst [vmem:[#allocation111_spill] sm:$0xff] %v7289_v48  ;;  %v7293_v28 = vpop.f32.mrb[32].mxu1 }
 0x3c7   : > { %8533 = vst [vmem:[#allocation112_spill] sm:$0xff] %v7293_v28  ;;  %v7295_v20 = vpop.f32.mrb[33].mxu1 }
 0x3c8   : > { %8534 = vst [vmem:[#allocation113_spill] sm:$0xff] %v7295_v20  ;;  %v7297_v49 = vpop.f32.mrb[34].mxu1 }
 0x3c9   : > { %8535 = vst [vmem:[#allocation114_spill] sm:$0xff] %v7297_v49  ;;  %v7301_v59 = vpop.f32.mrb[35].mxu1 }
 0x3ca   : > { %8536 = vst [vmem:[#allocation115_spill] sm:$0xff] %v7301_v59  ;;  %v7305_v23 = vpop.f32.mrb[36].mxu1 }
 0x3cb   : > { %8537 = vst [vmem:[#allocation116_spill] sm:$0xff] %v7305_v23  ;;  %v7307_v43 = vpop.f32.mrb[37].mxu1 }
 0x3cc   : > { %8538 = vst [vmem:[#allocation117_spill] sm:$0xff] %v7307_v43  ;;  %v7309_v14 = vpop.f32.mrb[38].mxu1 }
 0x3cd   : > { %8539 = vst [vmem:[#allocation118_spill] sm:$0xff] %v7309_v14  ;;  %v7313_v12 = vpop.f32.mrb[39].mxu1 }
 0x3ce   : > { %8540 = vst [vmem:[#allocation119_spill] sm:$0xff] %v7313_v12  ;;  %v7317_v18 = vpop.f32.mrb[40].mxu1 }
 0x3cf   : > { %8541 = vst [vmem:[#allocation120_spill] sm:$0xff] %v7317_v18  ;;  %v7319_v28 = vpop.f32.mrb[41].mxu1 }
 0x3d0   : > { %8542 = vst [vmem:[#allocation121_spill] sm:$0xff] %v7319_v28  ;;  %v7321_v49 = vpop.f32.mrb[42].mxu1 }
 0x3d1   : > { %8543 = vst [vmem:[#allocation122_spill] sm:$0xff] %v7321_v49  ;;  %v7325_v20 = vpop.f32.mrb[43].mxu1 }
 0x3d2   : > { %8544 = vst [vmem:[#allocation123_spill] sm:$0xff] %v7325_v20  ;;  %v7329_v22 = vpop.f32.mrb[44].mxu1 }
 0x3d3   : > { %8545 = vst [vmem:[#allocation124_spill] sm:$0xff] %v7329_v22  ;;  %v7331_v23 = vpop.f32.mrb[45].mxu1 }
 0x3d4   : > { %8546 = vst [vmem:[#allocation125_spill] sm:$0xff] %v7331_v23  ;;  %v7333_v14 = vpop.f32.mrb[46].mxu1 }
 0x3d5   : > { %8547 = vst [vmem:[#allocation126_spill] sm:$0xff] %v7333_v14  ;;  %v7337_v43 = vpop.f32.mrb[47].mxu1 }
 0x3d6   : > { %8548 = vst [vmem:[#allocation127_spill] sm:$0xff] %v7337_v43  ;;  %v7341_v39 = vpop.f32.mrb[48].mxu1 }
 0x3d7   : > { %8549 = vst [vmem:[#allocation128_spill] sm:$0xff] %v7341_v39  ;;  %v7351_v12 = vpop.f32.mrb[49].mxu1 }
 0x3d8   : > { %8550 = vst [vmem:[#allocation129_spill] sm:$0xff] %v7351_v12  ;;  %v7353_v23 = vpop.f32.mrb[50].mxu1 }
 0x3d9   : > { %8551 = vst [vmem:[#allocation130_spill] sm:$0xff] %v7353_v23 }
 0x43a   : > { %v3046_v18 = vpop.xlane.xlu0 %3045 }
 0x43b   : > { %v3049_v49 = vsub.f32 %v7190_v50, %v3046_v18  ;;  %v7357_v18 = vpop.f32.mrb[51].mxu1 }
 0x43c   : > { %8552 = vst [vmem:[#allocation131_spill] sm:$0xff] %v7357_v18 }
 0x43d   : > { %v3051_v59 = vmul.f32 1.442695, %v3049_v49 }
 0x43e   : > { %v3048_v28 = vpop.xlane.xlu0 %3047 }
 0x43f   : > { %5853 = vpow2.f32 %v3051_v59  ;;  %v3050_v20 = vsub.f32 %v7194_v30, %v3048_v28 }
 0x441   : > { %v3053_v34 = vmul.f32 1.442695, %v3050_v20 }
 0x443   : > { %5855 = vpow2.f32 %v3053_v34  ;;  %v7361_v34 = vpop.f32.mrb[52].mxu1 }
 0x444   : > { %8553 = vst [vmem:[#allocation132_spill] sm:$0xff] %v7361_v34  ;;  %v7363_v20 = vpop.f32.mrb[53].mxu1 }
 0x445   : > { %8554 = vst [vmem:[#allocation133_spill] sm:$0xff] %v7363_v20  ;;  %v7365_v59 = vpop.f32.mrb[54].mxu1 }
 0x446   : > { %8555 = vst [vmem:[#allocation134_spill] sm:$0xff] %v7365_v59  ;;  %v7369_v30 = vpop.f32.mrb[55].mxu1 }
 0x447   : > { %8556 = vst [vmem:[#allocation135_spill] sm:$0xff] %v7369_v30  ;;  %v7373_v49 = vpop.f32.mrb[56].mxu1 }
 0x448   : > { %8557 = vst [vmem:[#allocation136_spill] sm:$0xff] %v7373_v49  ;;  %v7375_v39 = vpop.f32.mrb[57].mxu1 }
 0x449   : > { %v7345_v60 = vpop.eup %5853  ;;  %8558 = vst [vmem:[#allocation137_spill] sm:$0xff] %v7375_v39  ;;  %v7377_v23 = vpop.f32.mrb[58].mxu1 }
 0x44a   : > { %3055 = vadd.xlane.f32.xlu1 %v7345_v60  ;;  %8559 = vst [vmem:[#allocation138_spill] sm:$0xff] %v7377_v23  ;;  %v7381_v12 = vpop.f32.mrb[59].mxu1 }
 0x44b   : > { %8560 = vst [vmem:[#allocation139_spill] sm:$0xff] %v7381_v12  ;;  %v7385_v50 = vpop.f32.mrb[60].mxu1 }
 0x44c   : > { %8561 = vst [vmem:[#allocation140_spill] sm:$0xff] %v7385_v50  ;;  %v7387_v34 = vpop.f32.mrb[61].mxu1 }
 0x44d   : > { %v7348_v48 = vpop.eup %5855  ;;  %8562 = vst [vmem:[#allocation141_spill] sm:$0xff] %v7387_v34  ;;  %v7389_v59 = vpop.f32.mrb[62].mxu1 }
 0x44e   : > { %3057 = vadd.xlane.f32.xlu1 %v7348_v48  ;;  %8563 = vst [vmem:[#allocation142_spill] sm:$0xff] %v7389_v59  ;;  %v7393_v20 = vpop.f32.mrb[63].mxu1 }
 0x44f   : > { %8564 = vst [vmem:[#allocation143_spill] sm:$0xff] %v7393_v20  ;;  %v7397_v28 = vpop.f32.mrb[64].mxu1 }
 0x450   : > { %v7399_v49 = vpop.f32.mrb[65].mxu1 }
 0x451   : > { %8565 = vst [vmem:[#allocation144_spill] sm:$0xff] %v7399_v49  ;;  %v7401_v23 = vpop.f32.mrb[66].mxu1 }
 0x452   : > { %v7405_v39 = vpop.f32.mrb[67].mxu1 }
 0x453   : > { %8566 = vst [vmem:[#allocation145_spill] sm:$0xff] %v7405_v39  ;;  %v7409_v43 = vpop.f32.mrb[68].mxu1 }
 0x454   : > { %v7411_v50 = vpop.f32.mrb[69].mxu1 }
 0x455   : > { %8567 = vst [vmem:[#allocation146_spill] sm:$0xff] %v7411_v50  ;;  %v7413_v59 = vpop.f32.mrb[70].mxu1 }
 0x456   : > { %v7417_v34 = vpop.f32.mrb[71].mxu1 }
 0x457   : > { %8568 = vst [vmem:[#allocation147_spill] sm:$0xff] %v7417_v34  ;;  %v7421_v18 = vpop.f32.mrb[72].mxu1 }
 0x458   : > { %v7423_v22 = vpop.f32.mrb[73].mxu1 }
 0x459   : > { %8569 = vst [vmem:[#allocation148_spill] sm:$0xff] %v7423_v22  ;;  %v7425_v14 = vpop.f32.mrb[74].mxu1 }
 0x45a   : > { %v7429_v62 = vpop.f32.mrb[75].mxu1 }
 0x45b   : > { %8570 = vst [vmem:[#allocation149_spill] sm:$0xff] %v7429_v62  ;;  %v7433_v30 = vpop.f32.mrb[76].mxu1 }
 0x45c   : > { %v7435_v26 = vpop.f32.mrb[77].mxu1 }
 0x45d   : > { %8571 = vst [vmem:[#allocation150_spill] sm:$0xff] %v7435_v26  ;;  %v7437_v52 = vpop.f32.mrb[78].mxu1 }
 0x45e   : > { %v7441_v15 = vpop.f32.mrb[79].mxu1 }
 0x45f   : > { %8572 = vst [vmem:[#allocation151_spill] sm:$0xff] %v7441_v15  ;;  %v7445_v12 = vpop.f32.mrb[80].mxu1 }
 0x460   : > { %v7447_v1 = vpop.f32.mrb[81].mxu1 }
 0x461   : > { %8573 = vst [vmem:[#allocation152_spill] sm:$0xff] %v7447_v1  ;;  %v7449_v45 = vpop.f32.mrb[82].mxu1 }
 0x462   : > { %v7453_v31 = vpop.f32.mrb[83].mxu1 }
 0x463   : > { %8574 = vst [vmem:[#allocation153_spill] sm:$0xff] %v7453_v31  ;;  %v7457_v20 = vpop.f32.mrb[84].mxu1 }
 0x464   : > { %v7459_v47 = vpop.f32.mrb[85].mxu1 }
 0x465   : > { %8575 = vst [vmem:[#allocation154_spill] sm:$0xff] %v7459_v47  ;;  %v7461_v3 = vpop.f32.mrb[86].mxu1 }
 0x466   : > { %v7465_v26 = vpop.f32.mrb[87].mxu1 }
 0x467   : > { %8576 = vst [vmem:[#allocation155_spill] sm:$0xff] %v7465_v26  ;;  %v7469_v32 = vpop.f32.mrb[88].mxu1 }
 0x468   : > { %v7471_v22 = vpop.f32.mrb[89].mxu1 }
 0x469   : > { %8577 = vst [vmem:[#allocation156_spill] sm:$0xff] %v7471_v22  ;;  %v7473_v62 = vpop.f32.mrb[90].mxu1 }
 0x46a   : > { %v7477_v1 = vpop.f32.mrb[91].mxu1 }
 0x46b   : > { %8578 = vst [vmem:[#allocation157_spill] sm:$0xff] %v7477_v1  ;;  %v7481_v61 = vpop.f32.mrb[92].mxu1 }
 0x46c   : > { %v7483_v50 = vpop.f32.mrb[93].mxu1 }
 0x46d   : > { %8579 = vst [vmem:[#allocation158_spill] sm:$0xff] %v7483_v50  ;;  %v7485_v34 = vpop.f32.mrb[94].mxu1 }
 0x46e   : > { %v7489_v47 = vpop.f32.mrb[95].mxu1 }
 0x46f   : > { %8580 = vst [vmem:[#allocation159_spill] sm:$0xff] %v7489_v47  ;;  %v7493_v53 = vpop.f32.mrb[96].mxu1 }
 0x470   : > { %8581 = vst [vmem:[#allocation160_spill] sm:$0xff] %v7493_v53  ;;  %v7495_v49 = vpop.f32.mrb[97].mxu1 }
 0x471   : > { %8582 = vst [vmem:[#allocation161_spill] sm:$0xff] %v7495_v49  ;;  %v7497_v39 = vpop.f32.mrb[98].mxu1 }
 0x472   : > { %8583 = vst [vmem:[#allocation162_spill] sm:$0xff] %v7497_v39  ;;  %v7501_v22 = vpop.f32.mrb[99].mxu1 }
 0x473   : > { %8584 = vst [vmem:[#allocation163_spill] sm:$0xff] %v7501_v22  ;;  %v7505_v15 = vpop.f32.mrb[100].mxu1 }
 0x474   : > { %8585 = vst [vmem:[#allocation164_spill] sm:$0xff] %v7505_v15  ;;  %v7507_v5 = vpop.f32.mrb[101].mxu1 }
 0x475   : > { %8586 = vst [vmem:[#allocation165_spill] sm:$0xff] %v7507_v5  ;;  %v7509_v35 = vpop.f32.mrb[102].mxu1 }
 0x476   : > { %8587 = vst [vmem:[#allocation166_spill] sm:$0xff] %v7509_v35  ;;  %v7513_v50 = vpop.f32.mrb[103].mxu1 }
 0x477   : > { %8588 = vst [vmem:[#allocation167_spill] sm:$0xff] %v7513_v50  ;;  %v7517_v31 = vpop.f32.mrb[104].mxu1 }
 0x478   : > { %8589 = vst [vmem:[#allocation168_spill] sm:$0xff] %v7517_v31  ;;  %v7519_v53 = vpop.f32.mrb[105].mxu1 }
 0x479   : > { %8590 = vst [vmem:[#allocation169_spill] sm:$0xff] %v7519_v53  ;;  %v7521_v39 = vpop.f32.mrb[106].mxu1 }
 0x47a   : > { %8591 = vst [vmem:[#allocation170_spill] sm:$0xff] %v7521_v39  ;;  %v7525_v49 = vpop.f32.mrb[107].mxu1 }
 0x47b   : > { %8592 = vst [vmem:[#allocation171_spill] sm:$0xff] %v7525_v49  ;;  %v7529_v26 = vpop.f32.mrb[108].mxu1 }
 0x47c   : > { %8593 = vst [vmem:[#allocation172_spill] sm:$0xff] %v7529_v26  ;;  %v7531_v15 = vpop.f32.mrb[109].mxu1 }
 0x47d   : > { %8594 = vst [vmem:[#allocation173_spill] sm:$0xff] %v7531_v15  ;;  %v7533_v35 = vpop.f32.mrb[110].mxu1 }
 0x47e   : > { %8595 = vst [vmem:[#allocation174_spill] sm:$0xff] %v7533_v35  ;;  %v7537_v5 = vpop.f32.mrb[111].mxu1 }
 0x47f   : > { %8596 = vst [vmem:[#allocation175_spill] sm:$0xff] %v7537_v5  ;;  %v7541_v1 = vpop.f32.mrb[112].mxu1 }
 0x480   : > { %8597 = vst [vmem:[#allocation176_spill] sm:$0xff] %v7541_v1  ;;  %v7543_v31 = vpop.f32.mrb[113].mxu1 }
 0x481   : > { %8598 = vst [vmem:[#allocation177_spill] sm:$0xff] %v7543_v31  ;;  %v7545_v39 = vpop.f32.mrb[114].mxu1 }
 0x482   : > { %8599 = vst [vmem:[#allocation178_spill] sm:$0xff] %v7545_v39  ;;  %v7549_v53 = vpop.f32.mrb[115].mxu1 }
 0x483   : > { %8600 = vst [vmem:[#allocation179_spill] sm:$0xff] %v7549_v53  ;;  %v7553_v47 = vpop.f32.mrb[116].mxu1 }
 0x484   : > { %8601 = vst [vmem:[#allocation180_spill] sm:$0xff] %v7553_v47  ;;  %v7555_v26 = vpop.f32.mrb[117].mxu1 }
 0x485   : > { %8602 = vst [vmem:[#allocation181_spill] sm:$0xff] %v7555_v26  ;;  %v7557_v35 = vpop.f32.mrb[118].mxu1 }
 0x486   : > { %8603 = vst [vmem:[#allocation182_spill] sm:$0xff] %v7557_v35  ;;  %v7561_v15 = vpop.f32.mrb[119].mxu1 }
 0x487   : > { %8604 = vst [vmem:[#allocation183_spill] sm:$0xff] %v7561_v15  ;;  %v7565_v1 = vpop.f32.mrb[120].mxu1 }
 0x488   : > { %8605 = vst [vmem:[#allocation184_spill] sm:$0xff] %v7565_v1  ;;  %v7567_v39 = vpop.f32.mrb[121].mxu1 }
 0x489   : > { %8606 = vst [vmem:[#allocation185_spill] sm:$0xff] %v7567_v39  ;;  %v7569_v49 = vpop.f32.mrb[122].mxu1 }
 0x48a   : > { %8607 = vst [vmem:[#allocation186_spill] sm:$0xff] %v7569_v49  ;;  %v7573_v53 = vpop.f32.mrb[123].mxu1 }
 0x48b   : > { %8608 = vst [vmem:[#allocation187_spill] sm:$0xff] %v7573_v53  ;;  %v7577_v47 = vpop.f32.mrb[124].mxu1 }
 0x48c   : > { %8609 = vst [vmem:[#allocation188_spill] sm:$0xff] %v7577_v47  ;;  %v7579_v22 = vpop.f32.mrb[125].mxu1 }
 0x48d   : > { %8610 = vst [vmem:[#allocation189_spill] sm:$0xff] %v7579_v22  ;;  %v7581_v26 = vpop.f32.mrb[126].mxu1 }
 0x48e   : > { %8611 = vst [vmem:[#allocation190_spill] sm:$0xff] %v7581_v26 }
 0x4d7   : > { %v3056_v5 = vpop.xlane.xlu1 %3055 }
 0x4d8   : > { %5857 = vrcp.f32 %v3056_v5  ;;  %v7585_v5 = vpop.f32.mrb[127].mxu1 }
 0x4d9   : > { %8612 = vst [vmem:[#allocation191_spill] sm:$0xff] %v7585_v5  ;;  %v7589_v1 = vpop.f32.mrb[128].mxu1  ;;  %v8617_v5 = vpack.c.bf16 %v6736_v46, %v6729_v42  ;;  %v8621_v42 = vpack.c.bf16 %v6811_v27, %v6799_v16  ;;  %v8622_v46 = vpack.c.bf16 %v6827_v44, %v6820_v38  ;;  %v8629_v16 = vpack.c.bf16 %v7449_v45, %v7445_v12 }
 0x4da   : > { %8613 = vst [vmem:[#allocation192_spill] sm:$0xff] %v7589_v1  ;;  %v7591_v49 = vpop.f32.mrb[129].mxu1  ;;  %v8630_v27 = vpack.c.bf16 %v7461_v3, %v7457_v20  ;;  %v8631_v38 = vpack.c.bf16 %v7473_v62, %v7469_v32  ;;  %v8632_v44 = vpack.c.bf16 %v7485_v34, %v7481_v61 }
 0x4db   : > { %v3058_v9 = vpop.xlane.xlu1 %3057  ;;  %8614 = vst [vmem:[#allocation193_spill] sm:$0xff] %v7591_v49  ;;  %v7593_v50 = vpop.f32.mrb[130].mxu1 }
 0x4dc   : > { %5859 = vrcp.f32 %v3058_v9  ;;  %v7597_v39 = vpop.f32.mrb[131].mxu1 }
 0x4dd   : > { %8615 = vst [vmem:[#allocation194_spill] sm:$0xff] %v7597_v39  ;;  %v7601_v15 = vpop.f32.mrb[132].mxu1  ;;  %v8616_v39 = vpack.c.bf16 %v6714_v25, %v6707_v21  ;;  %v8619_v21 = vpack.c.bf16 %v6774_v6, %v6767_v2  ;;  %v8620_v25 = vpack.c.bf16 %v6790_v11, %v6783_v8  ;;  %v8625_v2 = vpack.c.bf16 %v7401_v23, %v7397_v28 }
 0x4de   : > { %v7603_v26 = vpop.f32.mrb[133].mxu1  ;;  %v8626_v6 = vpack.c.bf16 %v7413_v59, %v7409_v43  ;;  %v8627_v8 = vpack.c.bf16 %v7425_v14, %v7421_v18  ;;  %v8628_v11 = vpack.c.bf16 %v7437_v52, %v7433_v30 }
 0x4df   : > { %v7605_v31 = vpop.f32.mrb[134].mxu1 }
 0x4e0   : > { %v7609_v35 = vpop.f32.mrb[135].mxu1 }
 0x4e1   : > { %v2983_v53 = vpack.c.bf16 %v7609_v35, %v7603_v26  ;;  %v5799_v35 = vld [vmem:[#allocation14 + $0xe8] sm:$0xff]  }
 0x4e2   : > { %v5858_v47 = vpop.eup %5857  ;;  %v5800_v26 = vld [vmem:[#allocation14 + $0xa8] sm:$0xff]  }
 0x4e3   : > { %v3061_v9 = vmul.f32 %v5858_v47, %v7345_v60 }
 0x4e6   : > { %v5860_v22 = vpop.eup %5859 }
 0x4e7   : > { %v3062_v1 = vmul.f32 %v5860_v22, %v7348_v48  ;;  %v8618_v48 = vpack.c.bf16 %v6758_v63, %v6749_v57  ;;  %v8623_v57 = vpack.c.bf16 %v6843_v41, %v6836_v36  ;;  %v8624_v63 = vpack.c.bf16 %v7137_v56, %v7135_v0 }
 0x4e9   : > { %v3063_v49 = vpack.c.bf16 %v3062_v1, %v3061_v9  ;;  %v8634_v9 = vpack.c.bf16 %v7213_v40, %v7209_v33  ;;  %v8638_v33 = vpack.c.bf16 %v7261_v37, %v7257_v29  ;;  %v8642_v40 = vld [vmem:[#allocation108_spill] sm:$0xff]  ;;  %v8646_v37 = vld [vmem:[#allocation145_spill] sm:$0xff] }
 0x4ea   : > { %v8647_v29 = vld [vmem:[#allocation144_spill] sm:$0xff] }
 0x4eb   : > { %5379 = vmatmul.mubr.bf16.vlgmr.msra.gmra.mrb[136].mxu1 %v3063_v49 }
 0x4ec   : > { %5383 = vmatpush3.bf16.xpose.msra.mxu1 %v8616_v39  ;;  %5398 = vmatprep.mubr.msk.bf16.mxu1 %vm6205_vm0, %v8502_v58 }
 0x4ed   : > { %5384 = vmatprep.subr.bf16.mxu1 %v8502_v58 }
 0x4f4   : > { %5385 = vmatpush3.bf16.xpose.msra.mxu1 %v8617_v5  ;;  %v8633_v5 = vpack.c.bf16 %v7201_v13, %v7197_v54  ;;  %v8636_v54 = vpack.c.bf16 %v7237_v19, %v7233_v7  ;;  %v8637_v13 = vpack.c.bf16 %v7249_v17, %v7245_v51  ;;  %v8641_v19 = vld [vmem:[#allocation110_spill] sm:$0xff]  ;;  %v8644_v17 = vld [vmem:[#allocation192_spill] sm:$0xff] }
 0x4f5   : > { %5386 = vmatprep.subr.bf16.mxu1 %v8502_v58  ;;  %v8643_v7 = vpack.c.bf16 %v8641_v19, %v8642_v40  ;;  %v8645_v51 = vpack.c.bf16 %v7593_v50, %v8644_v17  ;;  %v8655_v50 = vld [vmem:[#allocation151_spill] sm:$0xff]  ;;  %v8670_v40 = vld [vmem:[#allocation94_spill] sm:$0xff] }
 0x4fc   : > { %5387 = vmatpush3.bf16.xpose.msra.mxu1 %v8618_v48  ;;  %v8635_v48 = vpack.c.bf16 %v7225_v4, %v7221_v55  ;;  %v8639_v55 = vld [vmem:[#allocation105_spill] sm:$0xff] }
 0x4fd   : > { %5388 = vmatprep.subr.bf16.mxu1 %v8502_v58  ;;  %v8640_v4 = vpack.c.bf16 %v7273_v24, %v8639_v55  ;;  %v8649_v24 = vld [vmem:[#allocation147_spill] sm:$0xff] }
 0x504   : > { %5389 = vmatpush3.bf16.xpose.msra.mxu1 %v8619_v21  ;;  %v8648_v21 = vpack.c.bf16 %v8646_v37, %v8647_v29  ;;  %v8674_v37 = vld [vmem:[#allocation95_spill] sm:$0xff] }
 0x505   : > { %5390 = vmatprep.subr.bf16.mxu1 %v8502_v58 }
 0x50c   : > { %5391 = vmatpush3.bf16.xpose.msra.mxu1 %v8620_v25  ;;  %v8650_v25 = vld [vmem:[#allocation146_spill] sm:$0xff] }
 0x50d   : > { %5392 = vmatprep.subr.bf16.mxu1 %v8502_v58 }
 0x514   : > { %5393 = vmatpush3.bf16.xpose.msra.mxu1 %v8621_v42  ;;  %v8651_v42 = vpack.c.bf16 %v8649_v24, %v8650_v25  ;;  %v8677_v24 = vld [vmem:[#allocation97_spill] sm:$0xff] }
 0x515   : > { %5394 = vmatprep.subr.bf16.mxu1 %v8502_v58 }
 0x51c   : > { %5395 = vmatpush3.bf16.xpose.msra.mxu1 %v8622_v46  ;;  %v8652_v46 = vld [vmem:[#allocation149_spill] sm:$0xff] }
 0x51d   : > { %5396 = vmatprep.subr.bf16.mxu1 %v8502_v58 }
 0x524   : > { %5397 = vmatpush3.bf16.xpose.msra.mxu1 %v8623_v57  ;;  %v8653_v57 = vld [vmem:[#allocation148_spill] sm:$0xff] }
 0x525   : > { %5442 = vmatprep.subr.bf16.mxu1 %v8502_v58 }
 0x52b   : > { %5399 = vmatmul.mubr.bf16.vlgmr.msra.gmra.mrb[140].mxu1 %v8624_v63  ;;  %v8654_v63 = vpack.c.bf16 %v8652_v46, %v8653_v57  ;;  %v8680_v46 = vld [vmem:[#allocation99_spill] sm:$0xff] }
 0x52c   : > { %5443 = vmatpush3.bf16.msra.mxu1 %v8625_v2  ;;  %5458 = vmatprep.mubr.msk.bf16.mxu1 %vm6205_vm0, %v8502_v58  ;;  %v8656_v2 = vld [vmem:[#allocation150_spill] sm:$0xff] }
 0x52d   : > { %5444 = vmatprep.subr.bf16.mxu1 %v8502_v58 }
 0x530   : > { %5445 = vmatpush3.bf16.msra.mxu1 %v8626_v6  ;;  %v8657_v6 = vpack.c.bf16 %v8655_v50, %v8656_v2  ;;  %v8683_v50 = vld [vmem:[#allocation101_spill] sm:$0xff] }
 0x531   : > { %5446 = vmatprep.subr.bf16.mxu1 %v8502_v58 }
 0x534   : > { %5447 = vmatpush3.bf16.msra.mxu1 %v8627_v8  ;;  %v8658_v8 = vld [vmem:[#allocation153_spill] sm:$0xff] }
 0x535   : > { %5448 = vmatprep.subr.bf16.mxu1 %v8502_v58 }
 0x538   : > { %5449 = vmatpush3.bf16.msra.mxu1 %v8628_v11  ;;  %v8659_v11 = vld [vmem:[#allocation152_spill] sm:$0xff] }
 0x539   : > { %5450 = vmatprep.subr.bf16.mxu1 %v8502_v58 }
 0x53c   : > { %5451 = vmatpush3.bf16.msra.mxu1 %v8629_v16  ;;  %v8660_v16 = vpack.c.bf16 %v8658_v8, %v8659_v11  ;;  %v8686_v8 = vld [vmem:[#allocation103_spill] sm:$0xff] }
 0x53d   : > { %5452 = vmatprep.subr.bf16.mxu1 %v8502_v58 }
 0x540   : > { %5453 = vmatpush3.bf16.msra.mxu1 %v8630_v27  ;;  %v8661_v27 = vld [vmem:[#allocation155_spill] sm:$0xff] }
 0x541   : > { %5454 = vmatprep.subr.bf16.mxu1 %v8502_v58 }
 0x544   : > { %5455 = vmatpush3.bf16.msra.mxu1 %v8631_v38  ;;  %v8662_v38 = vld [vmem:[#allocation154_spill] sm:$0xff] }
 0x545   : > { %5456 = vmatprep.subr.bf16.mxu1 %v8502_v58 }
 0x548   : > { %5457 = vmatpush3.bf16.msra.mxu1 %v8632_v44  ;;  %v8663_v44 = vpack.c.bf16 %v8661_v27, %v8662_v38  ;;  %v8689_v27 = vld [vmem:[#allocation106_spill] sm:$0xff] }
 0x549   : > { %5462 = vmatprep.subr.bf16.mxu1 %v8502_v58 }
 0x5be   : > { %v7686_v36 = vpop.f32.mrb[136].mxu1 }
 0x5bf   : > { %v5380_v41 = vpop.f32.mrb[137].mxu1 }
 0x5c0   : > { %v7688_v52 = vpop.f32.mrb[138].mxu1  ;;  %v8664_v41 = vld [vmem:[#allocation157_spill] sm:$0xff] }
 0x5c1   : > { %v3105_v56 = vpack.c.bf16 %v7688_v52, %v7686_v36  ;;  %v5381_v60 = vpop.f32.mrb[139].mxu1  ;;  %v5831_v36 = vld [vmem:[#allocation14 + $0x168] sm:$0xff]  }
 0x5c2   : > { %v8665_v60 = vld [vmem:[#allocation156_spill] sm:$0xff] }
 0x5c3   : > { %v5832_v52 = vld [vmem:[#allocation14 + $0x128] sm:$0xff]  }
 0x5fe   : > { %v3157_v0 = vpop.f32.mrb[140].mxu1 }
 0x5ff   : > { %v3158_v62 = vadd.f32 %v3157_v0, %v7187_v10  ;;  %v5400_v32 = vpop.f32.mrb[141].mxu1  ;;  %v8666_v0 = vpack.c.bf16 %v8664_v41, %v8665_v60  ;;  %v8692_v41 = vld [vmem:[#allocation109_spill] sm:$0xff] }
 0x600   : > { %v3160_v22 = vpop.f32.mrb[142].mxu1  ;;  %v8668_v32 = vld [vmem:[#allocation158_spill] sm:$0xff] }
 0x601   : > { %v3161_v23 = vadd.f32 %v3160_v22, %v7187_v10  ;;  %3164 = vmax.xlane.f32.xlu0 %v3158_v62  ;;  %v5401_v45 = vpop.f32.mrb[143].mxu1 }
 0x603   : > { %3166 = vmax.xlane.f32.xlu1 %v3161_v23 }
 0x68e   : > { %v3165_v61 = vpop.xlane.xlu0 %3164 }
 0x68f   : > { %v3168_v43 = vsub.f32 %v3158_v62, %v3165_v61  ;;  %v8667_v62 = vld [vmem:[#allocation159_spill] sm:$0xff] }
 0x690   : > { %v3167_v14 = vpop.xlane.xlu1 %3166  ;;  %v8669_v22 = vpack.c.bf16 %v8667_v62, %v8668_v32  ;;  %v8695_v62 = vld [vmem:[#allocation193_spill] sm:$0xff] }
 0x691   : > { %v3170_v12 = vmul.f32 1.442695, %v3168_v43  ;;  %v3169_v39 = vsub.f32 %v3161_v23, %v3167_v14 }
 0x693   : > { %5861 = vpow2.f32 %v3170_v12  ;;  %v3172_v1 = vmul.f32 1.442695, %v3169_v39 }
 0x695   : > { %5863 = vpow2.f32 %v3172_v1 }
 0x69d   : > { %v5862_v47 = vpop.eup %5861 }
 0x69e   : > { %3174 = vadd.xlane.f32.xlu0 %v5862_v47 }
 0x69f   : > { %v5864_v3 = vpop.eup %5863 }
 0x6a0   : > { %3176 = vadd.xlane.f32.xlu1 %v5864_v3 }
 0x72b   : > { %v3175_v49 = vpop.xlane.xlu0 %3174 }
 0x72c   : > { %5865 = vrcp.f32 %v3175_v49 }
 0x72d   : > { %v3177_v18 = vpop.xlane.xlu1 %3176 }
 0x72e   : > { %5867 = vrcp.f32 %v3177_v18 }
 0x736   : > { %v5866_v28 = vpop.eup %5865 }
 0x737   : > { %v3180_v20 = vmul.f32 %v5866_v28, %v5862_v47 }
 0x738   : > { %v5868_v34 = vpop.eup %5867 }
 0x739   : > { %v3181_v59 = vmul.f32 %v5868_v34, %v5864_v3 }
 0x73b   : > { %v3182_v30 = vpack.c.bf16 %v3181_v59, %v3180_v20 }
 0x73d   : > { %5419 = vmatmul.mubr.bf16.vlgmr.msra.gmra.mrb[140].mxu0 %v3182_v30 }
 0x73e   : > { %5423 = vmatpush3.bf16.xpose.msra.mxu0 %v8633_v5  ;;  %5438 = vmatprep.mubr.msk.bf16.mxu0 %vm6205_vm0, %v8502_v58 }
 0x73f   : > { %5424 = vmatprep.subr.bf16.mxu0 %v8502_v58 }
 0x746   : > { %5425 = vmatpush3.bf16.xpose.msra.mxu0 %v8634_v9 }
 0x747   : > { %5426 = vmatprep.subr.bf16.mxu0 %v8502_v58 }
 0x74e   : > { %5427 = vmatpush3.bf16.xpose.msra.mxu0 %v8635_v48 }
 0x74f   : > { %5428 = vmatprep.subr.bf16.mxu0 %v8502_v58 }
 0x756   : > { %5429 = vmatpush3.bf16.xpose.msra.mxu0 %v8636_v54 }
 0x757   : > { %5430 = vmatprep.subr.bf16.mxu0 %v8502_v58 }
 0x75e   : > { %5431 = vmatpush3.bf16.xpose.msra.mxu0 %v8637_v13 }
 0x75f   : > { %5432 = vmatprep.subr.bf16.mxu0 %v8502_v58 }
 0x766   : > { %5433 = vmatpush3.bf16.xpose.msra.mxu0 %v8638_v33 }
 0x767   : > { %5434 = vmatprep.subr.bf16.mxu0 %v8502_v58 }
 0x76e   : > { %5435 = vmatpush3.bf16.xpose.msra.mxu0 %v8640_v4 }
 0x76f   : > { %5436 = vmatprep.subr.bf16.mxu0 %v8502_v58 }
 0x776   : > { %5437 = vmatpush3.bf16.xpose.msra.mxu0 %v8643_v7  ;;  %v8671_v7 = vld [vmem:[#allocation93_spill] sm:$0xff] }
 0x777   : > { %5482 = vmatprep.subr.bf16.mxu0 %v8502_v58  ;;  %v8672_v17 = vpack.c.bf16 %v8670_v40, %v8671_v7 }
 0x77d   : > { %5439 = vmatmul.mubr.bf16.vlgmr.msra.gmra.mrb[144].mxu0 %v8645_v51  ;;  %v8673_v51 = vld [vmem:[#allocation96_spill] sm:$0xff] }
 0x77e   : > { %5483 = vmatpush3.bf16.msra.mxu0 %v8648_v21  ;;  %5498 = vmatprep.mubr.msk.bf16.mxu0 %vm6205_vm0, %v8502_v58  ;;  %v8675_v29 = vpack.c.bf16 %v8673_v51, %v8674_v37  ;;  %v8676_v21 = vld [vmem:[#allocation98_spill] sm:$0xff] }
 0x77f   : > { %5484 = vmatprep.subr.bf16.mxu0 %v8502_v58  ;;  %v8678_v25 = vpack.c.bf16 %v8676_v21, %v8677_v24 }
 0x782   : > { %5485 = vmatpush3.bf16.msra.mxu0 %v8651_v42  ;;  %v8679_v42 = vld [vmem:[#allocation100_spill] sm:$0xff] }
 0x783   : > { %5486 = vmatprep.subr.bf16.mxu0 %v8502_v58  ;;  %v8681_v57 = vpack.c.bf16 %v8679_v42, %v8680_v46 }
 0x786   : > { %5487 = vmatpush3.bf16.msra.mxu0 %v8654_v63  ;;  %v8682_v63 = vld [vmem:[#allocation102_spill] sm:$0xff] }
 0x787   : > { %5488 = vmatprep.subr.bf16.mxu0 %v8502_v58  ;;  %v8684_v2 = vpack.c.bf16 %v8682_v63, %v8683_v50 }
 0x78a   : > { %5489 = vmatpush3.bf16.msra.mxu0 %v8657_v6  ;;  %v8685_v6 = vld [vmem:[#allocation104_spill] sm:$0xff] }
 0x78b   : > { %5490 = vmatprep.subr.bf16.mxu0 %v8502_v58  ;;  %v8687_v11 = vpack.c.bf16 %v8685_v6, %v8686_v8 }
 0x78e   : > { %5491 = vmatpush3.bf16.msra.mxu0 %v8660_v16  ;;  %v8688_v16 = vld [vmem:[#allocation107_spill] sm:$0xff] }
 0x78f   : > { %5492 = vmatprep.subr.bf16.mxu0 %v8502_v58  ;;  %v8690_v38 = vpack.c.bf16 %v8688_v16, %v8689_v27 }
 0x792   : > { %5493 = vmatpush3.bf16.msra.mxu0 %v8663_v44  ;;  %v8691_v44 = vld [vmem:[#allocation111_spill] sm:$0xff] }
 0x793   : > { %5494 = vmatprep.subr.bf16.mxu0 %v8502_v58  ;;  %v8693_v60 = vpack.c.bf16 %v8691_v44, %v8692_v41 }
 0x796   : > { %5495 = vmatpush3.bf16.msra.mxu0 %v8666_v0  ;;  %v8694_v0 = vld [vmem:[#allocation194_spill] sm:$0xff] }
 0x797   : > { %5496 = vmatprep.subr.bf16.mxu0 %v8502_v58  ;;  %v8696_v32 = vpack.c.bf16 %v8694_v0, %v8695_v62 }
 0x79a   : > { %5497 = vmatpush3.bf16.msra.mxu0 %v8669_v22  ;;  %v8697_v22 = vld [vmem:[#allocation59_spill] sm:$0xff] }
 0x79b   : > { %5502 = vmatprep.subr.bf16.mxu0 %v8502_v58 }
 0x810   : > { %v7765_v23 = vpop.f32.mrb[140].mxu0 }
 0x811   : > { %v5420_v45 = vpop.f32.mrb[141].mxu0 }
 0x812   : > { %v7767_v61 = vpop.f32.mrb[142].mxu0  ;;  %v8698_v45 = vld [vmem:[#allocation57_spill] sm:$0xff] }
 0x813   : > { %v3224_v43 = vpack.c.bf16 %v7767_v61, %v7765_v23  ;;  %v5421_v14 = vpop.f32.mrb[143].mxu0  ;;  %v5817_v23 = vld [vmem:[#allocation14 + $0x70] sm:$0xff]  }
 0x814   : > { %v8699_v14 = vpack.c.bf16 %v8697_v22, %v8698_v45  ;;  %v8722_v22 = vld [vmem:[#allocation25_spill] sm:$0xff] }
 0x815   : > { %v5818_v61 = vld [vmem:[#allocation14 + $0x30] sm:$0xff]  }
 0x850   : > { %v3276_v12 = vpop.f32.mrb[144].mxu0 }
 0x851   : > { %v3277_v39 = vadd.f32 %v3276_v12, %v7187_v10  ;;  %v5440_v1 = vpop.f32.mrb[145].mxu0  ;;  %v8700_v12 = vld [vmem:[#allocation63_spill] sm:$0xff] }
 0x852   : > { %v3279_v47 = vpop.f32.mrb[146].mxu0 }
 0x853   : > { %v3280_v3 = vadd.f32 %v3279_v47, %v7187_v10  ;;  %3283 = vmax.xlane.f32.xlu0 %v3277_v39  ;;  %v5441_v49 = vpop.f32.mrb[147].mxu0  ;;  %v8703_v47 = vld [vmem:[#allocation67_spill] sm:$0xff] }
 0x855   : > { %3285 = vmax.xlane.f32.xlu1 %v3280_v3 }
 0x8e0   : > { %v3284_v18 = vpop.xlane.xlu0 %3283 }
 0x8e1   : > { %v3287_v28 = vsub.f32 %v3277_v39, %v3284_v18  ;;  %v8701_v39 = vld [vmem:[#allocation61_spill] sm:$0xff]  ;;  %v8706_v18 = vld [vmem:[#allocation71_spill] sm:$0xff] }
 0x8e2   : > { %v3286_v34 = vpop.xlane.xlu1 %3285  ;;  %v8702_v1 = vpack.c.bf16 %v8700_v12, %v8701_v39  ;;  %v8725_v12 = vld [vmem:[#allocation29_spill] sm:$0xff] }
 0x8e3   : > { %v3289_v20 = vmul.f32 1.442695, %v3287_v28  ;;  %v3288_v59 = vsub.f32 %v3280_v3, %v3286_v34  ;;  %v8704_v3 = vld [vmem:[#allocation65_spill] sm:$0xff] }
 0x8e4   : > { %v8705_v49 = vpack.c.bf16 %v8703_v47, %v8704_v3  ;;  %v8707_v28 = vld [vmem:[#allocation69_spill] sm:$0xff] }
 0x8e5   : > { %5869 = vpow2.f32 %v3289_v20  ;;  %v3291_v30 = vmul.f32 1.442695, %v3288_v59  ;;  %v8708_v34 = vpack.c.bf16 %v8706_v18, %v8707_v28  ;;  %v8709_v20 = vld [vmem:[#allocation75_spill] sm:$0xff]  ;;  %v8710_v59 = vld [vmem:[#allocation73_spill] sm:$0xff] }
 0x8e6   : > { %v8728_v47 = vld [vmem:[#allocation33_spill] sm:$0xff] }
 0x8e7   : > { %5871 = vpow2.f32 %v3291_v30  ;;  %v8711_v30 = vpack.c.bf16 %v8709_v20, %v8710_v59  ;;  %v8731_v18 = vld [vmem:[#allocation37_spill] sm:$0xff] }
 0x8e8   : > { %v8734_v20 = vld [vmem:[#allocation41_spill] sm:$0xff] }
 0x8ef   : > { %v5870_v5 = vpop.eup %5869 }
 0x8f0   : > { %3293 = vadd.xlane.f32.xlu0 %v5870_v5 }
 0x8f1   : > { %v5872_v9 = vpop.eup %5871 }
 0x8f2   : > { %3295 = vadd.xlane.f32.xlu1 %v5872_v9 }
 0x97d   : > { %v3294_v48 = vpop.xlane.xlu0 %3293 }
 0x97e   : > { %5873 = vrcp.f32 %v3294_v48 }
 0x97f   : > { %v3296_v54 = vpop.xlane.xlu1 %3295 }
 0x980   : > { %5875 = vrcp.f32 %v3296_v54  ;;  %v8715_v54 = vld [vmem:[#allocation83_spill] sm:$0xff] }
 0x988   : > { %v5874_v13 = vpop.eup %5873 }
 0x989   : > { %v3299_v55 = vmul.f32 %v5874_v13, %v5870_v5  ;;  %v8712_v5 = vld [vmem:[#allocation79_spill] sm:$0xff]  ;;  %v8716_v13 = vld [vmem:[#allocation81_spill] sm:$0xff] }
 0x98a   : > { %v5876_v33 = vpop.eup %5875 }
 0x98b   : > { %v3300_v4 = vmul.f32 %v5876_v33, %v5872_v9  ;;  %v8713_v9 = vld [vmem:[#allocation77_spill] sm:$0xff]  ;;  %v8717_v33 = vpack.c.bf16 %v8715_v54, %v8716_v13 }
 0x98c   : > { %v8714_v48 = vpack.c.bf16 %v8712_v5, %v8713_v9  ;;  %v8737_v5 = vld [vmem:[#allocation45_spill] sm:$0xff] }
 0x98d   : > { %v3301_v19 = vpack.c.bf16 %v3300_v4, %v3299_v55  ;;  %v8718_v55 = vld [vmem:[#allocation87_spill] sm:$0xff]  ;;  %v8719_v4 = vld [vmem:[#allocation85_spill] sm:$0xff] }
 0x98e   : > { %v8740_v54 = vld [vmem:[#allocation49_spill] sm:$0xff] }
 0x98f   : > { %5459 = vmatmul.mubr.bf16.vlgmr.msra.gmra.mrb[144].mxu1 %v3301_v19  ;;  %v8720_v19 = vpack.c.bf16 %v8718_v55, %v8719_v4  ;;  %v8743_v55 = vld [vmem:[#allocation53_spill] sm:$0xff] }
 0x990   : > { %5463 = vmatpush3.bf16.xpose.msra.mxu1 %v8672_v17  ;;  %5478 = vmatprep.mubr.msk.bf16.mxu1 %vm6205_vm0, %v8502_v58 }
 0x991   : > { %5464 = vmatprep.subr.bf16.mxu1 %v8502_v58 }
 0x998   : > { %5465 = vmatpush3.bf16.xpose.msra.mxu1 %v8675_v29 }
 0x999   : > { %5466 = vmatprep.subr.bf16.mxu1 %v8502_v58 }
 0x9a0   : > { %5467 = vmatpush3.bf16.xpose.msra.mxu1 %v8678_v25 }
 0x9a1   : > { %5468 = vmatprep.subr.bf16.mxu1 %v8502_v58 }
 0x9a8   : > { %5469 = vmatpush3.bf16.xpose.msra.mxu1 %v8681_v57 }
 0x9a9   : > { %5470 = vmatprep.subr.bf16.mxu1 %v8502_v58 }
 0x9b0   : > { %5471 = vmatpush3.bf16.xpose.msra.mxu1 %v8684_v2 }
 0x9b1   : > { %5472 = vmatprep.subr.bf16.mxu1 %v8502_v58 }
 0x9b8   : > { %5473 = vmatpush3.bf16.xpose.msra.mxu1 %v8687_v11 }
 0x9b9   : > { %5474 = vmatprep.subr.bf16.mxu1 %v8502_v58 }
 0x9c0   : > { %5475 = vmatpush3.bf16.xpose.msra.mxu1 %v8690_v38 }
 0x9c1   : > { %5476 = vmatprep.subr.bf16.mxu1 %v8502_v58 }
 0x9c8   : > { %5477 = vmatpush3.bf16.xpose.msra.mxu1 %v8693_v60 }
 0x9c9   : > { %5522 = vmatprep.subr.bf16.mxu1 %v8502_v58 }
 0x9cf   : > { %5479 = vmatmul.mubr.bf16.vlgmr.msra.gmra.mrb[148].mxu1 %v8696_v32  ;;  %v8721_v32 = vld [vmem:[#allocation27_spill] sm:$0xff] }
 0x9d0   : > { %5523 = vmatpush3.bf16.msra.mxu1 %v8699_v14  ;;  %5538 = vmatprep.mubr.msk.bf16.mxu1 %vm6205_vm0, %v8502_v58  ;;  %v8723_v45 = vpack.c.bf16 %v8721_v32, %v8722_v22  ;;  %v8724_v14 = vld [vmem:[#allocation31_spill] sm:$0xff]  ;;  %v8769_v32 = vld [vmem:[#allocation88_spill] sm:$0xff]  ;;  %v8770_v22 = vld [vmem:[#allocation86_spill] sm:$0xff] }
 0x9d1   : > { %5524 = vmatprep.subr.bf16.mxu1 %v8502_v58  ;;  %v8726_v39 = vpack.c.bf16 %v8724_v14, %v8725_v12 }
 0x9d4   : > { %5525 = vmatpush3.bf16.msra.mxu1 %v8702_v1  ;;  %v8727_v1 = vld [vmem:[#allocation35_spill] sm:$0xff] }
 0x9d5   : > { %5526 = vmatprep.subr.bf16.mxu1 %v8502_v58  ;;  %v8729_v3 = vpack.c.bf16 %v8727_v1, %v8728_v47 }
 0x9d8   : > { %5527 = vmatpush3.bf16.msra.mxu1 %v8705_v49  ;;  %v8730_v49 = vld [vmem:[#allocation39_spill] sm:$0xff] }
 0x9d9   : > { %5528 = vmatprep.subr.bf16.mxu1 %v8502_v58  ;;  %v8732_v28 = vpack.c.bf16 %v8730_v49, %v8731_v18 }
 0x9dc   : > { %5529 = vmatpush3.bf16.msra.mxu1 %v8708_v34  ;;  %v8733_v34 = vld [vmem:[#allocation43_spill] sm:$0xff] }
 0x9dd   : > { %5530 = vmatprep.subr.bf16.mxu1 %v8502_v58  ;;  %v8735_v59 = vpack.c.bf16 %v8733_v34, %v8734_v20 }
 0x9e0   : > { %5531 = vmatpush3.bf16.msra.mxu1 %v8711_v30  ;;  %v8736_v30 = vld [vmem:[#allocation47_spill] sm:$0xff] }
 0x9e1   : > { %5532 = vmatprep.subr.bf16.mxu1 %v8502_v58  ;;  %v8738_v9 = vpack.c.bf16 %v8736_v30, %v8737_v5 }
 0x9e4   : > { %5533 = vmatpush3.bf16.msra.mxu1 %v8714_v48  ;;  %v8739_v48 = vld [vmem:[#allocation51_spill] sm:$0xff] }
 0x9e5   : > { %5534 = vmatprep.subr.bf16.mxu1 %v8502_v58  ;;  %v8741_v13 = vpack.c.bf16 %v8739_v48, %v8740_v54 }
 0x9e8   : > { %5535 = vmatpush3.bf16.msra.mxu1 %v8717_v33  ;;  %v8742_v33 = vld [vmem:[#allocation55_spill] sm:$0xff] }
 0x9e9   : > { %5536 = vmatprep.subr.bf16.mxu1 %v8502_v58  ;;  %v8744_v4 = vpack.c.bf16 %v8742_v33, %v8743_v55 }
 0x9ec   : > { %5537 = vmatpush3.bf16.msra.mxu1 %v8720_v19  ;;  %v8745_v19 = vld [vmem:[#allocation91_spill] sm:$0xff] }
 0x9ed   : > { %5542 = vmatprep.subr.bf16.mxu1 %v8502_v58 }
 0xa62   : > { %v7844_v40 = vpop.f32.mrb[144].mxu1 }
 0xa63   : > { %v5460_v7 = vpop.f32.mrb[145].mxu1 }
 0xa64   : > { %v7846_v17 = vpop.f32.mrb[146].mxu1  ;;  %v8746_v7 = vld [vmem:[#allocation89_spill] sm:$0xff] }
 0xa65   : > { %v3343_v51 = vpack.c.bf16 %v7846_v17, %v7844_v40  ;;  %v5461_v37 = vpop.f32.mrb[147].mxu1 }
 0xa66   : > { %v8747_v37 = vpack.c.bf16 %v8745_v19, %v8746_v7 }
 0xaa2   : > { %v3395_v29 = vpop.f32.mrb[148].mxu1 }
 0xaa3   : > { %v3396_v21 = vadd.f32 %v3395_v29, %v7187_v10  ;;  %v5480_v24 = vpop.f32.mrb[149].mxu1  ;;  %v8748_v29 = vld [vmem:[#allocation60_spill] sm:$0xff] }
 0xaa4   : > { %v3398_v25 = vpop.f32.mrb[150].mxu1 }
 0xaa5   : > { %v3399_v42 = vadd.f32 %v3398_v25, %v7187_v10  ;;  %3402 = vmax.xlane.f32.xlu0 %v3396_v21  ;;  %v5481_v46 = vpop.f32.mrb[151].mxu1  ;;  %v8751_v25 = vld [vmem:[#allocation64_spill] sm:$0xff] }
 0xaa7   : > { %3404 = vmax.xlane.f32.xlu1 %v3399_v42 }
 0xb32   : > { %v3403_v57 = vpop.xlane.xlu0 %3402 }
 0xb33   : > { %v3406_v63 = vsub.f32 %v3396_v21, %v3403_v57  ;;  %v8749_v21 = vld [vmem:[#allocation58_spill] sm:$0xff]  ;;  %v8754_v57 = vld [vmem:[#allocation68_spill] sm:$0xff] }
 0xb34   : > { %v3405_v50 = vpop.xlane.xlu1 %3404  ;;  %v8750_v24 = vpack.c.bf16 %v8748_v29, %v8749_v21 }
 0xb35   : > { %v3408_v2 = vmul.f32 1.442695, %v3406_v63  ;;  %v3407_v6 = vsub.f32 %v3399_v42, %v3405_v50  ;;  %v8752_v42 = vld [vmem:[#allocation62_spill] sm:$0xff] }
 0xb36   : > { %v8753_v46 = vpack.c.bf16 %v8751_v25, %v8752_v42  ;;  %v8755_v63 = vld [vmem:[#allocation66_spill] sm:$0xff] }
 0xb37   : > { %5877 = vpow2.f32 %v3408_v2  ;;  %v3410_v8 = vmul.f32 1.442695, %v3407_v6  ;;  %v8756_v50 = vpack.c.bf16 %v8754_v57, %v8755_v63  ;;  %v8757_v2 = vld [vmem:[#allocation72_spill] sm:$0xff]  ;;  %v8758_v6 = vld [vmem:[#allocation70_spill] sm:$0xff] }
 0xb38   : > { %v8773_v25 = vld [vmem:[#allocation26_spill] sm:$0xff] }
 0xb39   : > { %5879 = vpow2.f32 %v3410_v8  ;;  %v8759_v8 = vpack.c.bf16 %v8757_v2, %v8758_v6  ;;  %v8776_v57 = vld [vmem:[#allocation30_spill] sm:$0xff] }
 0xb3a   : > { %v8779_v2 = vld [vmem:[#allocation34_spill] sm:$0xff] }
 0xb41   : > { %v5878_v11 = vpop.eup %5877 }
 0xb42   : > { %3412 = vadd.xlane.f32.xlu0 %v5878_v11 }
 0xb43   : > { %v5880_v16 = vpop.eup %5879 }
 0xb44   : > { %3414 = vadd.xlane.f32.xlu1 %v5880_v16 }
 0xbcf   : > { %v3413_v27 = vpop.xlane.xlu0 %3412 }
 0xbd0   : > { %5881 = vrcp.f32 %v3413_v27 }
 0xbd1   : > { %v3415_v38 = vpop.xlane.xlu1 %3414 }
 0xbd2   : > { %5883 = vrcp.f32 %v3415_v38  ;;  %v8763_v38 = vld [vmem:[#allocation80_spill] sm:$0xff] }
 0xbda   : > { %v5882_v44 = vpop.eup %5881 }
 0xbdb   : > { %v3418_v60 = vmul.f32 %v5882_v44, %v5878_v11  ;;  %v8760_v11 = vld [vmem:[#allocation76_spill] sm:$0xff]  ;;  %v8764_v44 = vld [vmem:[#allocation78_spill] sm:$0xff] }
 0xbdc   : > { %v5884_v41 = vpop.eup %5883 }
 0xbdd   : > { %v3419_v0 = vmul.f32 %v5884_v41, %v5880_v16  ;;  %v8761_v16 = vld [vmem:[#allocation74_spill] sm:$0xff]  ;;  %v8765_v41 = vpack.c.bf16 %v8763_v38, %v8764_v44 }
 0xbde   : > { %v8762_v27 = vpack.c.bf16 %v8760_v11, %v8761_v16  ;;  %v8782_v11 = vld [vmem:[#allocation38_spill] sm:$0xff] }
 0xbdf   : > { %v3420_v62 = vpack.c.bf16 %v3419_v0, %v3418_v60  ;;  %v8766_v60 = vld [vmem:[#allocation84_spill] sm:$0xff]  ;;  %v8767_v0 = vld [vmem:[#allocation82_spill] sm:$0xff] }
 0xbe0   : > { %v8785_v38 = vld [vmem:[#allocation42_spill] sm:$0xff] }
 0xbe1   : > { %5499 = vmatmul.mubr.bf16.vlgmr.msra.gmra.mrb[148].mxu0 %v3420_v62  ;;  %v8768_v62 = vpack.c.bf16 %v8766_v60, %v8767_v0  ;;  %v8788_v60 = vld [vmem:[#allocation46_spill] sm:$0xff] }
 0xbe2   : > { %5503 = vmatpush3.bf16.xpose.msra.mxu0 %v8723_v45  ;;  %5518 = vmatprep.mubr.msk.bf16.mxu0 %vm6205_vm0, %v8502_v58  ;;  %v8771_v45 = vpack.c.bf16 %v8769_v32, %v8770_v22  ;;  %v8791_v32 = vld [vmem:[#allocation50_spill] sm:$0xff] }
 0xbe3   : > { %5504 = vmatprep.subr.bf16.mxu0 %v8502_v58 }
 0xbea   : > { %5505 = vmatpush3.bf16.xpose.msra.mxu0 %v8726_v39 }
 0xbeb   : > { %5506 = vmatprep.subr.bf16.mxu0 %v8502_v58 }
 0xbf2   : > { %5507 = vmatpush3.bf16.xpose.msra.mxu0 %v8729_v3 }
 0xbf3   : > { %5508 = vmatprep.subr.bf16.mxu0 %v8502_v58 }
 0xbfa   : > { %5509 = vmatpush3.bf16.xpose.msra.mxu0 %v8732_v28 }
 0xbfb   : > { %5510 = vmatprep.subr.bf16.mxu0 %v8502_v58 }
 0xc02   : > { %5511 = vmatpush3.bf16.xpose.msra.mxu0 %v8735_v59 }
 0xc03   : > { %5512 = vmatprep.subr.bf16.mxu0 %v8502_v58 }
 0xc0a   : > { %5513 = vmatpush3.bf16.xpose.msra.mxu0 %v8738_v9 }
 0xc0b   : > { %5514 = vmatprep.subr.bf16.mxu0 %v8502_v58 }
 0xc12   : > { %5515 = vmatpush3.bf16.xpose.msra.mxu0 %v8741_v13 }
 0xc13   : > { %5516 = vmatprep.subr.bf16.mxu0 %v8502_v58 }
 0xc1a   : > { %5517 = vmatpush3.bf16.xpose.msra.mxu0 %v8744_v4 }
 0xc1b   : > { %5562 = vmatprep.subr.bf16.mxu0 %v8502_v58 }
 0xc21   : > { %5519 = vmatmul.mubr.bf16.vlgmr.msra.gmra.mrb[152].mxu0 %v8747_v37 }
 0xc22   : > { %5563 = vmatpush3.bf16.msra.mxu0 %v8750_v24  ;;  %5578 = vmatprep.mubr.msk.bf16.mxu0 %vm6205_vm0, %v8502_v58  ;;  %v8772_v24 = vld [vmem:[#allocation28_spill] sm:$0xff] }
 0xc23   : > { %5564 = vmatprep.subr.bf16.mxu0 %v8502_v58  ;;  %v8774_v42 = vpack.c.bf16 %v8772_v24, %v8773_v25  ;;  %v8817_v24 = vld [vmem:[#allocation186_spill] sm:$0xff]  ;;  %v8818_v25 = vld [vmem:[#allocation184_spill] sm:$0xff] }
 0xc26   : > { %5565 = vmatpush3.bf16.msra.mxu0 %v8753_v46  ;;  %v8775_v46 = vld [vmem:[#allocation32_spill] sm:$0xff] }
 0xc27   : > { %5566 = vmatprep.subr.bf16.mxu0 %v8502_v58  ;;  %v8777_v63 = vpack.c.bf16 %v8775_v46, %v8776_v57  ;;  %v8820_v46 = vld [vmem:[#allocation190_spill] sm:$0xff]  ;;  %v8821_v57 = vld [vmem:[#allocation188_spill] sm:$0xff] }
 0xc2a   : > { %5567 = vmatpush3.bf16.msra.mxu0 %v8756_v50  ;;  %v8778_v50 = vld [vmem:[#allocation36_spill] sm:$0xff] }
 0xc2b   : > { %5568 = vmatprep.subr.bf16.mxu0 %v8502_v58  ;;  %v8780_v6 = vpack.c.bf16 %v8778_v50, %v8779_v2 }
 0xc2e   : > { %5569 = vmatpush3.bf16.msra.mxu0 %v8759_v8  ;;  %v8781_v8 = vld [vmem:[#allocation40_spill] sm:$0xff] }
 0xc2f   : > { %5570 = vmatprep.subr.bf16.mxu0 %v8502_v58  ;;  %v8783_v16 = vpack.c.bf16 %v8781_v8, %v8782_v11 }
 0xc32   : > { %5571 = vmatpush3.bf16.msra.mxu0 %v8762_v27  ;;  %v8784_v27 = vld [vmem:[#allocation44_spill] sm:$0xff] }
 0xc33   : > { %5572 = vmatprep.subr.bf16.mxu0 %v8502_v58  ;;  %v8786_v44 = vpack.c.bf16 %v8784_v27, %v8785_v38 }
 0xc36   : > { %5573 = vmatpush3.bf16.msra.mxu0 %v8765_v41  ;;  %v8787_v41 = vld [vmem:[#allocation48_spill] sm:$0xff] }
 0xc37   : > { %5574 = vmatprep.subr.bf16.mxu0 %v8502_v58  ;;  %v8789_v0 = vpack.c.bf16 %v8787_v41, %v8788_v60 }
 0xc3a   : > { %5575 = vmatpush3.bf16.msra.mxu0 %v8768_v62  ;;  %v8790_v62 = vld [vmem:[#allocation52_spill] sm:$0xff] }
 0xc3b   : > { %5576 = vmatprep.subr.bf16.mxu0 %v8502_v58  ;;  %v8792_v22 = vpack.c.bf16 %v8790_v62, %v8791_v32 }
 0xc3e   : > { %5577 = vmatpush3.bf16.msra.mxu0 %v8771_v45  ;;  %v8793_v45 = vld [vmem:[#allocation56_spill] sm:$0xff] }
 0xc3f   : > { %5582 = vmatprep.subr.bf16.mxu0 %v8502_v58 }
 0xcb4   : > { %v7923_v14 = vpop.f32.mrb[148].mxu0 }
 0xcb5   : > { %v5500_v12 = vpop.f32.mrb[149].mxu0 }
 0xcb6   : > { %v7925_v39 = vpop.f32.mrb[150].mxu0  ;;  %v8794_v12 = vld [vmem:[#allocation54_spill] sm:$0xff] }
 0xcb7   : > { %v3462_v1 = vpack.c.bf16 %v7925_v39, %v7923_v14  ;;  %v5501_v47 = vpop.f32.mrb[151].mxu0  ;;  %v5802_v14 = vld [vmem:[#allocation14 + $0xb0] sm:$0xff]   ;;  %v5803_v39 = vld [vmem:[#allocation14 + $0xf8] sm:$0xff]  }
 0xcb8   : > { %v8795_v47 = vpack.c.bf16 %v8793_v45, %v8794_v12 }
 0xcf4   : > { %v3514_v3 = vpop.f32.mrb[152].mxu0 }
 0xcf5   : > { %v3515_v49 = vadd.f32 %v3514_v3, %v7187_v10  ;;  %v5520_v18 = vpop.f32.mrb[153].mxu0  ;;  %v8796_v3 = vld [vmem:[#allocation92_spill] sm:$0xff] }
 0xcf6   : > { %v3517_v28 = vpop.f32.mrb[154].mxu0 }
 0xcf7   : > { %v3518_v34 = vadd.f32 %v3517_v28, %v7187_v10  ;;  %3521 = vmax.xlane.f32.xlu0 %v3515_v49  ;;  %v5521_v20 = vpop.f32.mrb[155].mxu0  ;;  %v8799_v28 = vld [vmem:[#allocation162_spill] sm:$0xff] }
 0xcf9   : > { %3523 = vmax.xlane.f32.xlu1 %v3518_v34 }
 0xd84   : > { %v3522_v59 = vpop.xlane.xlu0 %3521 }
 0xd85   : > { %v3525_v30 = vsub.f32 %v3515_v49, %v3522_v59  ;;  %v8797_v49 = vld [vmem:[#allocation90_spill] sm:$0xff] }
 0xd86   : > { %v3524_v5 = vpop.xlane.xlu1 %3523  ;;  %v8798_v18 = vpack.c.bf16 %v8796_v3, %v8797_v49  ;;  %v8802_v59 = vld [vmem:[#allocation166_spill] sm:$0xff] }
 0xd87   : > { %v3527_v9 = vmul.f32 1.442695, %v3525_v30  ;;  %v3526_v48 = vsub.f32 %v3518_v34, %v3524_v5  ;;  %v8800_v34 = vld [vmem:[#allocation160_spill] sm:$0xff] }
 0xd88   : > { %v8801_v20 = vpack.c.bf16 %v8799_v28, %v8800_v34  ;;  %v8803_v30 = vld [vmem:[#allocation164_spill] sm:$0xff] }
 0xd89   : > { %5885 = vpow2.f32 %v3527_v9  ;;  %v3529_v54 = vmul.f32 1.442695, %v3526_v48  ;;  %v8804_v5 = vpack.c.bf16 %v8802_v59, %v8803_v30  ;;  %v8805_v9 = vld [vmem:[#allocation170_spill] sm:$0xff]  ;;  %v8806_v48 = vld [vmem:[#allocation168_spill] sm:$0xff] }
 0xd8b   : > { %5887 = vpow2.f32 %v3529_v54  ;;  %v8807_v54 = vpack.c.bf16 %v8805_v9, %v8806_v48  ;;  %v8824_v9 = vld [vmem:[#allocation112_spill] sm:$0xff] }
 0xd93   : > { %v5886_v13 = vpop.eup %5885 }
 0xd94   : > { %3531 = vadd.xlane.f32.xlu0 %v5886_v13 }
 0xd95   : > { %v5888_v33 = vpop.eup %5887 }
 0xd96   : > { %3533 = vadd.xlane.f32.xlu1 %v5888_v33 }
 0xe21   : > { %v3532_v55 = vpop.xlane.xlu0 %3531 }
 0xe22   : > { %5889 = vrcp.f32 %v3532_v55 }
 0xe23   : > { %v3534_v4 = vpop.xlane.xlu1 %3533 }
 0xe24   : > { %5891 = vrcp.f32 %v3534_v4  ;;  %v8811_v4 = vld [vmem:[#allocation178_spill] sm:$0xff] }
 0xe2c   : > { %v5890_v19 = vpop.eup %5889 }
 0xe2d   : > { %v3537_v37 = vmul.f32 %v5890_v19, %v5886_v13  ;;  %v8808_v13 = vld [vmem:[#allocation174_spill] sm:$0xff]  ;;  %v8812_v19 = vld [vmem:[#allocation176_spill] sm:$0xff] }
 0xe2e   : > { %v5892_v7 = vpop.eup %5891 }
 0xe2f   : > { %v3538_v29 = vmul.f32 %v5892_v7, %v5888_v33  ;;  %v8809_v33 = vld [vmem:[#allocation172_spill] sm:$0xff]  ;;  %v8813_v7 = vpack.c.bf16 %v8811_v4, %v8812_v19 }
 0xe30   : > { %v8810_v55 = vpack.c.bf16 %v8808_v13, %v8809_v33  ;;  %v8827_v13 = vld [vmem:[#allocation116_spill] sm:$0xff] }
 0xe31   : > { %v3539_v21 = vpack.c.bf16 %v3538_v29, %v3537_v37  ;;  %v8814_v37 = vld [vmem:[#allocation182_spill] sm:$0xff]  ;;  %v8815_v29 = vld [vmem:[#allocation180_spill] sm:$0xff] }
 0xe32   : > { %v8830_v4 = vld [vmem:[#allocation120_spill] sm:$0xff] }
 0xe33   : > { %5539 = vmatmul.mubr.bf16.vlgmr.msra.gmra.mrb[152].mxu1 %v3539_v21  ;;  %v8816_v21 = vpack.c.bf16 %v8814_v37, %v8815_v29  ;;  %v8833_v37 = vld [vmem:[#allocation124_spill] sm:$0xff] }
 0xe34   : > { %5543 = vmatpush3.bf16.xpose.msra.mxu1 %v8774_v42  ;;  %5558 = vmatprep.mubr.msk.bf16.mxu1 %vm6205_vm0, %v8502_v58  ;;  %v8819_v42 = vpack.c.bf16 %v8817_v24, %v8818_v25  ;;  %v8836_v24 = vld [vmem:[#allocation128_spill] sm:$0xff] }
 0xe35   : > { %5544 = vmatprep.subr.bf16.mxu1 %v8502_v58 }
 0xe3c   : > { %5545 = vmatpush3.bf16.xpose.msra.mxu1 %v8777_v63  ;;  %v8822_v63 = vpack.c.bf16 %v8820_v46, %v8821_v57  ;;  %v8839_v46 = vld [vmem:[#allocation132_spill] sm:$0xff] }
 0xe3d   : > { %5546 = vmatprep.subr.bf16.mxu1 %v8502_v58 }
 0xe44   : > { %5547 = vmatpush3.bf16.xpose.msra.mxu1 %v8780_v6 }
 0xe45   : > { %5548 = vmatprep.subr.bf16.mxu1 %v8502_v58 }
 0xe4c   : > { %5549 = vmatpush3.bf16.xpose.msra.mxu1 %v8783_v16 }
 0xe4d   : > { %5550 = vmatprep.subr.bf16.mxu1 %v8502_v58 }
 0xe54   : > { %5551 = vmatpush3.bf16.xpose.msra.mxu1 %v8786_v44 }
 0xe55   : > { %5552 = vmatprep.subr.bf16.mxu1 %v8502_v58 }
 0xe5c   : > { %5553 = vmatpush3.bf16.xpose.msra.mxu1 %v8789_v0 }
 0xe5d   : > { %5554 = vmatprep.subr.bf16.mxu1 %v8502_v58 }
 0xe64   : > { %5555 = vmatpush3.bf16.xpose.msra.mxu1 %v8792_v22 }
 0xe65   : > { %5556 = vmatprep.subr.bf16.mxu1 %v8502_v58 }
 0xe6c   : > { %5557 = vmatpush3.bf16.xpose.msra.mxu1 %v8795_v47 }
 0xe6d   : > { %5602 = vmatprep.subr.bf16.mxu1 %v8502_v58 }
 0xe73   : > { %5559 = vmatmul.mubr.bf16.vlgmr.msra.gmra.mrb[156].mxu1 %v8798_v18 }
 0xe74   : > { %5603 = vmatpush3.bf16.msra.mxu1 %v8801_v20  ;;  %5618 = vmatprep.mubr.msk.bf16.mxu1 %vm6205_vm0, %v8502_v58 }
 0xe75   : > { %5604 = vmatprep.subr.bf16.mxu1 %v8502_v58 }
 0xe78   : > { %5605 = vmatpush3.bf16.msra.mxu1 %v8804_v5  ;;  %v8823_v5 = vld [vmem:[#allocation114_spill] sm:$0xff] }
 0xe79   : > { %5606 = vmatprep.subr.bf16.mxu1 %v8502_v58  ;;  %v8825_v48 = vpack.c.bf16 %v8823_v5, %v8824_v9  ;;  %v8867_v5 = vld [vmem:[#allocation185_spill] sm:$0xff] }
 0xe7c   : > { %5607 = vmatpush3.bf16.msra.mxu1 %v8807_v54  ;;  %v8826_v54 = vld [vmem:[#allocation118_spill] sm:$0xff] }
 0xe7d   : > { %5608 = vmatprep.subr.bf16.mxu1 %v8502_v58  ;;  %v8828_v33 = vpack.c.bf16 %v8826_v54, %v8827_v13  ;;  %v8870_v54 = vld [vmem:[#allocation189_spill] sm:$0xff] }
 0xe80   : > { %5609 = vmatpush3.bf16.msra.mxu1 %v8810_v55  ;;  %v8829_v55 = vld [vmem:[#allocation122_spill] sm:$0xff] }
 0xe81   : > { %5610 = vmatprep.subr.bf16.mxu1 %v8502_v58  ;;  %v8831_v19 = vpack.c.bf16 %v8829_v55, %v8830_v4 }
 0xe84   : > { %5611 = vmatpush3.bf16.msra.mxu1 %v8813_v7  ;;  %v8832_v7 = vld [vmem:[#allocation126_spill] sm:$0xff] }
 0xe85   : > { %5612 = vmatprep.subr.bf16.mxu1 %v8502_v58  ;;  %v8834_v29 = vpack.c.bf16 %v8832_v7, %v8833_v37 }
 0xe88   : > { %5613 = vmatpush3.bf16.msra.mxu1 %v8816_v21  ;;  %v8835_v21 = vld [vmem:[#allocation130_spill] sm:$0xff] }
 0xe89   : > { %5614 = vmatprep.subr.bf16.mxu1 %v8502_v58  ;;  %v8837_v25 = vpack.c.bf16 %v8835_v21, %v8836_v24 }
 0xe8c   : > { %5615 = vmatpush3.bf16.msra.mxu1 %v8819_v42  ;;  %v8838_v42 = vld [vmem:[#allocation134_spill] sm:$0xff] }
 0xe8d   : > { %5616 = vmatprep.subr.bf16.mxu1 %v8502_v58  ;;  %v8840_v57 = vpack.c.bf16 %v8838_v42, %v8839_v46 }
 0xe90   : > { %5617 = vmatpush3.bf16.msra.mxu1 %v8822_v63  ;;  %v8841_v63 = vld [vmem:[#allocation138_spill] sm:$0xff] }
 0xe91   : > { %5622 = vmatprep.subr.bf16.mxu1 %v8502_v58 }
 0xf06   : > { %v8002_v50 = vpop.f32.mrb[152].mxu1 }
 0xf07   : > { %v5540_v2 = vpop.f32.mrb[153].mxu1 }
 0xf08   : > { %v8004_v6 = vpop.f32.mrb[154].mxu1  ;;  %v8842_v2 = vld [vmem:[#allocation136_spill] sm:$0xff] }
 0xf09   : > { %v3581_v8 = vpack.c.bf16 %v8004_v6, %v8002_v50  ;;  %v5541_v11 = vpop.f32.mrb[155].mxu1  ;;  %v5028_v50 = vld [vmem:[%s8225_s6] ss:$0 sm:$0xff] }
 0xf0a   : > { %v8843_v11 = vpack.c.bf16 %v8841_v63, %v8842_v2 }
 0xf46   : > { %v3633_v16 = vpop.f32.mrb[156].mxu1 }
 0xf47   : > { %v3634_v27 = vadd.f32 %v3633_v16, %v7187_v10  ;;  %v5560_v38 = vpop.f32.mrb[157].mxu1  ;;  %v8844_v16 = vld [vmem:[#allocation142_spill] sm:$0xff] }
 0xf48   : > { %v3636_v44 = vpop.f32.mrb[158].mxu1 }
 0xf49   : > { %v3637_v41 = vadd.f32 %v3636_v44, %v7187_v10  ;;  %3640 = vmax.xlane.f32.xlu0 %v3634_v27  ;;  %v5561_v60 = vpop.f32.mrb[159].mxu1  ;;  %v8847_v44 = vpack.c.bf16 %v7605_v31, %v7601_v15  ;;  %v8857_v15 = vld [vmem:[#allocation175_spill] sm:$0xff]  ;;  %v8858_v31 = vld [vmem:[#allocation173_spill] sm:$0xff] }
 0xf4a   : > { %v8849_v60 = vld [vmem:[#allocation161_spill] sm:$0xff] }
 0xf4b   : > { %3642 = vmax.xlane.f32.xlu1 %v3637_v41 }
 0xfd6   : > { %v3641_v0 = vpop.xlane.xlu0 %3640 }
 0xfd7   : > { %v3644_v62 = vsub.f32 %v3634_v27, %v3641_v0  ;;  %v8845_v27 = vld [vmem:[#allocation140_spill] sm:$0xff] }
 0xfd8   : > { %v3643_v32 = vpop.xlane.xlu1 %3642  ;;  %v8846_v38 = vpack.c.bf16 %v8844_v16, %v8845_v27 }
 0xfd9   : > { %v3646_v22 = vmul.f32 1.442695, %v3644_v62  ;;  %v3645_v45 = vsub.f32 %v3637_v41, %v3643_v32  ;;  %v8848_v41 = vld [vmem:[#allocation163_spill] sm:$0xff]  ;;  %v8852_v32 = vld [vmem:[#allocation165_spill] sm:$0xff] }
 0xfda   : > { %v8850_v0 = vpack.c.bf16 %v8848_v41, %v8849_v60  ;;  %v8851_v62 = vld [vmem:[#allocation167_spill] sm:$0xff] }
 0xfdb   : > { %5893 = vpow2.f32 %v3646_v22  ;;  %v3648_v12 = vmul.f32 1.442695, %v3645_v45  ;;  %v8853_v22 = vpack.c.bf16 %v8851_v62, %v8852_v32  ;;  %v8854_v45 = vld [vmem:[#allocation171_spill] sm:$0xff] }
 0xfdd   : > { %5895 = vpow2.f32 %v3648_v12  ;;  %v8855_v12 = vld [vmem:[#allocation169_spill] sm:$0xff] }
 0xfe5   : > { %v5894_v47 = vpop.eup %5893 }
 0xfe6   : > { %3650 = vadd.xlane.f32.xlu0 %v5894_v47 }
 0xfe7   : > { %v5896_v3 = vpop.eup %5895 }
 0xfe8   : > { %3652 = vadd.xlane.f32.xlu1 %v5896_v3 }
0x1073   : > { %v3651_v49 = vpop.xlane.xlu0 %3650 }
0x1074   : > { %5897 = vrcp.f32 %v3651_v49  ;;  %v8860_v49 = vld [vmem:[#allocation179_spill] sm:$0xff] }
0x1075   : > { %v3653_v18 = vpop.xlane.xlu1 %3652 }
0x1076   : > { %5899 = vrcp.f32 %v3653_v18  ;;  %v8861_v18 = vld [vmem:[#allocation177_spill] sm:$0xff] }
0x107e   : > { %v5898_v28 = vpop.eup %5897 }
0x107f   : > { %v3656_v20 = vmul.f32 %v5898_v28, %v5894_v47  ;;  %v8856_v47 = vpack.c.bf16 %v8854_v45, %v8855_v12  ;;  %v8862_v28 = vpack.c.bf16 %v8860_v49, %v8861_v18  ;;  %v8872_v45 = vld [vmem:[#allocation115_spill] sm:$0xff]  ;;  %v8873_v12 = vld [vmem:[#allocation113_spill] sm:$0xff] }
0x1080   : > { %v5900_v34 = vpop.eup %5899  ;;  %v8878_v49 = vld [vmem:[#allocation123_spill] sm:$0xff]  ;;  %v8879_v18 = vld [vmem:[#allocation121_spill] sm:$0xff] }
0x1081   : > { %v3657_v59 = vmul.f32 %v5900_v34, %v5896_v3  ;;  %v8859_v3 = vpack.c.bf16 %v8857_v15, %v8858_v31  ;;  %v8863_v34 = vld [vmem:[#allocation183_spill] sm:$0xff]  ;;  %v8876_v31 = vld [vmem:[#allocation117_spill] sm:$0xff] }
0x1082   : > { %v8875_v15 = vld [vmem:[#allocation119_spill] sm:$0xff] }
0x1083   : > { %v3658_v30 = vpack.c.bf16 %v3657_v59, %v3656_v20  ;;  %v8864_v20 = vld [vmem:[#allocation181_spill] sm:$0xff] }
0x1084   : > { %v8865_v59 = vpack.c.bf16 %v8863_v34, %v8864_v20  ;;  %v8881_v34 = vld [vmem:[#allocation127_spill] sm:$0xff]  ;;  %v8882_v20 = vld [vmem:[#allocation125_spill] sm:$0xff] }
0x1085   : > { %5579 = vmatmul.mubr.bf16.vlgmr.msra.gmra.mrb[156].mxu0 %v3658_v30  ;;  %v8866_v30 = vld [vmem:[#allocation187_spill] sm:$0xff] }
0x1086   : > { %5583 = vmatpush3.bf16.xpose.msra.mxu0 %v8825_v48  ;;  %5598 = vmatprep.mubr.msk.bf16.mxu0 %vm6205_vm0, %v8502_v58  ;;  %v8868_v9 = vpack.c.bf16 %v8866_v30, %v8867_v5  ;;  %v8869_v48 = vld [vmem:[#allocation191_spill] sm:$0xff]  ;;  %v8885_v5 = vld [vmem:[#allocation129_spill] sm:$0xff] }
0x1087   : > { %5584 = vmatprep.subr.bf16.mxu0 %v8502_v58  ;;  %v8871_v13 = vpack.c.bf16 %v8869_v48, %v8870_v54  ;;  %v8884_v30 = vld [vmem:[#allocation131_spill] sm:$0xff]  ;;  %v8888_v54 = vld [vmem:[#allocation133_spill] sm:$0xff] }
0x1088   : > { %v8887_v48 = vld [vmem:[#allocation135_spill] sm:$0xff] }
0x108e   : > { %5585 = vmatpush3.bf16.xpose.msra.mxu0 %v8828_v33 }
0x108f   : > { %5586 = vmatprep.subr.bf16.mxu0 %v8502_v58 }
0x1096   : > { %5587 = vmatpush3.bf16.xpose.msra.mxu0 %v8831_v19 }
0x1097   : > { %5588 = vmatprep.subr.bf16.mxu0 %v8502_v58 }
0x109e   : > { %5589 = vmatpush3.bf16.xpose.msra.mxu0 %v8834_v29 }
0x109f   : > { %5590 = vmatprep.subr.bf16.mxu0 %v8502_v58 }
0x10a6   : > { %5591 = vmatpush3.bf16.xpose.msra.mxu0 %v8837_v25 }
0x10a7   : > { %5592 = vmatprep.subr.bf16.mxu0 %v8502_v58 }
0x10ae   : > { %5593 = vmatpush3.bf16.xpose.msra.mxu0 %v8840_v57 }
0x10af   : > { %5594 = vmatprep.subr.bf16.mxu0 %v8502_v58 }
0x10b6   : > { %5595 = vmatpush3.bf16.xpose.msra.mxu0 %v8843_v11 }
0x10b7   : > { %5596 = vmatprep.subr.bf16.mxu0 %v8502_v58 }
0x10be   : > { %5597 = vmatpush3.bf16.xpose.msra.mxu0 %v8846_v38 }
0x10bf   : > { %5642 = vmatprep.subr.bf16.mxu0 %v8502_v58 }
0x10c5   : > { %5599 = vmatmul.mubr.bf16.vlgmr.msra.gmra.mrb[160].mxu0 %v8847_v44 }
0x10c6   : > { %5643 = vmatpush3.bf16.msra.mxu0 %v8850_v0  ;;  %5658 = vmatprep.mubr.msk.bf16.mxu0 %vm6205_vm0, %v8502_v58 }
0x10c7   : > { %5644 = vmatprep.subr.bf16.mxu0 %v8502_v58 }
0x10ca   : > { %5645 = vmatpush3.bf16.msra.mxu0 %v8853_v22 }
0x10cb   : > { %5646 = vmatprep.subr.bf16.mxu0 %v8502_v58 }
0x10ce   : > { %5647 = vmatpush3.bf16.msra.mxu0 %v8856_v47  ;;  %v8874_v47 = vpack.c.bf16 %v8872_v45, %v8873_v12 }
0x10cf   : > { %5648 = vmatprep.subr.bf16.mxu0 %v8502_v58 }
0x10d2   : > { %5649 = vmatpush3.bf16.msra.mxu0 %v8859_v3  ;;  %v8877_v3 = vpack.c.bf16 %v8875_v15, %v8876_v31 }
0x10d3   : > { %5650 = vmatprep.subr.bf16.mxu0 %v8502_v58 }
0x10d6   : > { %5651 = vmatpush3.bf16.msra.mxu0 %v8862_v28  ;;  %v8880_v28 = vpack.c.bf16 %v8878_v49, %v8879_v18 }
0x10d7   : > { %5652 = vmatprep.subr.bf16.mxu0 %v8502_v58 }
0x10da   : > { %5653 = vmatpush3.bf16.msra.mxu0 %v8865_v59  ;;  %v8883_v59 = vpack.c.bf16 %v8881_v34, %v8882_v20 }
0x10db   : > { %5654 = vmatprep.subr.bf16.mxu0 %v8502_v58 }
0x10de   : > { %5655 = vmatpush3.bf16.msra.mxu0 %v8868_v9  ;;  %v8886_v9 = vpack.c.bf16 %v8884_v30, %v8885_v5  ;;  %v5805_v5 = vld [vmem:[#allocation14 + $0x40] sm:$0xff]  }
0x10df   : > { %5656 = vmatprep.subr.bf16.mxu0 %v8502_v58 }
0x10e2   : > { %5657 = vmatpush3.bf16.msra.mxu0 %v8871_v13  ;;  %v8889_v13 = vpack.c.bf16 %v8887_v48, %v8888_v54  ;;  %v5838_v48 = vld [vmem:[#allocation14 + $0x180] sm:$0xff]   ;;  %v5839_v54 = vld [vmem:[#allocation14 + $0x1c8] sm:$0xff]  }
0x10e3   : > { %5254 = vmatprep.subr.bf16.mxu0 %v5805_v5 }
0x1158   : > { %v8080_v33 = vpop.f32.mrb[156].mxu0 }
0x1159   : > { %v5580_v55 = vpop.f32.mrb[157].mxu0 }
0x115a   : > { %v8082_v4 = vpop.f32.mrb[158].mxu0  ;;  %v8890_v55 = vld [vmem:[#allocation139_spill] sm:$0xff] }
0x115b   : > { %v3700_v19 = vpack.c.bf16 %v8082_v4, %v8080_v33  ;;  %v5581_v7 = vpop.f32.mrb[159].mxu0  ;;  %v5834_v33 = vld [vmem:[#allocation14 + $0x130] sm:$0xff]   ;;  %v5835_v4 = vld [vmem:[#allocation14 + $0x178] sm:$0xff]  }
0x115c   : > { %v8891_v7 = vld [vmem:[#allocation137_spill] sm:$0xff] }
0x1198   : > { %v3752_v37 = vpop.f32.mrb[160].mxu0 }
0x1199   : > { %v3753_v29 = vadd.f32 %v3752_v37, %v7187_v10  ;;  %v5600_v21 = vpop.f32.mrb[161].mxu0  ;;  %v8892_v37 = vpack.c.bf16 %v8890_v55, %v8891_v7  ;;  %v5841_v55 = vld [vmem:[#allocation14 + $0x1d0] sm:$0xff]  }
0x119a   : > { %v3755_v24 = vpop.f32.mrb[162].mxu0  ;;  %v8893_v21 = vld [vmem:[#allocation143_spill] sm:$0xff]  ;;  %v5842_v7 = vld [vmem:[#allocation14 + $0x190] sm:$0xff]  }
0x119b   : > { %v3756_v25 = vadd.f32 %v3755_v24, %v7187_v10  ;;  %3759 = vmax.xlane.f32.xlu0 %v3753_v29  ;;  %v5601_v42 = vpop.f32.mrb[163].mxu0  ;;  %v8894_v24 = vld [vmem:[#allocation141_spill] sm:$0xff] }
0x119c   : > { %v5790_v42 = vld [vmem:[#allocation14 + $0x80] sm:$0xff]  }
0x119d   : > { %3761 = vmax.xlane.f32.xlu1 %v3756_v25 }
0x1228   : > { %v3760_v46 = vpop.xlane.xlu0 %3759 }
0x1229   : > { %v3763_v57 = vsub.f32 %v3753_v29, %v3760_v46  ;;  %v5789_v29 = vld [vmem:[#allocation14 + $0xc0] sm:$0xff]   ;;  %v5791_v46 = vld [vmem:[#allocation14 + $0xc8] sm:$0xff]  }
0x122a   : > { %v3762_v63 = vpop.xlane.xlu1 %3761 }
0x122b   : > { %v3765_v2 = vmul.f32 1.442695, %v3763_v57  ;;  %v3764_v11 = vsub.f32 %v3756_v25, %v3762_v63  ;;  %v8895_v25 = vpack.c.bf16 %v8893_v21, %v8894_v24  ;;  %v5792_v57 = vld [vmem:[#allocation14 + $0x88] sm:$0xff]   ;;  %v5794_v63 = vld [vmem:[#allocation14 + $0x90] sm:$0xff]   ;;  %v5845_v21 = vld [vmem:[#allocation14 + $0x1e0] sm:$0xff]  }
0x122c   : > { %v5846_v24 = vld [vmem:[#allocation14 + $0x1a0] sm:$0xff]  }
0x122d   : > { %5901 = vpow2.f32 %v3765_v2  ;;  %v3767_v16 = vmul.f32 1.442695, %v3764_v11  ;;  %v5795_v2 = vld [vmem:[#allocation14 + $0xd8] sm:$0xff]  }
0x122e   : > { %v5796_v11 = vld [vmem:[#allocation14 + $0x98] sm:$0xff]  }
0x122f   : > { %5903 = vpow2.f32 %v3767_v16  ;;  %v5797_v16 = vld [vmem:[#allocation14 + $0xe0] sm:$0xff]  }
0x1237   : > { %v5902_v27 = vpop.eup %5901 }
0x1238   : > { %3769 = vadd.xlane.f32.xlu0 %v5902_v27 }
0x1239   : > { %v5904_v38 = vpop.eup %5903 }
0x123a   : > { %3771 = vadd.xlane.f32.xlu1 %v5904_v38 }
0x12c5   : > { %v3770_v44 = vpop.xlane.xlu0 %3769 }
0x12c6   : > { %5905 = vrcp.f32 %v3770_v44 }
0x12c7   : > { %v3772_v41 = vpop.xlane.xlu1 %3771 }
0x12c8   : > { %5907 = vrcp.f32 %v3772_v41 }
0x12d0   : > { %v5906_v60 = vpop.eup %5905 }
0x12d1   : > { %v3775_v62 = vmul.f32 %v5906_v60, %v5902_v27  ;;  %v5798_v27 = vld [vmem:[#allocation14 + $0xa0] sm:$0xff]  }
0x12d2   : > { %v5908_v0 = vpop.eup %5907 }
0x12d3   : > { %v3776_v32 = vmul.f32 %v5908_v0, %v5904_v38 }
0x12d5   : > { %v3777_v22 = vpack.c.bf16 %v3776_v32, %v3775_v62 }
0x12d7   : > { %5619 = vmatmul.mubr.bf16.vlgmr.msra.gmra.mrb[160].mxu1 %v3777_v22 }
0x12d8   : > { %5623 = vmatpush3.bf16.xpose.msra.mxu1 %v8874_v47  ;;  %5638 = vmatprep.mubr.msk.bf16.mxu1 %vm6205_vm0, %v8502_v58 }
0x12d9   : > { %5624 = vmatprep.subr.bf16.mxu1 %v8502_v58 }
0x12e0   : > { %5625 = vmatpush3.bf16.xpose.msra.mxu1 %v8877_v3 }
0x12e1   : > { %5626 = vmatprep.subr.bf16.mxu1 %v8502_v58 }
0x12e8   : > { %5627 = vmatpush3.bf16.xpose.msra.mxu1 %v8880_v28 }
0x12e9   : > { %5628 = vmatprep.subr.bf16.mxu1 %v8502_v58 }
0x12f0   : > { %5629 = vmatpush3.bf16.xpose.msra.mxu1 %v8883_v59 }
0x12f1   : > { %5630 = vmatprep.subr.bf16.mxu1 %v8502_v58 }
0x12f8   : > { %5631 = vmatpush3.bf16.xpose.msra.mxu1 %v8886_v9  ;;  %v5837_v9 = vld [vmem:[#allocation14 + $0x1c0] sm:$0xff]  }
0x12f9   : > { %5632 = vmatprep.subr.bf16.mxu1 %v8502_v58 }
0x1300   : > { %5633 = vmatpush3.bf16.xpose.msra.mxu1 %v8889_v13  ;;  %v5840_v13 = vld [vmem:[#allocation14 + $0x188] sm:$0xff]  }
0x1301   : > { %5634 = vmatprep.subr.bf16.mxu1 %v8502_v58 }
0x1308   : > { %5635 = vmatpush3.bf16.xpose.msra.mxu1 %v8892_v37  ;;  %v5843_v37 = vld [vmem:[#allocation14 + $0x1d8] sm:$0xff]  }
0x1309   : > { %5636 = vmatprep.subr.bf16.mxu1 %v8502_v58  ;;  %v5793_v58 = vld [vmem:[#allocation14 + $0xd0] sm:$0xff]  }
0x1310   : > { %5637 = vmatpush3.bf16.xpose.msra.mxu1 %v8895_v25  ;;  %v5847_v25 = vld [vmem:[#allocation14 + $0x1e8] sm:$0xff]  }
0x1311   : > { %5276 = vmatprep.subr.bf16.mxu1 %v5789_v29  ;;  %v5844_v29 = vld [vmem:[#allocation14 + $0x198] sm:$0xff]  }
0x1317   : > { %5639 = vmatmul.mubr.bf16.vlgmr.msra.gmra.mrb[164].mxu1 %v2983_v53  ;;  %v5801_v53 = vld [vmem:[#allocation14 + $0xf0] sm:$0xff]  }
0x1318   : > { %5277 = vmatpush3.bf16.msra.mxu1 %v5790_v42  ;;  %4540 = vmatprep.mubr.bf16.mxu1 %v3462_v1  ;;  %v5804_v1 = vld [vmem:[#allocation14 + $0xb8] sm:$0xff]   ;;  %v5848_v42 = vld [vmem:[#allocation14 + $0x1a8] sm:$0xff]  }
0x1319   : > { %5278 = vmatprep.subr.bf16.mxu1 %v5791_v46  ;;  %v5849_v46 = vld [vmem:[#allocation14 + $0x1f0] sm:$0xff]  }
0x131c   : > { %5279 = vmatpush3.bf16.msra.mxu1 %v5792_v57  ;;  %v5850_v57 = vld [vmem:[#allocation14 + $0x1b0] sm:$0xff]  }
0x131d   : > { %5280 = vmatprep.subr.bf16.mxu1 %v5793_v58 }
0x1320   : > { %5281 = vmatpush3.bf16.msra.mxu1 %v5794_v63 }
0x1321   : > { %5282 = vmatprep.subr.bf16.mxu1 %v5795_v2 }
0x1324   : > { %5283 = vmatpush3.bf16.msra.mxu1 %v5796_v11 }
0x1325   : > { %5284 = vmatprep.subr.bf16.mxu1 %v5797_v16 }
0x1328   : > { %5285 = vmatpush3.bf16.msra.mxu1 %v5798_v27 }
0x1329   : > { %5286 = vmatprep.subr.bf16.mxu1 %v5799_v35  ;;  %v5806_v35 = vld [vmem:[#allocation14] sm:$0xff]  }
0x132c   : > { %5287 = vmatpush3.bf16.msra.mxu1 %v5800_v26 }
0x132d   : > { %5288 = vmatprep.subr.bf16.mxu1 %v5801_v53  ;;  %v5807_v53 = vld [vmem:[#allocation14 + $0x48] sm:$0xff]  }
0x1330   : > { %5289 = vmatpush3.bf16.msra.mxu1 %v5802_v14  ;;  %v5808_v14 = vld [vmem:[#allocation14 + $0x8] sm:$0xff]  }
0x1331   : > { %5290 = vmatprep.subr.bf16.mxu1 %v5803_v39  ;;  %v5809_v39 = vld [vmem:[#allocation14 + $0x50] sm:$0xff]  }
0x1334   : > { %5291 = vmatpush3.bf16.msra.mxu1 %v5804_v1  ;;  %v5810_v1 = vld [vmem:[#allocation14 + $0x10] sm:$0xff]  }
0x1335   : > { %5320 = vmatprep.subr.bf16.mxu1 %v5837_v9 }
0x1337   : > { %4541 = vmatmul.mubr.bf16.vlgmr.msra.gmra.mrb[168].mxu1 %v3343_v51 }
0x1338   : > { %5321 = vmatpush3.bf16.msra.mxu1 %v5838_v48 }
0x1339   : > { %5322 = vmatprep.subr.bf16.mxu1 %v5839_v54 }
0x133c   : > { %5323 = vmatpush3.bf16.msra.mxu1 %v5840_v13 }
0x133d   : > { %5324 = vmatprep.subr.bf16.mxu1 %v5841_v55 }
0x1340   : > { %5325 = vmatpush3.bf16.msra.mxu1 %v5842_v7 }
0x1341   : > { %5326 = vmatprep.subr.bf16.mxu1 %v5843_v37 }
0x1344   : > { %5327 = vmatpush3.bf16.msra.mxu1 %v5844_v29 }
0x1345   : > { %5328 = vmatprep.subr.bf16.mxu1 %v5845_v21 }
0x1348   : > { %5329 = vmatpush3.bf16.msra.mxu1 %v5846_v24 }
0x1349   : > { %5330 = vmatprep.subr.bf16.mxu1 %v5847_v25 }
0x134c   : > { %5331 = vmatpush3.bf16.msra.mxu1 %v5848_v42 }
0x134d   : > { %5332 = vmatprep.subr.bf16.mxu1 %v5849_v46 }
0x1350   : > { %5333 = vmatpush3.bf16.msra.mxu1 %v5850_v57 }
0x13aa   : > { %v8130_v38 = vpop.f32.mrb[160].mxu1 }
0x13ab   : > { %v5620_v44 = vpop.f32.mrb[161].mxu1 }
0x13ac   : > { %v8132_v41 = vpop.f32.mrb[162].mxu1  ;;  %v5811_v44 = vld [vmem:[#allocation14 + $0x58] sm:$0xff]  }
0x13ad   : > { %v3819_v60 = vpack.c.bf16 %v8132_v41, %v8130_v38  ;;  %v5621_v0 = vpop.f32.mrb[163].mxu1 }
0x13ae   : > { %v5812_v0 = vld [vmem:[#allocation14 + $0x18] sm:$0xff]  }
0x13ea   : > { %v3871_v62 = vpop.f32.mrb[164].mxu1 }
0x13eb   : > { %v3872_v32 = vadd.f32 %v3871_v62, %v7187_v10  ;;  %v5640_v22 = vpop.f32.mrb[165].mxu1  ;;  %v5813_v62 = vld [vmem:[#allocation14 + $0x60] sm:$0xff]  }
0x13ec   : > { %v3874_v45 = vpop.f32.mrb[166].mxu1  ;;  %v5815_v22 = vld [vmem:[#allocation14 + $0x68] sm:$0xff]  }
0x13ed   : > { %v3875_v12 = vadd.f32 %v3874_v45, %v7187_v10  ;;  %3878 = vmax.xlane.f32.xlu0 %v3872_v32  ;;  %v5641_v47 = vpop.f32.mrb[167].mxu1  ;;  %v5816_v45 = vld [vmem:[#allocation14 + $0x28] sm:$0xff]  }
0x13ee   : > { %v5821_v47 = vld [vmem:[#allocation14 + $0x140] sm:$0xff]  }
0x13ef   : > { %3880 = vmax.xlane.f32.xlu1 %v3875_v12 }
0x140a   : > { %v5292_v40 = vpop.f32.mrb[168].mxu1 }
0x140b   : > { %v5293_v17 = vpop.f32.mrb[169].mxu1 }
0x140c   : > { %v8138_v51 = vadd.f32 %v5293_v17, %v5292_v40  ;;  %v5295_v15 = vpop.f32.mrb[170].mxu1  ;;  %v5822_v40 = vld [vmem:[#allocation14 + $0x100] sm:$0xff]   ;;  %v5823_v17 = vld [vmem:[#allocation14 + $0x148] sm:$0xff]  }
0x140d   : > { %v5296_v31 = vpop.f32.mrb[171].mxu1 }
0x140e   : > { %v8140_v3 = vadd.f32 %v5296_v31, %v5295_v15  ;;  %v5824_v15 = vld [vmem:[#allocation14 + $0x108] sm:$0xff]   ;;  %v5825_v31 = vld [vmem:[#allocation14 + $0x150] sm:$0xff]  }
0x147a   : > { %v3879_v49 = vpop.xlane.xlu0 %3878 }
0x147b   : > { %v3882_v18 = vsub.f32 %v3872_v32, %v3879_v49  ;;  %v5814_v32 = vld [vmem:[#allocation14 + $0x20] sm:$0xff]   ;;  %v5826_v49 = vld [vmem:[#allocation14 + $0x110] sm:$0xff]  }
0x147c   : > { %v3881_v28 = vpop.xlane.xlu1 %3880 }
0x147d   : > { %v3884_v34 = vmul.f32 1.442695, %v3882_v18  ;;  %v3883_v20 = vsub.f32 %v3875_v12, %v3881_v28  ;;  %v5820_v12 = vld [vmem:[#allocation14 + $0x38] sm:$0xff]  }
0x147e   : > { %v5827_v18 = vld [vmem:[#allocation14 + $0x158] sm:$0xff]  }
0x147f   : > { %5909 = vpow2.f32 %v3884_v34  ;;  %v3886_v59 = vmul.f32 1.442695, %v3883_v20  ;;  %v5828_v28 = vld [vmem:[#allocation14 + $0x118] sm:$0xff]   ;;  %v5829_v34 = vld [vmem:[#allocation14 + $0x160] sm:$0xff]  }
0x1480   : > { %v5830_v20 = vld [vmem:[#allocation14 + $0x120] sm:$0xff]  }
0x1481   : > { %5911 = vpow2.f32 %v3886_v59  ;;  %v5851_v59 = vld [vmem:[#allocation14 + $0x1f8] sm:$0xff]  }
0x1482   : > { %5334 = vmatprep.subr.bf16.mxu1 %v5851_v59 }
0x1489   : > { %v5910_v10 = vpop.eup %5909 }
0x148a   : > { %3888 = vadd.xlane.f32.xlu0 %v5910_v10 }
0x148b   : > { %v5912_v30 = vpop.eup %5911 }
0x148c   : > { %3890 = vadd.xlane.f32.xlu1 %v5912_v30 }
0x1517   : > { %v3889_v58 = vpop.xlane.xlu0 %3888 }
0x1518   : > { %5913 = vrcp.f32 %v3889_v58 }
0x1519   : > { %v3891_v63 = vpop.xlane.xlu1 %3890 }
0x151a   : > { %5915 = vrcp.f32 %v3891_v63 }
0x1522   : > { %v5914_v2 = vpop.eup %5913 }
0x1523   : > { %v3894_v16 = vmul.f32 %v5914_v2, %v5910_v10  ;;  %v5852_v10 = vld [vmem:[#allocation14 + $0x1b8] sm:$0xff]  }
0x1524   : > { %v5916_v11 = vpop.eup %5915  ;;  %5335 = vmatpush3.bf16.msra.mxu1 %v5852_v10 }
0x1525   : > { %v3895_v27 = vmul.f32 %v5916_v11, %v5912_v30 }
0x1527   : > { %v3896_v26 = vpack.c.bf16 %v3895_v27, %v3894_v16 }
0x1529   : > { %5659 = vmatmul.mubr.bf16.vlgmr.msra.gmra.mrb[164].mxu0 %v3896_v26 }
0x152a   : > { %5255 = vmatpush3.bf16.msra.mxu0 %v5806_v35  ;;  %4499 = vmatprep.mubr.bf16.mxu0 %v3224_v43  ;;  %v5819_v43 = vld [vmem:[#allocation14 + $0x78] sm:$0xff]  }
0x152b   : > { %5256 = vmatprep.subr.bf16.mxu0 %v5807_v53 }
0x152e   : > { %5257 = vmatpush3.bf16.msra.mxu0 %v5808_v14 }
0x152f   : > { %5258 = vmatprep.subr.bf16.mxu0 %v5809_v39 }
0x1532   : > { %5259 = vmatpush3.bf16.msra.mxu0 %v5810_v1 }
0x1533   : > { %5260 = vmatprep.subr.bf16.mxu0 %v5811_v44 }
0x1536   : > { %5261 = vmatpush3.bf16.msra.mxu0 %v5812_v0 }
0x1537   : > { %5262 = vmatprep.subr.bf16.mxu0 %v5813_v62 }
0x153a   : > { %5263 = vmatpush3.bf16.msra.mxu0 %v5814_v32 }
0x153b   : > { %5264 = vmatprep.subr.bf16.mxu0 %v5815_v22 }
0x153e   : > { %5265 = vmatpush3.bf16.msra.mxu0 %v5816_v45 }
0x153f   : > { %5266 = vmatprep.subr.bf16.mxu0 %v5817_v23 }
0x1542   : > { %5267 = vmatpush3.bf16.msra.mxu0 %v5818_v61 }
0x1543   : > { %5268 = vmatprep.subr.bf16.mxu0 %v5819_v43 }
0x1546   : > { %5269 = vmatpush3.bf16.msra.mxu0 %v5820_v12 }
0x1547   : > { %5298 = vmatprep.subr.bf16.mxu0 %v5821_v47 }
0x1549   : > { %4500 = vmatmul.mubr.bf16.vlgmr.msra.gmra.mrb[168].mxu0 %v3105_v56  ;;  %v5833_v56 = vld [vmem:[#allocation14 + $0x170] sm:$0xff]  }
0x154a   : > { %5299 = vmatpush3.bf16.msra.mxu0 %v5822_v40  ;;  %4581 = vmatprep.mubr.bf16.mxu0 %v3700_v19  ;;  %v5836_v19 = vld [vmem:[#allocation14 + $0x138] sm:$0xff]  }
0x154b   : > { %5300 = vmatprep.subr.bf16.mxu0 %v5823_v17 }
0x154e   : > { %5301 = vmatpush3.bf16.msra.mxu0 %v5824_v15 }
0x154f   : > { %5302 = vmatprep.subr.bf16.mxu0 %v5825_v31 }
0x1552   : > { %5303 = vmatpush3.bf16.msra.mxu0 %v5826_v49 }
0x1553   : > { %5304 = vmatprep.subr.bf16.mxu0 %v5827_v18 }
0x1556   : > { %5305 = vmatpush3.bf16.msra.mxu0 %v5828_v28 }
0x1557   : > { %5306 = vmatprep.subr.bf16.mxu0 %v5829_v34 }
0x155a   : > { %5307 = vmatpush3.bf16.msra.mxu0 %v5830_v20 }
0x155b   : > { %5308 = vmatprep.subr.bf16.mxu0 %v5831_v36 }
0x155e   : > { %5309 = vmatpush3.bf16.msra.mxu0 %v5832_v52 }
0x155f   : > { %5310 = vmatprep.subr.bf16.mxu0 %v5833_v56 }
0x1562   : > { %5311 = vmatpush3.bf16.msra.mxu0 %v5834_v33 }
0x1563   : > { %5312 = vmatprep.subr.bf16.mxu0 %v5835_v4 }
0x1566   : > { %5313 = vmatpush3.bf16.msra.mxu0 %v5836_v19 }
0x1569   : > { %4582 = vmatmul.mubr.bf16.vlgmr.msra.gmra.mrb[172].mxu0 %v3581_v8 }
0x15fc   : > { %v3931_v30 = vpop.f32.mrb[164].mxu0 }
0x15fd   : > { %v5660_v5 = vpop.f32.mrb[165].mxu0 }
0x15fe   : > { %v3934_v9 = vpop.f32.mrb[166].mxu0 }
0x15ff   : > { %v3938_v48 = vpack.c.bf16 %v3934_v9, %v3931_v30  ;;  %v5661_v54 = vpop.f32.mrb[167].mxu0 }
0x1601   : > { %4622 = vmatprep.mubr.bf16.mxu1 %v3938_v48 }
0x1602   : > { %4623 = vmatmul.mubr.bf16.vlgmr.msra.gmra.mrb[172].mxu1 %v3819_v60 }
0x161c   : > { %v5270_v13 = vpop.f32.mrb[168].mxu0 }
0x161d   : > { %v5271_v6 = vpop.f32.mrb[169].mxu0 }
0x161e   : > { %v5272_v8 = vadd.f32 %v5271_v6, %v5270_v13  ;;  %v5273_v55 = vpop.f32.mrb[170].mxu0 }
0x161f   : > { %v5274_v7 = vpop.f32.mrb[171].mxu0 }
0x1620   : > { %v4502_v37 = vadd.f32 %v5272_v8, %v5028_v50  ;;  %v5275_v29 = vadd.f32 %v5274_v7, %v5273_v55 }
0x1622   : > { %v4505_v21 = vadd.f32 %v5275_v29, %v5028_v50  ;;  %v4543_v24 = vadd.f32 %v8138_v51, %v4502_v37 }
0x1624   : > { %v4546_v25 = vadd.f32 %v8140_v3, %v4505_v21 }
0x163c   : > { %v5314_v42 = vpop.f32.mrb[172].mxu0 }
0x163d   : > { %v5315_v38 = vpop.f32.mrb[173].mxu0 }
0x163e   : > { %v5316_v41 = vadd.f32 %v5315_v38, %v5314_v42  ;;  %v5317_v60 = vpop.f32.mrb[174].mxu0 }
0x163f   : > { %v5318_v46 = vpop.f32.mrb[175].mxu0 }
0x1640   : > { %v4584_v57 = vadd.f32 %v5316_v41, %v4543_v24  ;;  %v5319_v58 = vadd.f32 %v5318_v46, %v5317_v60 }
0x1642   : > { %v4587_v63 = vadd.f32 %v5319_v58, %v4546_v25 }
0x16d5   : > { %v5336_v2 = vpop.f32.mrb[172].mxu1 }
0x16d6   : > { %v5337_v11 = vpop.f32.mrb[173].mxu1 }
0x16d7   : > { %v5338_v16 = vadd.f32 %v5337_v11, %v5336_v2  ;;  %v5339_v27 = vpop.f32.mrb[174].mxu1 }
0x16d8   : > { %v5340_v35 = vpop.f32.mrb[175].mxu1 }
0x16d9   : > { %v4625_v51 = vadd.f32 %v5338_v16, %v4584_v57  ;;  %v5341_v26 = vadd.f32 %v5340_v35, %v5339_v27 }
0x16db   : > { %v4628_v3 = vadd.f32 %v5341_v26, %v4587_v63 }
0x16dd   : > { %v5108_v53 = vpack.c.bf16 %v4628_v3, %v4625_v51 }
0x16df   : > { %5109 = vst [vmem:[%s412_s23] sm:$0xff] %v5108_v53  }
0x16e0   : > { %6106 = shalt.err (!%p6103_p6)
}
0x16e1   : > { %s6107_s22 = scalar_lea.hbm %s8168_s2, 128  ;;  %s6111_s3 = scalar_lea.hbm %s8896_s18, 256 }
0x16e2   : > { %p6108_p7 = scmp.ne.s32.totalorder %s8168_s2, %s6107_s22  ;;  %p6112_p2 = scmp.lt.u32.totalorder %s8168_s2, %s8896_s18 }
0x16e3   : > { %p6113_p13 = scmp.lt.u32.totalorder %s6111_s3, %s6107_s22  ;;  %p6115_p1 = scmp.lt.u32.totalorder %s6107_s22, %s8168_s2 }
0x16e4   : > { %p6109_p9 = pnand %p6108_p7, %p6430_p5 }
0x16e5   : > { %p6114_p4 = por %p6113_p13, %p6112_p2 }
0x16e6   : > { %p6110_p0 = pneg %p6109_p9 }
0x16e7   : > { %p6116_p8 = por %p6115_p1, %p6114_p4 }
0x16e9   : > { %p6117_p10 = pnand %p6116_p8, %p6110_p0 }
0x16eb   : > { %6120 = shalt.err (!%p6117_p10)
}
0x16ec   : > { %s6208_s30 = smov 64   ;;  %s6209_s9 = smov 4  }
0x16ed   : > { %5682 = dma.vmem_to_hbm [thread:$0]  (%p6430_p5), %s8170_s13, 128, %s8168_s2, %s4642_s17, %s6208_s30, %s6208_s30, %s6209_s9  }
0x16ee PF: > { %s8897_s15 = sld [smem:[#allocation23_spill]]  ;;  %s8898_s23 = sld [smem:[#allocation24_spill]] }
0x16ef   : > { %p8900_p11 = scmp.ge.s32.totalorder %s6191_s29, 2 }
0x16f4   : > { %s4672_s20 = sand.u32 1, %s8897_s15   ;;  %p8899_p3 = scmp.ne.s32.totalorder %s8898_s23, 0 }
0x16f5   : > { %s4673_s21 = scalar_lea.sflag [#allocation7], %s4672_s20 }
0x16f6   : > { %p5705_p12 = pnand %p8900_p11, %p8899_p3 }
0x16f8   : > { %6166 = dma.done.wait (!%p5705_p12), %s4673_s21, 128  }
0x16f9   : > { %6168 = vsyncadd (!%p5705_p12), %s4673_s21, 4294967168  ;;  %s28_s29 = sadd.s32 1, %s6191_s29   ;;  %s8901_s24 = smov %s6175_s25 }
0x16fa   : > { %p25_p6 = scmp.ge.s32.totalorder %s28_s29, 4   ;;  %s8902_s25 = smov %s6179_s26 }
0x16fb   : > { %s8903_s26 = smov %s6442_s12  ;;  %s8904_s27 = smov %s6187_s28 }
0x16fc   : > { %s8905_s28 = smov %s8907_s7  ;;  %27 = sbr.rel (!%p25_p6) target bundleno = 16 (0x10), region = 126 }
0x1703   :  { %4678 = vsyncpa [#allocation6], 1 }
0x1704   :  { %4680 = vsyncpa [#allocation6 + $0x1], 1 }
0x1705   :  { %4681 = vsyncpa [#allocation9], 1 }
0x1706   :  { %4683 = vsyncpa [#allocation9 + $0x1], 1 }
0x1707   :  { %4684 = vsyncpa [#allocation12], 1 }
0x1708   :  { %4685 = vsyncpa [#allocation15], 1 }
0x1709   :  { %4686 = vsyncpa [#allocation7], 1 }
0x170a   :  { %4688 = vsyncpa [#allocation7 + $0x1], 1 }

</bundles_post_ra>
